<compile_context>
chip_gen: v6e
topology: v6e:2x2x1
jax: 0.10.0
libtpu: 0.0.40
codegen_flags: <defaults>
</compile_context>

<pallas_src>
import jax
import jax.numpy as jnp
from jax import lax
from jax.experimental import pallas as pl
from jax.experimental.pallas import tpu as pltpu

_LANE = 128
_SUBLANE = 8


def _round_up(x, m):
    return -(-x // m) * m


def _num_tensorcores():
    """Best-effort TensorCore count of the local device (v7x has 2)."""
    try:
        return max(1, int(getattr(jax.devices()[0], "num_cores", 1)))
    except Exception:
        return 1


def _pick_time_chunk(T, Bt, Hp, max_chunk=256):
    """Time-chunk length: large enough to amortize grid-step cost, small enough
    that the per-chunk G slab (bf16 + f32 transient) + h chunk fit ~36 MiB."""
    per_step = 28 * Hp * Bt                       # bytes per chunk timestep
    cap = max(1, min(max_chunk, (36 << 20) // per_step, T))
    lo = max(1, cap // 2)
    for c in range(cap, lo - 1, -1):              # prefer an exact divisor: no mask
        if T % c == 0:
            return c, False
    return cap, True                              # pad T, mask the tail


def _make_kernel(n_layer, Hp, Tc, Bt, T_total, needs_mask, unroll):
    G4 = 4 * Hp
    H3 = 3 * Hp

    def kernel(x_ref, *args):
        wfc_ref = args[3 * n_layer]
        bfc_ref = args[3 * n_layer + 1]
        y_ref = args[3 * n_layer + 2]
        g_sc = args[3 * n_layer + 3]      # (Tc, Bt, 4Hp) bf16: chunk gate inputs
        hc_sc = args[3 * n_layer + 4]     # (Tc, Bt, Hp)  bf16: chunk h outputs
        h_st = args[3 * n_layer + 5]      # (n_layer, Bt, Hp) bf16: h carry
        c_st = args[3 * n_layer + 6]      # (n_layer, Bt, Hp) f32:  c carry

        c_idx = pl.program_id(1)

        @pl.when(c_idx == 0)
        def _():
            h_st[...] = jnp.zeros(h_st.shape, h_st.dtype)
            c_st[...] = jnp.zeros(c_st.shape, c_st.dtype)

        h_last = None
        for l in range(n_layer):
            wx_ref = args[3 * l]
            wh_ref = args[3 * l + 1]
            b_ref = args[3 * l + 2]

            # --- chunk-wide input projection: one large MXU dot, bias folded in
            if l == 0:
                x2d = x_ref[...].reshape(Tc * Bt, x_ref.shape[-1])
            else:
                x2d = hc_sc[...].reshape(Tc * Bt, Hp)
            g_full = (jnp.dot(x2d, wx_ref[...],
                              preferred_element_type=jnp.float32)
                      + b_ref[...]).astype(jnp.bfloat16)
            g_sc[...] = g_full.reshape(Tc, Bt, G4)

            # --- serial recurrence: only h_prev @ Wh (K=Hp) + gate math per step
            h0 = h_st[l]
            c0 = c_st[l]
            write_chunk = l < n_layer - 1

            def step(t, carry, _wh_ref=wh_ref, _write=write_chunk):
                h_prev, c_prev = carry
                gates = (jnp.dot(h_prev, _wh_ref[...],
                                 preferred_element_type=jnp.float32)
                         + g_sc[t])
                # sigmoid(z) = 0.5*(tanh(0.5*z)+1): 1 EUP op/elem vs exp+recip.
                sig = 0.5 * (jnp.tanh(0.5 * gates[:, :H3]) + 1.0)
                g_g = jnp.tanh(gates[:, H3:])
                i_g = sig[:, 0 * Hp:1 * Hp]
                f_g = sig[:, 1 * Hp:2 * Hp]
                o_g = sig[:, 2 * Hp:3 * Hp]
                c_new = f_g * c_prev + i_g * g_g
                h_new = (o_g * jnp.tanh(c_new)).astype(jnp.bfloat16)
                if needs_mask:
                    valid = (c_idx * Tc + t) < T_total
                    h_new = jnp.where(valid, h_new, h_prev)
                    c_new = jnp.where(valid, c_new, c_prev)
                if _write:
                    hc_sc[t] = h_new
                return h_new, c_new

            h_fin, c_fin = lax.fori_loop(0, Tc, step, (h0, c0), unroll=unroll)
            h_st[l] = h_fin
            c_st[l] = c_fin
            h_last = h_fin

        @pl.when(c_idx == pl.num_programs(1) - 1)
        def _():
            y_ref[...] = (jnp.dot(h_last, wfc_ref[...],
                                  preferred_element_type=jnp.float32)
                          + bfc_ref[...]).astype(y_ref.dtype)

    return kernel


def rnn_forward(x, layer_params, wfc, bfc):
    """x: (B, T, D) f32.  layer_params: tuple of (Wx bf16, Wh bf16, b f32).
    Returns fc(h_T) squeezed, matching `fc(out[:, -1, :]).squeeze()`."""
    B, T, D = x.shape
    n_layer = len(layer_params)
    Hp = wfc.shape[0]
    Dp = layer_params[0][0].shape[0]            # layer-0 input rows (D rounded to 8)

    # ---- batch padding / tiling --------------------------------------------
    if B <= _LANE:
        Bp = _round_up(max(B, _SUBLANE), _SUBLANE)
        Bt = Bp
    else:
        Bp = _round_up(B, _LANE)
        Bt = _LANE
    nb = Bp // Bt
    # v7x has 2 TensorCores: give the "parallel" batch axis extent >= 2 so both
    # get work.  (No split on 1-TC chips: it would serialize the recurrence 2x.)
    if (nb == 1 and B > _SUBLANE and Bt >= 2 * _SUBLANE
            and Bt % (2 * _SUBLANE) == 0 and _num_tensorcores() >= 2):
        Bt //= 2
        nb = 2

    # ---- time chunking -------------------------------------------------------
    Tc, needs_mask = _pick_time_chunk(T, Bt, Hp)
    nc = -(-T // Tc)
    Tpad = nc * Tc
    unroll = True if Tc <= 16 else 8

    # ---- inputs: time-major, bf16, feature pad only to 8 (not 128) ----------
    x_tm = jnp.transpose(x, (1, 0, 2)).astype(jnp.bfloat16)          # (T, B, D)
    x_tm = jnp.pad(x_tm, ((0, Tpad - T), (0, Bp - B), (0, Dp - D)))  # (Tpad,Bp,Dp)

    kernel = _make_kernel(n_layer, Hp, Tc, Bt, T, needs_mask, unroll)

    vmem_res = pl.BlockSpec(memory_space=pltpu.MemorySpace.VMEM)     # resident once
    in_specs = [pl.BlockSpec((Tc, Bt, Dp), lambda b, c: (c, b, 0))]
    flat = []
    for (wx, wh, b) in layer_params:
        in_specs += [vmem_res, vmem_res, vmem_res]
        flat += [wx, wh, b]
    in_specs += [vmem_res, vmem_res]

    hc_shape = (Tc, Bt, Hp) if n_layer > 1 else (1, _SUBLANE, _LANE)
    scratch_shapes = [
        pltpu.VMEM((Tc, Bt, 4 * Hp), jnp.bfloat16),   # G: chunk gate inputs
        pltpu.VMEM(hc_shape, jnp.bfloat16),           # chunk h outputs (layer feed)
        pltpu.VMEM((n_layer, Bt, Hp), jnp.bfloat16),  # h carry across chunks
        pltpu.VMEM((n_layer, Bt, Hp), jnp.float32),   # c carry across chunks
    ]

    # ---- explicit VMEM budget from the actual buffers (+ headroom) ----------
    g_bytes = Tc * Bt * 4 * Hp * 2
    g_f32_tmp = Tc * Bt * 4 * Hp * 4                  # transient f32 dot result
    hc_bytes = (Tc * Bt * Hp * 2) if n_layer > 1 else _SUBLANE * _LANE * 2
    st_bytes = n_layer * Bt * Hp * (2 + 4)
    io_bytes = 2 * Tc * Bt * Dp * 2 + 2 * Bt * _LANE * 4
    w_bytes = sum(int(a.size) * a.dtype.itemsize for a in flat)
    w_bytes += int(wfc.size) * wfc.dtype.itemsize + int(bfc.size) * bfc.dtype.itemsize
    vmem_limit = int(1.3 * (g_bytes + g_f32_tmp + hc_bytes + st_bytes
                            + io_bytes + w_bytes)) + (8 << 20)
    vmem_limit = min(max(vmem_limit, 32 << 20), 100 << 20)

    y = pl.pallas_call(
        kernel,
        out_shape=jax.ShapeDtypeStruct((Bp, _LANE), jnp.float32),
        grid_spec=pltpu.PrefetchScalarGridSpec(
            num_scalar_prefetch=0,
            grid=(nb, nc),
            in_specs=in_specs,
            out_specs=pl.BlockSpec((Bt, _LANE), lambda b, c: (b, 0)),
            scratch_shapes=scratch_shapes,
        ),
        compiler_params=pltpu.CompilerParams(
            dimension_semantics=("parallel", "arbitrary"),
            vmem_limit_bytes=vmem_limit,
        ),
    )(x_tm, *flat, wfc, bfc)

    return jnp.squeeze(y[:B, 0])


# --------------------------- parameter handling -----------------------------

def _init_raw_params(key, in_dim, hidden, n_layer):
    """PyTorch-layout LSTM/Linear params, U(-k, k) with k = 1/sqrt(hidden)."""
    k = 1.0 / jnp.sqrt(jnp.float32(hidden))
    keys = jax.random.split(key, 4 * n_layer + 2)
    ki = 0
    layers = []
    for l in range(n_layer):
        d_in = in_dim if l == 0 else hidden
        w_ih = jax.random.uniform(keys[ki], (4 * hidden, d_in), jnp.float32, -k, k); ki += 1
        w_hh = jax.random.uniform(keys[ki], (4 * hidden, hidden), jnp.float32, -k, k); ki += 1
        b_ih = jax.random.uniform(keys[ki], (4 * hidden,), jnp.float32, -k, k); ki += 1
        b_hh = jax.random.uniform(keys[ki], (4 * hidden,), jnp.float32, -k, k); ki += 1
        layers.append((w_ih, w_hh, b_ih, b_hh))
    w_fc = jax.random.uniform(keys[ki], (1, hidden), jnp.float32, -k, k); ki += 1
    b_fc = jax.random.uniform(keys[ki], (1,), jnp.float32, -k, k); ki += 1
    return layers, (w_fc, b_fc)


def _pack_params(raw, in_dim, hidden, n_layer):
    """Keep Wx/Wh separate, reorder gates (i,f,g,o)->(i,f,o,g), pad each gate
    block to 128 lanes, pad Wh rows to Hp, Wx(layer0) rows only to 8; bf16
    weights, f32 biases.  FC weight padded lane-dense to (Hp, 128)."""
    layers_raw, (w_fc, b_fc) = raw
    H = hidden
    Hp = max(_LANE, _round_up(H, _LANE))
    d0p = max(_SUBLANE, _round_up(in_dim, _SUBLANE))
    order = (0, 1, 3, 2)                       # PyTorch (i, f, g, o) -> (i, f, o, g)
    layer_params = []
    for l, (w_ih, w_hh, b_ih, b_hh) in enumerate(layers_raw):
        d_in = in_dim if l == 0 else H
        dp_in = d0p if l == 0 else Hp
        wx = w_ih.T                            # (d_in, 4H)
        wh = w_hh.T                            # (H, 4H)
        b = b_ih + b_hh                        # (4H,)
        wx_b = [jnp.pad(wx[:, k * H:(k + 1) * H], ((0, 0), (0, Hp - H))) for k in order]
        wh_b = [jnp.pad(wh[:, k * H:(k + 1) * H], ((0, 0), (0, Hp - H))) for k in order]
        b_b = [jnp.pad(b[k * H:(k + 1) * H], (0, Hp - H)) for k in order]
        wx_p = jnp.pad(jnp.concatenate(wx_b, axis=1),
                       ((0, dp_in - d_in), (0, 0))).astype(jnp.bfloat16)
        wh_p = jnp.pad(jnp.concatenate(wh_b, axis=1),
                       ((0, Hp - H), (0, 0))).astype(jnp.bfloat16)
        b_p = jnp.concatenate(b_b).reshape(1, 4 * Hp).astype(jnp.float32)
        layer_params.append((wx_p, wh_p, b_p))
    wfc_p = jnp.pad(w_fc.T, ((0, Hp - H), (0, _LANE - 1))).astype(jnp.bfloat16)
    bfc_p = jnp.pad(b_fc.reshape(1, 1), ((0, 0), (0, _LANE - 1))).astype(jnp.float32)
    return tuple(layer_params), wfc_p, bfc_p


# ------------------------------- references ---------------------------------

def _reference_f32(x, raw, hidden, n_layer):
    """Pure-f32 PyTorch-semantics LSTM + Linear."""
    layers, (w_fc, b_fc) = raw
    B, T, _ = x.shape
    H = hidden
    h = [jnp.zeros((B, H), jnp.float32) for _ in range(n_layer)]
    c = [jnp.zeros((B, H), jnp.float32) for _ in range(n_layer)]
    for t in range(T):
        inp = x[:, t, :]
        for l, (w_ih, w_hh, b_ih, b_hh) in enumerate(layers):
            gates = inp @ w_ih.T + h[l] @ w_hh.T + b_ih + b_hh
            i_g = jax.nn.sigmoid(gates[:, 0:H])
            f_g = jax.nn.sigmoid(gates[:, H:2 * H])
            g_g = jnp.tanh(gates[:, 2 * H:3 * H])
            o_g = jax.nn.sigmoid(gates[:, 3 * H:4 * H])
            c[l] = f_g * c[l] + i_g * g_g
            h[l] = o_g * jnp.tanh(c[l])
            inp = h[l]
    return jnp.squeeze(h[-1] @ w_fc.T + b_fc)


def _reference_matched(x, layer_params, wfc, bfc):
    """Pure-JAX reference using the same packed / bf16 / tanh-sigmoid math."""
    B, T, D = x.shape
    n_layer = len(layer_params)
    Hp = wfc.shape[0]
    Dp = layer_params[0][0].shape[0]
    H3 = 3 * Hp
    inp = jnp.pad(x, ((0, 0), (0, 0), (0, Dp - D))).astype(jnp.bfloat16)  # (B,T,Dp)
    h = [jnp.zeros((B, Hp), jnp.bfloat16) for _ in range(n_layer)]
    c = [jnp.zeros((B, Hp), jnp.float32) for _ in range(n_layer)]
    for l, (wx, wh, b) in enumerate(layer_params):
        g_all = (jnp.einsum("btd,dg->btg", inp, wx,
                            preferred_element_type=jnp.float32) + b
                 ).astype(jnp.bfloat16)
        outs = []
        for t in range(T):
            gates = jnp.dot(h[l], wh, preferred_element_type=jnp.float32) + g_all[:, t]
            sig = 0.5 * (jnp.tanh(0.5 * gates[:, :H3]) + 1.0)
            g_g = jnp.tanh(gates[:, H3:])
            i_g, f_g, o_g = sig[:, :Hp], sig[:, Hp:2 * Hp], sig[:, 2 * Hp:3 * Hp]
            c[l] = f_g * c[l] + i_g * g_g
            h[l] = (o_g * jnp.tanh(c[l])).astype(jnp.bfloat16)
            outs.append(h[l])
        inp = jnp.stack(outs, axis=1)
    out = jnp.dot(h[-1], wfc, preferred_element_type=jnp.float32) + bfc
    return jnp.squeeze(out[:, 0])


if __name__ == "__main__":
    # TODO(synk): txt2tensor / dataset loading is host-side I/O, not part of the
    # module forward pass; example inputs are generated in-script instead.
    B, T, IN_DIM, HIDDEN, N_LAYER = 2, 8, 4, 32, 2

    root = jax.random.PRNGKey(0)
    kx, kp = jax.random.split(root)
    x = jax.random.normal(kx, (B, T, IN_DIM), jnp.float32)

    raw = _init_raw_params(kp, IN_DIM, HIDDEN, N_LAYER)
    layer_params, wfc, bfc = _pack_params(raw, IN_DIM, HIDDEN, N_LAYER)

    out = jax.jit(rnn_forward)(x, layer_params, wfc, bfc)
    out = jax.block_until_ready(out)

    ref_matched = _reference_matched(x, layer_params, wfc, bfc)
    ref_f32 = _reference_f32(x, raw, HIDDEN, N_LAYER)

    assert out.shape == (B,), out.shape
    # Same-precision (bf16-operand, tanh-sigmoid) reference: tight check.
    assert jnp.allclose(out, ref_matched, atol=5e-3, rtol=5e-3), (out, ref_matched)
    # Full-f32 PyTorch-semantics reference: loose check (bf16 rounding).
    assert jnp.allclose(out, ref_f32, atol=6e-2, rtol=6e-2), (out, ref_f32)

    print("KERNEL_OK")
</pallas_src>

<mosaic_0001>
module attributes {stable_mosaic.version = 11 : i64} {
  func.func @kernel(%arg0: i32, %arg1: i32, %arg2: memref<8x8x8xbf16, #tpu.memory_space<vmem>>, %arg3: memref<8x512xbf16, #tpu.memory_space<vmem>>, %arg4: memref<128x512xbf16, #tpu.memory_space<vmem>>, %arg5: memref<1x512xf32, #tpu.memory_space<vmem>>, %arg6: memref<128x512xbf16, #tpu.memory_space<vmem>>, %arg7: memref<128x512xbf16, #tpu.memory_space<vmem>>, %arg8: memref<1x512xf32, #tpu.memory_space<vmem>>, %arg9: memref<128x128xbf16, #tpu.memory_space<vmem>>, %arg10: memref<1x128xf32, #tpu.memory_space<vmem>>, %arg11: memref<8x128xf32, #tpu.memory_space<vmem>>, %arg12: memref<8x8x512xbf16, #tpu.memory_space<vmem>>, %arg13: memref<8x8x128xbf16, #tpu.memory_space<vmem>>, %arg14: memref<2x8x128xbf16, #tpu.memory_space<vmem>>, %arg15: memref<2x8x128xf32, #tpu.memory_space<vmem>>) attributes {dimension_semantics = [#tpu.dimension_semantics<parallel>, #tpu.dimension_semantics<arbitrary>], iteration_bounds = array<i64: 1, 1>, scalar_prefetch = 0 : i64, scratch_operands = 4 : i64, tpu.core_type = #tpu.core_type<tc>, window_params = [{transform_indices = @transform_0, window_bounds = array<i64: 8, 8, 8>}, {pipeline_mode = #tpu.pipeline_mode<synchronous>, transform_indices = @transform_1, window_bounds = array<i64: 8, 512>}, {pipeline_mode = #tpu.pipeline_mode<synchronous>, transform_indices = @transform_2, window_bounds = array<i64: 128, 512>}, {pipeline_mode = #tpu.pipeline_mode<synchronous>, transform_indices = @transform_3, window_bounds = array<i64: 1, 512>}, {pipeline_mode = #tpu.pipeline_mode<synchronous>, transform_indices = @transform_4, window_bounds = array<i64: 128, 512>}, {pipeline_mode = #tpu.pipeline_mode<synchronous>, transform_indices = @transform_5, window_bounds = array<i64: 128, 512>}, {pipeline_mode = #tpu.pipeline_mode<synchronous>, transform_indices = @transform_6, window_bounds = array<i64: 1, 512>}, {pipeline_mode = #tpu.pipeline_mode<synchronous>, transform_indices = @transform_7, window_bounds = array<i64: 128, 128>}, {pipeline_mode = #tpu.pipeline_mode<synchronous>, transform_indices = @transform_8, window_bounds = array<i64: 1, 128>}, {transform_indices = @transform_9, window_bounds = array<i64: 8, 128>}]} {
    %c0_i32 = arith.constant 0 : i32
    %0 = arith.cmpi eq, %arg1, %c0_i32 : i32
    %1 = arith.extui %0 : i1 to i32
    %c0_i32_0 = arith.constant 0 : i32
    %2 = arith.cmpi ne, %1, %c0_i32_0 : i32
    scf.if %2 {
      %cst_200 = arith.constant 0.000000e+00 : bf16
      %494 = vector.broadcast %cst_200 : bf16 to vector<2x8x128xbf16>
      %c0_201 = arith.constant 0 : index
      %c0_202 = arith.constant 0 : index
      %c0_203 = arith.constant 0 : index
      %495 = vector.load %arg14[%c0_201, %c0_202, %c0_203] : memref<2x8x128xbf16, #tpu.memory_space<vmem>>, vector<2x8x128xbf16>
      tpu.vector_store %arg14[%c0_201, %c0_202, %c0_203], %494 {strides = array<i32>} : memref<2x8x128xbf16, #tpu.memory_space<vmem>>, vector<2x8x128xbf16>,
      %cst_204 = arith.constant 0.000000e+00 : f32
      %496 = vector.broadcast %cst_204 : f32 to vector<2x8x128xf32>
      %c0_205 = arith.constant 0 : index
      %c0_206 = arith.constant 0 : index
      %c0_207 = arith.constant 0 : index
      %497 = vector.load %arg15[%c0_205, %c0_206, %c0_207] : memref<2x8x128xf32, #tpu.memory_space<vmem>>, vector<2x8x128xf32>
      tpu.vector_store %arg15[%c0_205, %c0_206, %c0_207], %496 {strides = array<i32>} : memref<2x8x128xf32, #tpu.memory_space<vmem>>, vector<2x8x128xf32>,
    } else {
    }
    %c0 = arith.constant 0 : index
    %c0_1 = arith.constant 0 : index
    %c0_2 = arith.constant 0 : index
    %3 = vector.load %arg2[%c0, %c0_1, %c0_2] : memref<8x8x8xbf16, #tpu.memory_space<vmem>>, vector<8x8x8xbf16>
    %4 = vector.shape_cast %3 : vector<8x8x8xbf16> to vector<64x8xbf16>
    %c0_3 = arith.constant 0 : index
    %c0_4 = arith.constant 0 : index
    %5 = vector.load %arg3[%c0_3, %c0_4] : memref<8x512xbf16, #tpu.memory_space<vmem>>, vector<8x512xbf16>
    %cst = arith.constant dense<0.000000e+00> : vector<64x512xf32>
    %6 = tpu.matmul %4, %5, %cst {dimension_numbers = #tpu.dot_dimension_numbers<[1], [0], [0], [1], [0, 0, 1, 1], [], []>} : vector<64x8xbf16>, vector<8x512xbf16>, vector<64x512xf32> -> vector<64x512xf32>
    %c0_5 = arith.constant 0 : index
    %c0_6 = arith.constant 0 : index
    %7 = vector.load %arg5[%c0_5, %c0_6] : memref<1x512xf32, #tpu.memory_space<vmem>>, vector<1x512xf32>
    %8 = vector.broadcast %7 : vector<1x512xf32> to vector<64x512xf32>
    %9 = arith.addf %6, %8 : vector<64x512xf32>
    %10 = arith.truncf %9 : vector<64x512xf32> to vector<64x512xbf16>
    %11 = vector.shape_cast %10 : vector<64x512xbf16> to vector<8x8x512xbf16>
    %c0_7 = arith.constant 0 : index
    %c0_8 = arith.constant 0 : index
    %c0_9 = arith.constant 0 : index
    %12 = vector.load %arg12[%c0_7, %c0_8, %c0_9] : memref<8x8x512xbf16, #tpu.memory_space<vmem>>, vector<8x8x512xbf16>
    tpu.vector_store %arg12[%c0_7, %c0_8, %c0_9], %11 {strides = array<i32>} : memref<8x8x512xbf16, #tpu.memory_space<vmem>>, vector<8x8x512xbf16>,
    %c0_10 = arith.constant 0 : index
    %c0_11 = arith.constant 0 : index
    %c0_12 = arith.constant 0 : index
    %13 = vector.load %arg14[%c0_10, %c0_11, %c0_12] : memref<2x8x128xbf16, #tpu.memory_space<vmem>>, vector<1x8x128xbf16>
    %14 = vector.shape_cast %13 : vector<1x8x128xbf16> to vector<8x128xbf16>
    %c0_13 = arith.constant 0 : index
    %c0_14 = arith.constant 0 : index
    %c0_15 = arith.constant 0 : index
    %15 = vector.load %arg15[%c0_13, %c0_14, %c0_15] : memref<2x8x128xf32, #tpu.memory_space<vmem>>, vector<1x8x128xf32>
    %16 = vector.shape_cast %15 : vector<1x8x128xf32> to vector<8x128xf32>
    %c0_i32_16 = arith.constant 0 : i32
    %c0_17 = arith.constant 0 : index
    %c0_18 = arith.constant 0 : index
    %17 = vector.load %arg4[%c0_17, %c0_18] : memref<128x512xbf16, #tpu.memory_space<vmem>>, vector<128x512xbf16>
    %cst_19 = arith.constant dense<0.000000e+00> : vector<8x512xf32>
    %18 = tpu.matmul %14, %17, %cst_19 {dimension_numbers = #tpu.dot_dimension_numbers<[1], [0], [0], [1], [0, 0, 1, 1], [], []>} : vector<8x128xbf16>, vector<128x512xbf16>, vector<8x512xf32> -> vector<8x512xf32>
    %19 = arith.index_cast %c0_i32_16 : i32 to index
    %c0_20 = arith.constant 0 : index
    %c0_21 = arith.constant 0 : index
    %20 = vector.load %arg12[%19, %c0_20, %c0_21] : memref<8x8x512xbf16, #tpu.memory_space<vmem>>, vector<1x8x512xbf16>
    %21 = vector.shape_cast %20 : vector<1x8x512xbf16> to vector<8x512xbf16>
    %22 = arith.extf %21 : vector<8x512xbf16> to vector<8x512xf32>
    %23 = arith.addf %18, %22 : vector<8x512xf32>
    %24 = vector.extract_strided_slice %23 {offsets = [0, 0], sizes = [8, 384], strides = [1, 1]} : vector<8x512xf32> to vector<8x384xf32>
    %cst_22 = arith.constant 5.000000e-01 : f32
    %25 = vector.broadcast %cst_22 : f32 to vector<8x384xf32>
    %26 = arith.mulf %25, %24 : vector<8x384xf32>
    %27 = math.tanh %26 : vector<8x384xf32>
    %cst_23 = arith.constant 1.000000e+00 : f32
    %28 = vector.broadcast %cst_23 : f32 to vector<8x384xf32>
    %29 = arith.addf %27, %28 : vector<8x384xf32>
    %cst_24 = arith.constant 5.000000e-01 : f32
    %30 = vector.broadcast %cst_24 : f32 to vector<8x384xf32>
    %31 = arith.mulf %30, %29 : vector<8x384xf32>
    %32 = vector.extract_strided_slice %23 {offsets = [0, 384], sizes = [8, 128], strides = [1, 1]} : vector<8x512xf32> to vector<8x128xf32>
    %33 = math.tanh %32 : vector<8x128xf32>
    %34 = vector.extract_strided_slice %31 {offsets = [0, 0], sizes = [8, 128], strides = [1, 1]} : vector<8x384xf32> to vector<8x128xf32>
    %35 = vector.extract_strided_slice %31 {offsets = [0, 128], sizes = [8, 128], strides = [1, 1]} : vector<8x384xf32> to vector<8x128xf32>
    %36 = vector.extract_strided_slice %31 {offsets = [0, 256], sizes = [8, 128], strides = [1, 1]} : vector<8x384xf32> to vector<8x128xf32>
    %37 = arith.mulf %35, %16 : vector<8x128xf32>
    %38 = arith.mulf %34, %33 : vector<8x128xf32>
    %39 = arith.addf %37, %38 : vector<8x128xf32>
    %40 = math.tanh %39 : vector<8x128xf32>
    %41 = arith.mulf %36, %40 : vector<8x128xf32>
    %42 = arith.truncf %41 : vector<8x128xf32> to vector<8x128xbf16>
    %43 = arith.index_cast %c0_i32_16 : i32 to index
    %c0_25 = arith.constant 0 : index
    %c0_26 = arith.constant 0 : index
    %44 = vector.load %arg13[%43, %c0_25, %c0_26] : memref<8x8x128xbf16, #tpu.memory_space<vmem>>, vector<1x8x128xbf16>
    %45 = vector.shape_cast %44 : vector<1x8x128xbf16> to vector<8x128xbf16>
    %46 = vector.shape_cast %42 : vector<8x128xbf16> to vector<1x8x128xbf16>
    tpu.vector_store %arg13[%43, %c0_25, %c0_26], %46 {strides = array<i32>} : memref<8x8x128xbf16, #tpu.memory_space<vmem>>, vector<1x8x128xbf16>,
    %c1_i32 = arith.constant 1 : i32
    %c0_27 = arith.constant 0 : index
    %c0_28 = arith.constant 0 : index
    %47 = vector.load %arg4[%c0_27, %c0_28] : memref<128x512xbf16, #tpu.memory_space<vmem>>, vector<128x512xbf16>
    %cst_29 = arith.constant dense<0.000000e+00> : vector<8x512xf32>
    %48 = tpu.matmul %42, %47, %cst_29 {dimension_numbers = #tpu.dot_dimension_numbers<[1], [0], [0], [1], [0, 0, 1, 1], [], []>} : vector<8x128xbf16>, vector<128x512xbf16>, vector<8x512xf32> -> vector<8x512xf32>
    %49 = arith.index_cast %c1_i32 : i32 to index
    %c0_30 = arith.constant 0 : index
    %c0_31 = arith.constant 0 : index
    %50 = vector.load %arg12[%49, %c0_30, %c0_31] : memref<8x8x512xbf16, #tpu.memory_space<vmem>>, vector<1x8x512xbf16>
    %51 = vector.shape_cast %50 : vector<1x8x512xbf16> to vector<8x512xbf16>
    %52 = arith.extf %51 : vector<8x512xbf16> to vector<8x512xf32>
    %53 = arith.addf %48, %52 : vector<8x512xf32>
    %54 = vector.extract_strided_slice %53 {offsets = [0, 0], sizes = [8, 384], strides = [1, 1]} : vector<8x512xf32> to vector<8x384xf32>
    %cst_32 = arith.constant 5.000000e-01 : f32
    %55 = vector.broadcast %cst_32 : f32 to vector<8x384xf32>
    %56 = arith.mulf %55, %54 : vector<8x384xf32>
    %57 = math.tanh %56 : vector<8x384xf32>
    %cst_33 = arith.constant 1.000000e+00 : f32
    %58 = vector.broadcast %cst_33 : f32 to vector<8x384xf32>
    %59 = arith.addf %57, %58 : vector<8x384xf32>
    %cst_34 = arith.constant 5.000000e-01 : f32
    %60 = vector.broadcast %cst_34 : f32 to vector<8x384xf32>
    %61 = arith.mulf %60, %59 : vector<8x384xf32>
    %62 = vector.extract_strided_slice %53 {offsets = [0, 384], sizes = [8, 128], strides = [1, 1]} : vector<8x512xf32> to vector<8x128xf32>
    %63 = math.tanh %62 : vector<8x128xf32>
    %64 = vector.extract_strided_slice %61 {offsets = [0, 0], sizes = [8, 128], strides = [1, 1]} : vector<8x384xf32> to vector<8x128xf32>
    %65 = vector.extract_strided_slice %61 {offsets = [0, 128], sizes = [8, 128], strides = [1, 1]} : vector<8x384xf32> to vector<8x128xf32>
    %66 = vector.extract_strided_slice %61 {offsets = [0, 256], sizes = [8, 128], strides = [1, 1]} : vector<8x384xf32> to vector<8x128xf32>
    %67 = arith.mulf %65, %39 : vector<8x128xf32>
    %68 = arith.mulf %64, %63 : vector<8x128xf32>
    %69 = arith.addf %67, %68 : vector<8x128xf32>
    %70 = math.tanh %69 : vector<8x128xf32>
    %71 = arith.mulf %66, %70 : vector<8x128xf32>
    %72 = arith.truncf %71 : vector<8x128xf32> to vector<8x128xbf16>
    %73 = arith.index_cast %c1_i32 : i32 to index
    %c0_35 = arith.constant 0 : index
    %c0_36 = arith.constant 0 : index
    %74 = vector.load %arg13[%73, %c0_35, %c0_36] : memref<8x8x128xbf16, #tpu.memory_space<vmem>>, vector<1x8x128xbf16>
    %75 = vector.shape_cast %74 : vector<1x8x128xbf16> to vector<8x128xbf16>
    %76 = vector.shape_cast %72 : vector<8x128xbf16> to vector<1x8x128xbf16>
    tpu.vector_store %arg13[%73, %c0_35, %c0_36], %76 {strides = array<i32>} : memref<8x8x128xbf16, #tpu.memory_space<vmem>>, vector<1x8x128xbf16>,
    %c2_i32 = arith.constant 2 : i32
    %c0_37 = arith.constant 0 : index
    %c0_38 = arith.constant 0 : index
    %77 = vector.load %arg4[%c0_37, %c0_38] : memref<128x512xbf16, #tpu.memory_space<vmem>>, vector<128x512xbf16>
    %cst_39 = arith.constant dense<0.000000e+00> : vector<8x512xf32>
    %78 = tpu.matmul %72, %77, %cst_39 {dimension_numbers = #tpu.dot_dimension_numbers<[1], [0], [0], [1], [0, 0, 1, 1], [], []>} : vector<8x128xbf16>, vector<128x512xbf16>, vector<8x512xf32> -> vector<8x512xf32>
    %79 = arith.index_cast %c2_i32 : i32 to index
    %c0_40 = arith.constant 0 : index
    %c0_41 = arith.constant 0 : index
    %80 = vector.load %arg12[%79, %c0_40, %c0_41] : memref<8x8x512xbf16, #tpu.memory_space<vmem>>, vector<1x8x512xbf16>
    %81 = vector.shape_cast %80 : vector<1x8x512xbf16> to vector<8x512xbf16>
    %82 = arith.extf %81 : vector<8x512xbf16> to vector<8x512xf32>
    %83 = arith.addf %78, %82 : vector<8x512xf32>
    %84 = vector.extract_strided_slice %83 {offsets = [0, 0], sizes = [8, 384], strides = [1, 1]} : vector<8x512xf32> to vector<8x384xf32>
    %cst_42 = arith.constant 5.000000e-01 : f32
    %85 = vector.broadcast %cst_42 : f32 to vector<8x384xf32>
    %86 = arith.mulf %85, %84 : vector<8x384xf32>
    %87 = math.tanh %86 : vector<8x384xf32>
    %cst_43 = arith.constant 1.000000e+00 : f32
    %88 = vector.broadcast %cst_43 : f32 to vector<8x384xf32>
    %89 = arith.addf %87, %88 : vector<8x384xf32>
    %cst_44 = arith.constant 5.000000e-01 : f32
    %90 = vector.broadcast %cst_44 : f32 to vector<8x384xf32>
    %91 = arith.mulf %90, %89 : vector<8x384xf32>
    %92 = vector.extract_strided_slice %83 {offsets = [0, 384], sizes = [8, 128], strides = [1, 1]} : vector<8x512xf32> to vector<8x128xf32>
    %93 = math.tanh %92 : vector<8x128xf32>
    %94 = vector.extract_strided_slice %91 {offsets = [0, 0], sizes = [8, 128], strides = [1, 1]} : vector<8x384xf32> to vector<8x128xf32>
    %95 = vector.extract_strided_slice %91 {offsets = [0, 128], sizes = [8, 128], strides = [1, 1]} : vector<8x384xf32> to vector<8x128xf32>
    %96 = vector.extract_strided_slice %91 {offsets = [0, 256], sizes = [8, 128], strides = [1, 1]} : vector<8x384xf32> to vector<8x128xf32>
    %97 = arith.mulf %95, %69 : vector<8x128xf32>
    %98 = arith.mulf %94, %93 : vector<8x128xf32>
    %99 = arith.addf %97, %98 : vector<8x128xf32>
    %100 = math.tanh %99 : vector<8x128xf32>
    %101 = arith.mulf %96, %100 : vector<8x128xf32>
    %102 = arith.truncf %101 : vector<8x128xf32> to vector<8x128xbf16>
    %103 = arith.index_cast %c2_i32 : i32 to index
    %c0_45 = arith.constant 0 : index
    %c0_46 = arith.constant 0 : index
    %104 = vector.load %arg13[%103, %c0_45, %c0_46] : memref<8x8x128xbf16, #tpu.memory_space<vmem>>, vector<1x8x128xbf16>
    %105 = vector.shape_cast %104 : vector<1x8x128xbf16> to vector<8x128xbf16>
    %106 = vector.shape_cast %102 : vector<8x128xbf16> to vector<1x8x128xbf16>
    tpu.vector_store %arg13[%103, %c0_45, %c0_46], %106 {strides = array<i32>} : memref<8x8x128xbf16, #tpu.memory_space<vmem>>, vector<1x8x128xbf16>,
    %c3_i32 = arith.constant 3 : i32
    %c0_47 = arith.constant 0 : index
    %c0_48 = arith.constant 0 : index
    %107 = vector.load %arg4[%c0_47, %c0_48] : memref<128x512xbf16, #tpu.memory_space<vmem>>, vector<128x512xbf16>
    %cst_49 = arith.constant dense<0.000000e+00> : vector<8x512xf32>
    %108 = tpu.matmul %102, %107, %cst_49 {dimension_numbers = #tpu.dot_dimension_numbers<[1], [0], [0], [1], [0, 0, 1, 1], [], []>} : vector<8x128xbf16>, vector<128x512xbf16>, vector<8x512xf32> -> vector<8x512xf32>
    %109 = arith.index_cast %c3_i32 : i32 to index
    %c0_50 = arith.constant 0 : index
    %c0_51 = arith.constant 0 : index
    %110 = vector.load %arg12[%109, %c0_50, %c0_51] : memref<8x8x512xbf16, #tpu.memory_space<vmem>>, vector<1x8x512xbf16>
    %111 = vector.shape_cast %110 : vector<1x8x512xbf16> to vector<8x512xbf16>
    %112 = arith.extf %111 : vector<8x512xbf16> to vector<8x512xf32>
    %113 = arith.addf %108, %112 : vector<8x512xf32>
    %114 = vector.extract_strided_slice %113 {offsets = [0, 0], sizes = [8, 384], strides = [1, 1]} : vector<8x512xf32> to vector<8x384xf32>
    %cst_52 = arith.constant 5.000000e-01 : f32
    %115 = vector.broadcast %cst_52 : f32 to vector<8x384xf32>
    %116 = arith.mulf %115, %114 : vector<8x384xf32>
    %117 = math.tanh %116 : vector<8x384xf32>
    %cst_53 = arith.constant 1.000000e+00 : f32
    %118 = vector.broadcast %cst_53 : f32 to vector<8x384xf32>
    %119 = arith.addf %117, %118 : vector<8x384xf32>
    %cst_54 = arith.constant 5.000000e-01 : f32
    %120 = vector.broadcast %cst_54 : f32 to vector<8x384xf32>
    %121 = arith.mulf %120, %119 : vector<8x384xf32>
    %122 = vector.extract_strided_slice %113 {offsets = [0, 384], sizes = [8, 128], strides = [1, 1]} : vector<8x512xf32> to vector<8x128xf32>
    %123 = math.tanh %122 : vector<8x128xf32>
    %124 = vector.extract_strided_slice %121 {offsets = [0, 0], sizes = [8, 128], strides = [1, 1]} : vector<8x384xf32> to vector<8x128xf32>
    %125 = vector.extract_strided_slice %121 {offsets = [0, 128], sizes = [8, 128], strides = [1, 1]} : vector<8x384xf32> to vector<8x128xf32>
    %126 = vector.extract_strided_slice %121 {offsets = [0, 256], sizes = [8, 128], strides = [1, 1]} : vector<8x384xf32> to vector<8x128xf32>
    %127 = arith.mulf %125, %99 : vector<8x128xf32>
    %128 = arith.mulf %124, %123 : vector<8x128xf32>
    %129 = arith.addf %127, %128 : vector<8x128xf32>
    %130 = math.tanh %129 : vector<8x128xf32>
    %131 = arith.mulf %126, %130 : vector<8x128xf32>
    %132 = arith.truncf %131 : vector<8x128xf32> to vector<8x128xbf16>
    %133 = arith.index_cast %c3_i32 : i32 to index
    %c0_55 = arith.constant 0 : index
    %c0_56 = arith.constant 0 : index
    %134 = vector.load %arg13[%133, %c0_55, %c0_56] : memref<8x8x128xbf16, #tpu.memory_space<vmem>>, vector<1x8x128xbf16>
    %135 = vector.shape_cast %134 : vector<1x8x128xbf16> to vector<8x128xbf16>
    %136 = vector.shape_cast %132 : vector<8x128xbf16> to vector<1x8x128xbf16>
    tpu.vector_store %arg13[%133, %c0_55, %c0_56], %136 {strides = array<i32>} : memref<8x8x128xbf16, #tpu.memory_space<vmem>>, vector<1x8x128xbf16>,
    %c4_i32 = arith.constant 4 : i32
    %c0_57 = arith.constant 0 : index
    %c0_58 = arith.constant 0 : index
    %137 = vector.load %arg4[%c0_57, %c0_58] : memref<128x512xbf16, #tpu.memory_space<vmem>>, vector<128x512xbf16>
    %cst_59 = arith.constant dense<0.000000e+00> : vector<8x512xf32>
    %138 = tpu.matmul %132, %137, %cst_59 {dimension_numbers = #tpu.dot_dimension_numbers<[1], [0], [0], [1], [0, 0, 1, 1], [], []>} : vector<8x128xbf16>, vector<128x512xbf16>, vector<8x512xf32> -> vector<8x512xf32>
    %139 = arith.index_cast %c4_i32 : i32 to index
    %c0_60 = arith.constant 0 : index
    %c0_61 = arith.constant 0 : index
    %140 = vector.load %arg12[%139, %c0_60, %c0_61] : memref<8x8x512xbf16, #tpu.memory_space<vmem>>, vector<1x8x512xbf16>
    %141 = vector.shape_cast %140 : vector<1x8x512xbf16> to vector<8x512xbf16>
    %142 = arith.extf %141 : vector<8x512xbf16> to vector<8x512xf32>
    %143 = arith.addf %138, %142 : vector<8x512xf32>
    %144 = vector.extract_strided_slice %143 {offsets = [0, 0], sizes = [8, 384], strides = [1, 1]} : vector<8x512xf32> to vector<8x384xf32>
    %cst_62 = arith.constant 5.000000e-01 : f32
    %145 = vector.broadcast %cst_62 : f32 to vector<8x384xf32>
    %146 = arith.mulf %145, %144 : vector<8x384xf32>
    %147 = math.tanh %146 : vector<8x384xf32>
    %cst_63 = arith.constant 1.000000e+00 : f32
    %148 = vector.broadcast %cst_63 : f32 to vector<8x384xf32>
    %149 = arith.addf %147, %148 : vector<8x384xf32>
    %cst_64 = arith.constant 5.000000e-01 : f32
    %150 = vector.broadcast %cst_64 : f32 to vector<8x384xf32>
    %151 = arith.mulf %150, %149 : vector<8x384xf32>
    %152 = vector.extract_strided_slice %143 {offsets = [0, 384], sizes = [8, 128], strides = [1, 1]} : vector<8x512xf32> to vector<8x128xf32>
    %153 = math.tanh %152 : vector<8x128xf32>
    %154 = vector.extract_strided_slice %151 {offsets = [0, 0], sizes = [8, 128], strides = [1, 1]} : vector<8x384xf32> to vector<8x128xf32>
    %155 = vector.extract_strided_slice %151 {offsets = [0, 128], sizes = [8, 128], strides = [1, 1]} : vector<8x384xf32> to vector<8x128xf32>
    %156 = vector.extract_strided_slice %151 {offsets = [0, 256], sizes = [8, 128], strides = [1, 1]} : vector<8x384xf32> to vector<8x128xf32>
    %157 = arith.mulf %155, %129 : vector<8x128xf32>
    %158 = arith.mulf %154, %153 : vector<8x128xf32>
    %159 = arith.addf %157, %158 : vector<8x128xf32>
    %160 = math.tanh %159 : vector<8x128xf32>
    %161 = arith.mulf %156, %160 : vector<8x128xf32>
    %162 = arith.truncf %161 : vector<8x128xf32> to vector<8x128xbf16>
    %163 = arith.index_cast %c4_i32 : i32 to index
    %c0_65 = arith.constant 0 : index
    %c0_66 = arith.constant 0 : index
    %164 = vector.load %arg13[%163, %c0_65, %c0_66] : memref<8x8x128xbf16, #tpu.memory_space<vmem>>, vector<1x8x128xbf16>
    %165 = vector.shape_cast %164 : vector<1x8x128xbf16> to vector<8x128xbf16>
    %166 = vector.shape_cast %162 : vector<8x128xbf16> to vector<1x8x128xbf16>
    tpu.vector_store %arg13[%163, %c0_65, %c0_66], %166 {strides = array<i32>} : memref<8x8x128xbf16, #tpu.memory_space<vmem>>, vector<1x8x128xbf16>,
    %c5_i32 = arith.constant 5 : i32
    %c0_67 = arith.constant 0 : index
    %c0_68 = arith.constant 0 : index
    %167 = vector.load %arg4[%c0_67, %c0_68] : memref<128x512xbf16, #tpu.memory_space<vmem>>, vector<128x512xbf16>
    %cst_69 = arith.constant dense<0.000000e+00> : vector<8x512xf32>
    %168 = tpu.matmul %162, %167, %cst_69 {dimension_numbers = #tpu.dot_dimension_numbers<[1], [0], [0], [1], [0, 0, 1, 1], [], []>} : vector<8x128xbf16>, vector<128x512xbf16>, vector<8x512xf32> -> vector<8x512xf32>
    %169 = arith.index_cast %c5_i32 : i32 to index
    %c0_70 = arith.constant 0 : index
    %c0_71 = arith.constant 0 : index
    %170 = vector.load %arg12[%169, %c0_70, %c0_71] : memref<8x8x512xbf16, #tpu.memory_space<vmem>>, vector<1x8x512xbf16>
    %171 = vector.shape_cast %170 : vector<1x8x512xbf16> to vector<8x512xbf16>
    %172 = arith.extf %171 : vector<8x512xbf16> to vector<8x512xf32>
    %173 = arith.addf %168, %172 : vector<8x512xf32>
    %174 = vector.extract_strided_slice %173 {offsets = [0, 0], sizes = [8, 384], strides = [1, 1]} : vector<8x512xf32> to vector<8x384xf32>
    %cst_72 = arith.constant 5.000000e-01 : f32
    %175 = vector.broadcast %cst_72 : f32 to vector<8x384xf32>
    %176 = arith.mulf %175, %174 : vector<8x384xf32>
    %177 = math.tanh %176 : vector<8x384xf32>
    %cst_73 = arith.constant 1.000000e+00 : f32
    %178 = vector.broadcast %cst_73 : f32 to vector<8x384xf32>
    %179 = arith.addf %177, %178 : vector<8x384xf32>
    %cst_74 = arith.constant 5.000000e-01 : f32
    %180 = vector.broadcast %cst_74 : f32 to vector<8x384xf32>
    %181 = arith.mulf %180, %179 : vector<8x384xf32>
    %182 = vector.extract_strided_slice %173 {offsets = [0, 384], sizes = [8, 128], strides = [1, 1]} : vector<8x512xf32> to vector<8x128xf32>
    %183 = math.tanh %182 : vector<8x128xf32>
    %184 = vector.extract_strided_slice %181 {offsets = [0, 0], sizes = [8, 128], strides = [1, 1]} : vector<8x384xf32> to vector<8x128xf32>
    %185 = vector.extract_strided_slice %181 {offsets = [0, 128], sizes = [8, 128], strides = [1, 1]} : vector<8x384xf32> to vector<8x128xf32>
    %186 = vector.extract_strided_slice %181 {offsets = [0, 256], sizes = [8, 128], strides = [1, 1]} : vector<8x384xf32> to vector<8x128xf32>
    %187 = arith.mulf %185, %159 : vector<8x128xf32>
    %188 = arith.mulf %184, %183 : vector<8x128xf32>
    %189 = arith.addf %187, %188 : vector<8x128xf32>
    %190 = math.tanh %189 : vector<8x128xf32>
    %191 = arith.mulf %186, %190 : vector<8x128xf32>
    %192 = arith.truncf %191 : vector<8x128xf32> to vector<8x128xbf16>
    %193 = arith.index_cast %c5_i32 : i32 to index
    %c0_75 = arith.constant 0 : index
    %c0_76 = arith.constant 0 : index
    %194 = vector.load %arg13[%193, %c0_75, %c0_76] : memref<8x8x128xbf16, #tpu.memory_space<vmem>>, vector<1x8x128xbf16>
    %195 = vector.shape_cast %194 : vector<1x8x128xbf16> to vector<8x128xbf16>
    %196 = vector.shape_cast %192 : vector<8x128xbf16> to vector<1x8x128xbf16>
    tpu.vector_store %arg13[%193, %c0_75, %c0_76], %196 {strides = array<i32>} : memref<8x8x128xbf16, #tpu.memory_space<vmem>>, vector<1x8x128xbf16>,
    %c6_i32 = arith.constant 6 : i32
    %c0_77 = arith.constant 0 : index
    %c0_78 = arith.constant 0 : index
    %197 = vector.load %arg4[%c0_77, %c0_78] : memref<128x512xbf16, #tpu.memory_space<vmem>>, vector<128x512xbf16>
    %cst_79 = arith.constant dense<0.000000e+00> : vector<8x512xf32>
    %198 = tpu.matmul %192, %197, %cst_79 {dimension_numbers = #tpu.dot_dimension_numbers<[1], [0], [0], [1], [0, 0, 1, 1], [], []>} : vector<8x128xbf16>, vector<128x512xbf16>, vector<8x512xf32> -> vector<8x512xf32>
    %199 = arith.index_cast %c6_i32 : i32 to index
    %c0_80 = arith.constant 0 : index
    %c0_81 = arith.constant 0 : index
    %200 = vector.load %arg12[%199, %c0_80, %c0_81] : memref<8x8x512xbf16, #tpu.memory_space<vmem>>, vector<1x8x512xbf16>
    %201 = vector.shape_cast %200 : vector<1x8x512xbf16> to vector<8x512xbf16>
    %202 = arith.extf %201 : vector<8x512xbf16> to vector<8x512xf32>
    %203 = arith.addf %198, %202 : vector<8x512xf32>
    %204 = vector.extract_strided_slice %203 {offsets = [0, 0], sizes = [8, 384], strides = [1, 1]} : vector<8x512xf32> to vector<8x384xf32>
    %cst_82 = arith.constant 5.000000e-01 : f32
    %205 = vector.broadcast %cst_82 : f32 to vector<8x384xf32>
    %206 = arith.mulf %205, %204 : vector<8x384xf32>
    %207 = math.tanh %206 : vector<8x384xf32>
    %cst_83 = arith.constant 1.000000e+00 : f32
    %208 = vector.broadcast %cst_83 : f32 to vector<8x384xf32>
    %209 = arith.addf %207, %208 : vector<8x384xf32>
    %cst_84 = arith.constant 5.000000e-01 : f32
    %210 = vector.broadcast %cst_84 : f32 to vector<8x384xf32>
    %211 = arith.mulf %210, %209 : vector<8x384xf32>
    %212 = vector.extract_strided_slice %203 {offsets = [0, 384], sizes = [8, 128], strides = [1, 1]} : vector<8x512xf32> to vector<8x128xf32>
    %213 = math.tanh %212 : vector<8x128xf32>
    %214 = vector.extract_strided_slice %211 {offsets = [0, 0], sizes = [8, 128], strides = [1, 1]} : vector<8x384xf32> to vector<8x128xf32>
    %215 = vector.extract_strided_slice %211 {offsets = [0, 128], sizes = [8, 128], strides = [1, 1]} : vector<8x384xf32> to vector<8x128xf32>
    %216 = vector.extract_strided_slice %211 {offsets = [0, 256], sizes = [8, 128], strides = [1, 1]} : vector<8x384xf32> to vector<8x128xf32>
    %217 = arith.mulf %215, %189 : vector<8x128xf32>
    %218 = arith.mulf %214, %213 : vector<8x128xf32>
    %219 = arith.addf %217, %218 : vector<8x128xf32>
    %220 = math.tanh %219 : vector<8x128xf32>
    %221 = arith.mulf %216, %220 : vector<8x128xf32>
    %222 = arith.truncf %221 : vector<8x128xf32> to vector<8x128xbf16>
    %223 = arith.index_cast %c6_i32 : i32 to index
    %c0_85 = arith.constant 0 : index
    %c0_86 = arith.constant 0 : index
    %224 = vector.load %arg13[%223, %c0_85, %c0_86] : memref<8x8x128xbf16, #tpu.memory_space<vmem>>, vector<1x8x128xbf16>
    %225 = vector.shape_cast %224 : vector<1x8x128xbf16> to vector<8x128xbf16>
    %226 = vector.shape_cast %222 : vector<8x128xbf16> to vector<1x8x128xbf16>
    tpu.vector_store %arg13[%223, %c0_85, %c0_86], %226 {strides = array<i32>} : memref<8x8x128xbf16, #tpu.memory_space<vmem>>, vector<1x8x128xbf16>,
    %c7_i32 = arith.constant 7 : i32
    %c0_87 = arith.constant 0 : index
    %c0_88 = arith.constant 0 : index
    %227 = vector.load %arg4[%c0_87, %c0_88] : memref<128x512xbf16, #tpu.memory_space<vmem>>, vector<128x512xbf16>
    %cst_89 = arith.constant dense<0.000000e+00> : vector<8x512xf32>
    %228 = tpu.matmul %222, %227, %cst_89 {dimension_numbers = #tpu.dot_dimension_numbers<[1], [0], [0], [1], [0, 0, 1, 1], [], []>} : vector<8x128xbf16>, vector<128x512xbf16>, vector<8x512xf32> -> vector<8x512xf32>
    %229 = arith.index_cast %c7_i32 : i32 to index
    %c0_90 = arith.constant 0 : index
    %c0_91 = arith.constant 0 : index
    %230 = vector.load %arg12[%229, %c0_90, %c0_91] : memref<8x8x512xbf16, #tpu.memory_space<vmem>>, vector<1x8x512xbf16>
    %231 = vector.shape_cast %230 : vector<1x8x512xbf16> to vector<8x512xbf16>
    %232 = arith.extf %231 : vector<8x512xbf16> to vector<8x512xf32>
    %233 = arith.addf %228, %232 : vector<8x512xf32>
    %234 = vector.extract_strided_slice %233 {offsets = [0, 0], sizes = [8, 384], strides = [1, 1]} : vector<8x512xf32> to vector<8x384xf32>
    %cst_92 = arith.constant 5.000000e-01 : f32
    %235 = vector.broadcast %cst_92 : f32 to vector<8x384xf32>
    %236 = arith.mulf %235, %234 : vector<8x384xf32>
    %237 = math.tanh %236 : vector<8x384xf32>
    %cst_93 = arith.constant 1.000000e+00 : f32
    %238 = vector.broadcast %cst_93 : f32 to vector<8x384xf32>
    %239 = arith.addf %237, %238 : vector<8x384xf32>
    %cst_94 = arith.constant 5.000000e-01 : f32
    %240 = vector.broadcast %cst_94 : f32 to vector<8x384xf32>
    %241 = arith.mulf %240, %239 : vector<8x384xf32>
    %242 = vector.extract_strided_slice %233 {offsets = [0, 384], sizes = [8, 128], strides = [1, 1]} : vector<8x512xf32> to vector<8x128xf32>
    %243 = math.tanh %242 : vector<8x128xf32>
    %244 = vector.extract_strided_slice %241 {offsets = [0, 0], sizes = [8, 128], strides = [1, 1]} : vector<8x384xf32> to vector<8x128xf32>
    %245 = vector.extract_strided_slice %241 {offsets = [0, 128], sizes = [8, 128], strides = [1, 1]} : vector<8x384xf32> to vector<8x128xf32>
    %246 = vector.extract_strided_slice %241 {offsets = [0, 256], sizes = [8, 128], strides = [1, 1]} : vector<8x384xf32> to vector<8x128xf32>
    %247 = arith.mulf %245, %219 : vector<8x128xf32>
    %248 = arith.mulf %244, %243 : vector<8x128xf32>
    %249 = arith.addf %247, %248 : vector<8x128xf32>
    %250 = math.tanh %249 : vector<8x128xf32>
    %251 = arith.mulf %246, %250 : vector<8x128xf32>
    %252 = arith.truncf %251 : vector<8x128xf32> to vector<8x128xbf16>
    %253 = arith.index_cast %c7_i32 : i32 to index
    %c0_95 = arith.constant 0 : index
    %c0_96 = arith.constant 0 : index
    %254 = vector.load %arg13[%253, %c0_95, %c0_96] : memref<8x8x128xbf16, #tpu.memory_space<vmem>>, vector<1x8x128xbf16>
    %255 = vector.shape_cast %254 : vector<1x8x128xbf16> to vector<8x128xbf16>
    %256 = vector.shape_cast %252 : vector<8x128xbf16> to vector<1x8x128xbf16>
    tpu.vector_store %arg13[%253, %c0_95, %c0_96], %256 {strides = array<i32>} : memref<8x8x128xbf16, #tpu.memory_space<vmem>>, vector<1x8x128xbf16>,
    %c8_i32 = arith.constant 8 : i32
    %c0_97 = arith.constant 0 : index
    %c0_98 = arith.constant 0 : index
    %c0_99 = arith.constant 0 : index
    %257 = vector.load %arg14[%c0_97, %c0_98, %c0_99] : memref<2x8x128xbf16, #tpu.memory_space<vmem>>, vector<1x8x128xbf16>
    %258 = vector.shape_cast %257 : vector<1x8x128xbf16> to vector<8x128xbf16>
    %259 = vector.shape_cast %252 : vector<8x128xbf16> to vector<1x8x128xbf16>
    tpu.vector_store %arg14[%c0_97, %c0_98, %c0_99], %259 {strides = array<i32>} : memref<2x8x128xbf16, #tpu.memory_space<vmem>>, vector<1x8x128xbf16>,
    %c0_100 = arith.constant 0 : index
    %c0_101 = arith.constant 0 : index
    %c0_102 = arith.constant 0 : index
    %260 = vector.load %arg15[%c0_100, %c0_101, %c0_102] : memref<2x8x128xf32, #tpu.memory_space<vmem>>, vector<1x8x128xf32>
    %261 = vector.shape_cast %260 : vector<1x8x128xf32> to vector<8x128xf32>
    %262 = vector.shape_cast %249 : vector<8x128xf32> to vector<1x8x128xf32>
    tpu.vector_store %arg15[%c0_100, %c0_101, %c0_102], %262 {strides = array<i32>} : memref<2x8x128xf32, #tpu.memory_space<vmem>>, vector<1x8x128xf32>,
    %c0_103 = arith.constant 0 : index
    %c0_104 = arith.constant 0 : index
    %c0_105 = arith.constant 0 : index
    %263 = vector.load %arg13[%c0_103, %c0_104, %c0_105] : memref<8x8x128xbf16, #tpu.memory_space<vmem>>, vector<8x8x128xbf16>
    %264 = vector.shape_cast %263 : vector<8x8x128xbf16> to vector<64x128xbf16>
    %c0_106 = arith.constant 0 : index
    %c0_107 = arith.constant 0 : index
    %265 = vector.load %arg6[%c0_106, %c0_107] : memref<128x512xbf16, #tpu.memory_space<vmem>>, vector<128x512xbf16>
    %cst_108 = arith.constant dense<0.000000e+00> : vector<64x512xf32>
    %266 = tpu.matmul %264, %265, %cst_108 {dimension_numbers = #tpu.dot_dimension_numbers<[1], [0], [0], [1], [0, 0, 1, 1], [], []>} : vector<64x128xbf16>, vector<128x512xbf16>, vector<64x512xf32> -> vector<64x512xf32>
    %c0_109 = arith.constant 0 : index
    %c0_110 = arith.constant 0 : index
    %267 = vector.load %arg8[%c0_109, %c0_110] : memref<1x512xf32, #tpu.memory_space<vmem>>, vector<1x512xf32>
    %268 = vector.broadcast %267 : vector<1x512xf32> to vector<64x512xf32>
    %269 = arith.addf %266, %268 : vector<64x512xf32>
    %270 = arith.truncf %269 : vector<64x512xf32> to vector<64x512xbf16>
    %271 = vector.shape_cast %270 : vector<64x512xbf16> to vector<8x8x512xbf16>
    %c0_111 = arith.constant 0 : index
    %c0_112 = arith.constant 0 : index
    %c0_113 = arith.constant 0 : index
    %272 = vector.load %arg12[%c0_111, %c0_112, %c0_113] : memref<8x8x512xbf16, #tpu.memory_space<vmem>>, vector<8x8x512xbf16>
    tpu.vector_store %arg12[%c0_111, %c0_112, %c0_113], %271 {strides = array<i32>} : memref<8x8x512xbf16, #tpu.memory_space<vmem>>, vector<8x8x512xbf16>,
    %c1 = arith.constant 1 : index
    %c0_114 = arith.constant 0 : index
    %c0_115 = arith.constant 0 : index
    %273 = vector.load %arg14[%c1, %c0_114, %c0_115] : memref<2x8x128xbf16, #tpu.memory_space<vmem>>, vector<1x8x128xbf16>
    %274 = vector.shape_cast %273 : vector<1x8x128xbf16> to vector<8x128xbf16>
    %c1_116 = arith.constant 1 : index
    %c0_117 = arith.constant 0 : index
    %c0_118 = arith.constant 0 : index
    %275 = vector.load %arg15[%c1_116, %c0_117, %c0_118] : memref<2x8x128xf32, #tpu.memory_space<vmem>>, vector<1x8x128xf32>
    %276 = vector.shape_cast %275 : vector<1x8x128xf32> to vector<8x128xf32>
    %c0_i32_119 = arith.constant 0 : i32
    %c0_120 = arith.constant 0 : index
    %c0_121 = arith.constant 0 : index
    %277 = vector.load %arg7[%c0_120, %c0_121] : memref<128x512xbf16, #tpu.memory_space<vmem>>, vector<128x512xbf16>
    %cst_122 = arith.constant dense<0.000000e+00> : vector<8x512xf32>
    %278 = tpu.matmul %274, %277, %cst_122 {dimension_numbers = #tpu.dot_dimension_numbers<[1], [0], [0], [1], [0, 0, 1, 1], [], []>} : vector<8x128xbf16>, vector<128x512xbf16>, vector<8x512xf32> -> vector<8x512xf32>
    %279 = arith.index_cast %c0_i32_119 : i32 to index
    %c0_123 = arith.constant 0 : index
    %c0_124 = arith.constant 0 : index
    %280 = vector.load %arg12[%279, %c0_123, %c0_124] : memref<8x8x512xbf16, #tpu.memory_space<vmem>>, vector<1x8x512xbf16>
    %281 = vector.shape_cast %280 : vector<1x8x512xbf16> to vector<8x512xbf16>
    %282 = arith.extf %281 : vector<8x512xbf16> to vector<8x512xf32>
    %283 = arith.addf %278, %282 : vector<8x512xf32>
    %284 = vector.extract_strided_slice %283 {offsets = [0, 0], sizes = [8, 384], strides = [1, 1]} : vector<8x512xf32> to vector<8x384xf32>
    %cst_125 = arith.constant 5.000000e-01 : f32
    %285 = vector.broadcast %cst_125 : f32 to vector<8x384xf32>
    %286 = arith.mulf %285, %284 : vector<8x384xf32>
    %287 = math.tanh %286 : vector<8x384xf32>
    %cst_126 = arith.constant 1.000000e+00 : f32
    %288 = vector.broadcast %cst_126 : f32 to vector<8x384xf32>
    %289 = arith.addf %287, %288 : vector<8x384xf32>
    %cst_127 = arith.constant 5.000000e-01 : f32
    %290 = vector.broadcast %cst_127 : f32 to vector<8x384xf32>
    %291 = arith.mulf %290, %289 : vector<8x384xf32>
    %292 = vector.extract_strided_slice %283 {offsets = [0, 384], sizes = [8, 128], strides = [1, 1]} : vector<8x512xf32> to vector<8x128xf32>
    %293 = math.tanh %292 : vector<8x128xf32>
    %294 = vector.extract_strided_slice %291 {offsets = [0, 0], sizes = [8, 128], strides = [1, 1]} : vector<8x384xf32> to vector<8x128xf32>
    %295 = vector.extract_strided_slice %291 {offsets = [0, 128], sizes = [8, 128], strides = [1, 1]} : vector<8x384xf32> to vector<8x128xf32>
    %296 = vector.extract_strided_slice %291 {offsets = [0, 256], sizes = [8, 128], strides = [1, 1]} : vector<8x384xf32> to vector<8x128xf32>
    %297 = arith.mulf %295, %276 : vector<8x128xf32>
    %298 = arith.mulf %294, %293 : vector<8x128xf32>
    %299 = arith.addf %297, %298 : vector<8x128xf32>
    %300 = math.tanh %299 : vector<8x128xf32>
    %301 = arith.mulf %296, %300 : vector<8x128xf32>
    %302 = arith.truncf %301 : vector<8x128xf32> to vector<8x128xbf16>
    %c1_i32_128 = arith.constant 1 : i32
    %c0_129 = arith.constant 0 : index
    %c0_130 = arith.constant 0 : index
    %303 = vector.load %arg7[%c0_129, %c0_130] : memref<128x512xbf16, #tpu.memory_space<vmem>>, vector<128x512xbf16>
    %cst_131 = arith.constant dense<0.000000e+00> : vector<8x512xf32>
    %304 = tpu.matmul %302, %303, %cst_131 {dimension_numbers = #tpu.dot_dimension_numbers<[1], [0], [0], [1], [0, 0, 1, 1], [], []>} : vector<8x128xbf16>, vector<128x512xbf16>, vector<8x512xf32> -> vector<8x512xf32>
    %305 = arith.index_cast %c1_i32_128 : i32 to index
    %c0_132 = arith.constant 0 : index
    %c0_133 = arith.constant 0 : index
    %306 = vector.load %arg12[%305, %c0_132, %c0_133] : memref<8x8x512xbf16, #tpu.memory_space<vmem>>, vector<1x8x512xbf16>
    %307 = vector.shape_cast %306 : vector<1x8x512xbf16> to vector<8x512xbf16>
    %308 = arith.extf %307 : vector<8x512xbf16> to vector<8x512xf32>
    %309 = arith.addf %304, %308 : vector<8x512xf32>
    %310 = vector.extract_strided_slice %309 {offsets = [0, 0], sizes = [8, 384], strides = [1, 1]} : vector<8x512xf32> to vector<8x384xf32>
    %cst_134 = arith.constant 5.000000e-01 : f32
    %311 = vector.broadcast %cst_134 : f32 to vector<8x384xf32>
    %312 = arith.mulf %311, %310 : vector<8x384xf32>
    %313 = math.tanh %312 : vector<8x384xf32>
    %cst_135 = arith.constant 1.000000e+00 : f32
    %314 = vector.broadcast %cst_135 : f32 to vector<8x384xf32>
    %315 = arith.addf %313, %314 : vector<8x384xf32>
    %cst_136 = arith.constant 5.000000e-01 : f32
    %316 = vector.broadcast %cst_136 : f32 to vector<8x384xf32>
    %317 = arith.mulf %316, %315 : vector<8x384xf32>
    %318 = vector.extract_strided_slice %309 {offsets = [0, 384], sizes = [8, 128], strides = [1, 1]} : vector<8x512xf32> to vector<8x128xf32>
    %319 = math.tanh %318 : vector<8x128xf32>
    %320 = vector.extract_strided_slice %317 {offsets = [0, 0], sizes = [8, 128], strides = [1, 1]} : vector<8x384xf32> to vector<8x128xf32>
    %321 = vector.extract_strided_slice %317 {offsets = [0, 128], sizes = [8, 128], strides = [1, 1]} : vector<8x384xf32> to vector<8x128xf32>
    %322 = vector.extract_strided_slice %317 {offsets = [0, 256], sizes = [8, 128], strides = [1, 1]} : vector<8x384xf32> to vector<8x128xf32>
    %323 = arith.mulf %321, %299 : vector<8x128xf32>
    %324 = arith.mulf %320, %319 : vector<8x128xf32>
    %325 = arith.addf %323, %324 : vector<8x128xf32>
    %326 = math.tanh %325 : vector<8x128xf32>
    %327 = arith.mulf %322, %326 : vector<8x128xf32>
    %328 = arith.truncf %327 : vector<8x128xf32> to vector<8x128xbf16>
    %c2_i32_137 = arith.constant 2 : i32
    %c0_138 = arith.constant 0 : index
    %c0_139 = arith.constant 0 : index
    %329 = vector.load %arg7[%c0_138, %c0_139] : memref<128x512xbf16, #tpu.memory_space<vmem>>, vector<128x512xbf16>
    %cst_140 = arith.constant dense<0.000000e+00> : vector<8x512xf32>
    %330 = tpu.matmul %328, %329, %cst_140 {dimension_numbers = #tpu.dot_dimension_numbers<[1], [0], [0], [1], [0, 0, 1, 1], [], []>} : vector<8x128xbf16>, vector<128x512xbf16>, vector<8x512xf32> -> vector<8x512xf32>
    %331 = arith.index_cast %c2_i32_137 : i32 to index
    %c0_141 = arith.constant 0 : index
    %c0_142 = arith.constant 0 : index
    %332 = vector.load %arg12[%331, %c0_141, %c0_142] : memref<8x8x512xbf16, #tpu.memory_space<vmem>>, vector<1x8x512xbf16>
    %333 = vector.shape_cast %332 : vector<1x8x512xbf16> to vector<8x512xbf16>
    %334 = arith.extf %333 : vector<8x512xbf16> to vector<8x512xf32>
    %335 = arith.addf %330, %334 : vector<8x512xf32>
    %336 = vector.extract_strided_slice %335 {offsets = [0, 0], sizes = [8, 384], strides = [1, 1]} : vector<8x512xf32> to vector<8x384xf32>
    %cst_143 = arith.constant 5.000000e-01 : f32
    %337 = vector.broadcast %cst_143 : f32 to vector<8x384xf32>
    %338 = arith.mulf %337, %336 : vector<8x384xf32>
    %339 = math.tanh %338 : vector<8x384xf32>
    %cst_144 = arith.constant 1.000000e+00 : f32
    %340 = vector.broadcast %cst_144 : f32 to vector<8x384xf32>
    %341 = arith.addf %339, %340 : vector<8x384xf32>
    %cst_145 = arith.constant 5.000000e-01 : f32
    %342 = vector.broadcast %cst_145 : f32 to vector<8x384xf32>
    %343 = arith.mulf %342, %341 : vector<8x384xf32>
    %344 = vector.extract_strided_slice %335 {offsets = [0, 384], sizes = [8, 128], strides = [1, 1]} : vector<8x512xf32> to vector<8x128xf32>
    %345 = math.tanh %344 : vector<8x128xf32>
    %346 = vector.extract_strided_slice %343 {offsets = [0, 0], sizes = [8, 128], strides = [1, 1]} : vector<8x384xf32> to vector<8x128xf32>
    %347 = vector.extract_strided_slice %343 {offsets = [0, 128], sizes = [8, 128], strides = [1, 1]} : vector<8x384xf32> to vector<8x128xf32>
    %348 = vector.extract_strided_slice %343 {offsets = [0, 256], sizes = [8, 128], strides = [1, 1]} : vector<8x384xf32> to vector<8x128xf32>
    %349 = arith.mulf %347, %325 : vector<8x128xf32>
    %350 = arith.mulf %346, %345 : vector<8x128xf32>
    %351 = arith.addf %349, %350 : vector<8x128xf32>
    %352 = math.tanh %351 : vector<8x128xf32>
    %353 = arith.mulf %348, %352 : vector<8x128xf32>
    %354 = arith.truncf %353 : vector<8x128xf32> to vector<8x128xbf16>
    %c3_i32_146 = arith.constant 3 : i32
    %c0_147 = arith.constant 0 : index
    %c0_148 = arith.constant 0 : index
    %355 = vector.load %arg7[%c0_147, %c0_148] : memref<128x512xbf16, #tpu.memory_space<vmem>>, vector<128x512xbf16>
    %cst_149 = arith.constant dense<0.000000e+00> : vector<8x512xf32>
    %356 = tpu.matmul %354, %355, %cst_149 {dimension_numbers = #tpu.dot_dimension_numbers<[1], [0], [0], [1], [0, 0, 1, 1], [], []>} : vector<8x128xbf16>, vector<128x512xbf16>, vector<8x512xf32> -> vector<8x512xf32>
    %357 = arith.index_cast %c3_i32_146 : i32 to index
    %c0_150 = arith.constant 0 : index
    %c0_151 = arith.constant 0 : index
    %358 = vector.load %arg12[%357, %c0_150, %c0_151] : memref<8x8x512xbf16, #tpu.memory_space<vmem>>, vector<1x8x512xbf16>
    %359 = vector.shape_cast %358 : vector<1x8x512xbf16> to vector<8x512xbf16>
    %360 = arith.extf %359 : vector<8x512xbf16> to vector<8x512xf32>
    %361 = arith.addf %356, %360 : vector<8x512xf32>
    %362 = vector.extract_strided_slice %361 {offsets = [0, 0], sizes = [8, 384], strides = [1, 1]} : vector<8x512xf32> to vector<8x384xf32>
    %cst_152 = arith.constant 5.000000e-01 : f32
    %363 = vector.broadcast %cst_152 : f32 to vector<8x384xf32>
    %364 = arith.mulf %363, %362 : vector<8x384xf32>
    %365 = math.tanh %364 : vector<8x384xf32>
    %cst_153 = arith.constant 1.000000e+00 : f32
    %366 = vector.broadcast %cst_153 : f32 to vector<8x384xf32>
    %367 = arith.addf %365, %366 : vector<8x384xf32>
    %cst_154 = arith.constant 5.000000e-01 : f32
    %368 = vector.broadcast %cst_154 : f32 to vector<8x384xf32>
    %369 = arith.mulf %368, %367 : vector<8x384xf32>
    %370 = vector.extract_strided_slice %361 {offsets = [0, 384], sizes = [8, 128], strides = [1, 1]} : vector<8x512xf32> to vector<8x128xf32>
    %371 = math.tanh %370 : vector<8x128xf32>
    %372 = vector.extract_strided_slice %369 {offsets = [0, 0], sizes = [8, 128], strides = [1, 1]} : vector<8x384xf32> to vector<8x128xf32>
    %373 = vector.extract_strided_slice %369 {offsets = [0, 128], sizes = [8, 128], strides = [1, 1]} : vector<8x384xf32> to vector<8x128xf32>
    %374 = vector.extract_strided_slice %369 {offsets = [0, 256], sizes = [8, 128], strides = [1, 1]} : vector<8x384xf32> to vector<8x128xf32>
    %375 = arith.mulf %373, %351 : vector<8x128xf32>
    %376 = arith.mulf %372, %371 : vector<8x128xf32>
    %377 = arith.addf %375, %376 : vector<8x128xf32>
    %378 = math.tanh %377 : vector<8x128xf32>
    %379 = arith.mulf %374, %378 : vector<8x128xf32>
    %380 = arith.truncf %379 : vector<8x128xf32> to vector<8x128xbf16>
    %c4_i32_155 = arith.constant 4 : i32
    %c0_156 = arith.constant 0 : index
    %c0_157 = arith.constant 0 : index
    %381 = vector.load %arg7[%c0_156, %c0_157] : memref<128x512xbf16, #tpu.memory_space<vmem>>, vector<128x512xbf16>
    %cst_158 = arith.constant dense<0.000000e+00> : vector<8x512xf32>
    %382 = tpu.matmul %380, %381, %cst_158 {dimension_numbers = #tpu.dot_dimension_numbers<[1], [0], [0], [1], [0, 0, 1, 1], [], []>} : vector<8x128xbf16>, vector<128x512xbf16>, vector<8x512xf32> -> vector<8x512xf32>
    %383 = arith.index_cast %c4_i32_155 : i32 to index
    %c0_159 = arith.constant 0 : index
    %c0_160 = arith.constant 0 : index
    %384 = vector.load %arg12[%383, %c0_159, %c0_160] : memref<8x8x512xbf16, #tpu.memory_space<vmem>>, vector<1x8x512xbf16>
    %385 = vector.shape_cast %384 : vector<1x8x512xbf16> to vector<8x512xbf16>
    %386 = arith.extf %385 : vector<8x512xbf16> to vector<8x512xf32>
    %387 = arith.addf %382, %386 : vector<8x512xf32>
    %388 = vector.extract_strided_slice %387 {offsets = [0, 0], sizes = [8, 384], strides = [1, 1]} : vector<8x512xf32> to vector<8x384xf32>
    %cst_161 = arith.constant 5.000000e-01 : f32
    %389 = vector.broadcast %cst_161 : f32 to vector<8x384xf32>
    %390 = arith.mulf %389, %388 : vector<8x384xf32>
    %391 = math.tanh %390 : vector<8x384xf32>
    %cst_162 = arith.constant 1.000000e+00 : f32
    %392 = vector.broadcast %cst_162 : f32 to vector<8x384xf32>
    %393 = arith.addf %391, %392 : vector<8x384xf32>
    %cst_163 = arith.constant 5.000000e-01 : f32
    %394 = vector.broadcast %cst_163 : f32 to vector<8x384xf32>
    %395 = arith.mulf %394, %393 : vector<8x384xf32>
    %396 = vector.extract_strided_slice %387 {offsets = [0, 384], sizes = [8, 128], strides = [1, 1]} : vector<8x512xf32> to vector<8x128xf32>
    %397 = math.tanh %396 : vector<8x128xf32>
    %398 = vector.extract_strided_slice %395 {offsets = [0, 0], sizes = [8, 128], strides = [1, 1]} : vector<8x384xf32> to vector<8x128xf32>
    %399 = vector.extract_strided_slice %395 {offsets = [0, 128], sizes = [8, 128], strides = [1, 1]} : vector<8x384xf32> to vector<8x128xf32>
    %400 = vector.extract_strided_slice %395 {offsets = [0, 256], sizes = [8, 128], strides = [1, 1]} : vector<8x384xf32> to vector<8x128xf32>
    %401 = arith.mulf %399, %377 : vector<8x128xf32>
    %402 = arith.mulf %398, %397 : vector<8x128xf32>
    %403 = arith.addf %401, %402 : vector<8x128xf32>
    %404 = math.tanh %403 : vector<8x128xf32>
    %405 = arith.mulf %400, %404 : vector<8x128xf32>
    %406 = arith.truncf %405 : vector<8x128xf32> to vector<8x128xbf16>
    %c5_i32_164 = arith.constant 5 : i32
    %c0_165 = arith.constant 0 : index
    %c0_166 = arith.constant 0 : index
    %407 = vector.load %arg7[%c0_165, %c0_166] : memref<128x512xbf16, #tpu.memory_space<vmem>>, vector<128x512xbf16>
    %cst_167 = arith.constant dense<0.000000e+00> : vector<8x512xf32>
    %408 = tpu.matmul %406, %407, %cst_167 {dimension_numbers = #tpu.dot_dimension_numbers<[1], [0], [0], [1], [0, 0, 1, 1], [], []>} : vector<8x128xbf16>, vector<128x512xbf16>, vector<8x512xf32> -> vector<8x512xf32>
    %409 = arith.index_cast %c5_i32_164 : i32 to index
    %c0_168 = arith.constant 0 : index
    %c0_169 = arith.constant 0 : index
    %410 = vector.load %arg12[%409, %c0_168, %c0_169] : memref<8x8x512xbf16, #tpu.memory_space<vmem>>, vector<1x8x512xbf16>
    %411 = vector.shape_cast %410 : vector<1x8x512xbf16> to vector<8x512xbf16>
    %412 = arith.extf %411 : vector<8x512xbf16> to vector<8x512xf32>
    %413 = arith.addf %408, %412 : vector<8x512xf32>
    %414 = vector.extract_strided_slice %413 {offsets = [0, 0], sizes = [8, 384], strides = [1, 1]} : vector<8x512xf32> to vector<8x384xf32>
    %cst_170 = arith.constant 5.000000e-01 : f32
    %415 = vector.broadcast %cst_170 : f32 to vector<8x384xf32>
    %416 = arith.mulf %415, %414 : vector<8x384xf32>
    %417 = math.tanh %416 : vector<8x384xf32>
    %cst_171 = arith.constant 1.000000e+00 : f32
    %418 = vector.broadcast %cst_171 : f32 to vector<8x384xf32>
    %419 = arith.addf %417, %418 : vector<8x384xf32>
    %cst_172 = arith.constant 5.000000e-01 : f32
    %420 = vector.broadcast %cst_172 : f32 to vector<8x384xf32>
    %421 = arith.mulf %420, %419 : vector<8x384xf32>
    %422 = vector.extract_strided_slice %413 {offsets = [0, 384], sizes = [8, 128], strides = [1, 1]} : vector<8x512xf32> to vector<8x128xf32>
    %423 = math.tanh %422 : vector<8x128xf32>
    %424 = vector.extract_strided_slice %421 {offsets = [0, 0], sizes = [8, 128], strides = [1, 1]} : vector<8x384xf32> to vector<8x128xf32>
    %425 = vector.extract_strided_slice %421 {offsets = [0, 128], sizes = [8, 128], strides = [1, 1]} : vector<8x384xf32> to vector<8x128xf32>
    %426 = vector.extract_strided_slice %421 {offsets = [0, 256], sizes = [8, 128], strides = [1, 1]} : vector<8x384xf32> to vector<8x128xf32>
    %427 = arith.mulf %425, %403 : vector<8x128xf32>
    %428 = arith.mulf %424, %423 : vector<8x128xf32>
    %429 = arith.addf %427, %428 : vector<8x128xf32>
    %430 = math.tanh %429 : vector<8x128xf32>
    %431 = arith.mulf %426, %430 : vector<8x128xf32>
    %432 = arith.truncf %431 : vector<8x128xf32> to vector<8x128xbf16>
    %c6_i32_173 = arith.constant 6 : i32
    %c0_174 = arith.constant 0 : index
    %c0_175 = arith.constant 0 : index
    %433 = vector.load %arg7[%c0_174, %c0_175] : memref<128x512xbf16, #tpu.memory_space<vmem>>, vector<128x512xbf16>
    %cst_176 = arith.constant dense<0.000000e+00> : vector<8x512xf32>
    %434 = tpu.matmul %432, %433, %cst_176 {dimension_numbers = #tpu.dot_dimension_numbers<[1], [0], [0], [1], [0, 0, 1, 1], [], []>} : vector<8x128xbf16>, vector<128x512xbf16>, vector<8x512xf32> -> vector<8x512xf32>
    %435 = arith.index_cast %c6_i32_173 : i32 to index
    %c0_177 = arith.constant 0 : index
    %c0_178 = arith.constant 0 : index
    %436 = vector.load %arg12[%435, %c0_177, %c0_178] : memref<8x8x512xbf16, #tpu.memory_space<vmem>>, vector<1x8x512xbf16>
    %437 = vector.shape_cast %436 : vector<1x8x512xbf16> to vector<8x512xbf16>
    %438 = arith.extf %437 : vector<8x512xbf16> to vector<8x512xf32>
    %439 = arith.addf %434, %438 : vector<8x512xf32>
    %440 = vector.extract_strided_slice %439 {offsets = [0, 0], sizes = [8, 384], strides = [1, 1]} : vector<8x512xf32> to vector<8x384xf32>
    %cst_179 = arith.constant 5.000000e-01 : f32
    %441 = vector.broadcast %cst_179 : f32 to vector<8x384xf32>
    %442 = arith.mulf %441, %440 : vector<8x384xf32>
    %443 = math.tanh %442 : vector<8x384xf32>
    %cst_180 = arith.constant 1.000000e+00 : f32
    %444 = vector.broadcast %cst_180 : f32 to vector<8x384xf32>
    %445 = arith.addf %443, %444 : vector<8x384xf32>
    %cst_181 = arith.constant 5.000000e-01 : f32
    %446 = vector.broadcast %cst_181 : f32 to vector<8x384xf32>
    %447 = arith.mulf %446, %445 : vector<8x384xf32>
    %448 = vector.extract_strided_slice %439 {offsets = [0, 384], sizes = [8, 128], strides = [1, 1]} : vector<8x512xf32> to vector<8x128xf32>
    %449 = math.tanh %448 : vector<8x128xf32>
    %450 = vector.extract_strided_slice %447 {offsets = [0, 0], sizes = [8, 128], strides = [1, 1]} : vector<8x384xf32> to vector<8x128xf32>
    %451 = vector.extract_strided_slice %447 {offsets = [0, 128], sizes = [8, 128], strides = [1, 1]} : vector<8x384xf32> to vector<8x128xf32>
    %452 = vector.extract_strided_slice %447 {offsets = [0, 256], sizes = [8, 128], strides = [1, 1]} : vector<8x384xf32> to vector<8x128xf32>
    %453 = arith.mulf %451, %429 : vector<8x128xf32>
    %454 = arith.mulf %450, %449 : vector<8x128xf32>
    %455 = arith.addf %453, %454 : vector<8x128xf32>
    %456 = math.tanh %455 : vector<8x128xf32>
    %457 = arith.mulf %452, %456 : vector<8x128xf32>
    %458 = arith.truncf %457 : vector<8x128xf32> to vector<8x128xbf16>
    %c7_i32_182 = arith.constant 7 : i32
    %c0_183 = arith.constant 0 : index
    %c0_184 = arith.constant 0 : index
    %459 = vector.load %arg7[%c0_183, %c0_184] : memref<128x512xbf16, #tpu.memory_space<vmem>>, vector<128x512xbf16>
    %cst_185 = arith.constant dense<0.000000e+00> : vector<8x512xf32>
    %460 = tpu.matmul %458, %459, %cst_185 {dimension_numbers = #tpu.dot_dimension_numbers<[1], [0], [0], [1], [0, 0, 1, 1], [], []>} : vector<8x128xbf16>, vector<128x512xbf16>, vector<8x512xf32> -> vector<8x512xf32>
    %461 = arith.index_cast %c7_i32_182 : i32 to index
    %c0_186 = arith.constant 0 : index
    %c0_187 = arith.constant 0 : index
    %462 = vector.load %arg12[%461, %c0_186, %c0_187] : memref<8x8x512xbf16, #tpu.memory_space<vmem>>, vector<1x8x512xbf16>
    %463 = vector.shape_cast %462 : vector<1x8x512xbf16> to vector<8x512xbf16>
    %464 = arith.extf %463 : vector<8x512xbf16> to vector<8x512xf32>
    %465 = arith.addf %460, %464 : vector<8x512xf32>
    %466 = vector.extract_strided_slice %465 {offsets = [0, 0], sizes = [8, 384], strides = [1, 1]} : vector<8x512xf32> to vector<8x384xf32>
    %cst_188 = arith.constant 5.000000e-01 : f32
    %467 = vector.broadcast %cst_188 : f32 to vector<8x384xf32>
    %468 = arith.mulf %467, %466 : vector<8x384xf32>
    %469 = math.tanh %468 : vector<8x384xf32>
    %cst_189 = arith.constant 1.000000e+00 : f32
    %470 = vector.broadcast %cst_189 : f32 to vector<8x384xf32>
    %471 = arith.addf %469, %470 : vector<8x384xf32>
    %cst_190 = arith.constant 5.000000e-01 : f32
    %472 = vector.broadcast %cst_190 : f32 to vector<8x384xf32>
    %473 = arith.mulf %472, %471 : vector<8x384xf32>
    %474 = vector.extract_strided_slice %465 {offsets = [0, 384], sizes = [8, 128], strides = [1, 1]} : vector<8x512xf32> to vector<8x128xf32>
    %475 = math.tanh %474 : vector<8x128xf32>
    %476 = vector.extract_strided_slice %473 {offsets = [0, 0], sizes = [8, 128], strides = [1, 1]} : vector<8x384xf32> to vector<8x128xf32>
    %477 = vector.extract_strided_slice %473 {offsets = [0, 128], sizes = [8, 128], strides = [1, 1]} : vector<8x384xf32> to vector<8x128xf32>
    %478 = vector.extract_strided_slice %473 {offsets = [0, 256], sizes = [8, 128], strides = [1, 1]} : vector<8x384xf32> to vector<8x128xf32>
    %479 = arith.mulf %477, %455 : vector<8x128xf32>
    %480 = arith.mulf %476, %475 : vector<8x128xf32>
    %481 = arith.addf %479, %480 : vector<8x128xf32>
    %482 = math.tanh %481 : vector<8x128xf32>
    %483 = arith.mulf %478, %482 : vector<8x128xf32>
    %484 = arith.truncf %483 : vector<8x128xf32> to vector<8x128xbf16>
    %c8_i32_191 = arith.constant 8 : i32
    %c1_192 = arith.constant 1 : index
    %c0_193 = arith.constant 0 : index
    %c0_194 = arith.constant 0 : index
    %485 = vector.load %arg14[%c1_192, %c0_193, %c0_194] : memref<2x8x128xbf16, #tpu.memory_space<vmem>>, vector<1x8x128xbf16>
    %486 = vector.shape_cast %485 : vector<1x8x128xbf16> to vector<8x128xbf16>
    %487 = vector.shape_cast %484 : vector<8x128xbf16> to vector<1x8x128xbf16>
    tpu.vector_store %arg14[%c1_192, %c0_193, %c0_194], %487 {strides = array<i32>} : memref<2x8x128xbf16, #tpu.memory_space<vmem>>, vector<1x8x128xbf16>,
    %c1_195 = arith.constant 1 : index
    %c0_196 = arith.constant 0 : index
    %c0_197 = arith.constant 0 : index
    %488 = vector.load %arg15[%c1_195, %c0_196, %c0_197] : memref<2x8x128xf32, #tpu.memory_space<vmem>>, vector<1x8x128xf32>
    %489 = vector.shape_cast %488 : vector<1x8x128xf32> to vector<8x128xf32>
    %490 = vector.shape_cast %481 : vector<8x128xf32> to vector<1x8x128xf32>
    tpu.vector_store %arg15[%c1_195, %c0_196, %c0_197], %490 {strides = array<i32>} : memref<2x8x128xf32, #tpu.memory_space<vmem>>, vector<1x8x128xf32>,
    %c0_i32_198 = arith.constant 0 : i32
    %491 = arith.cmpi eq, %arg1, %c0_i32_198 : i32
    %492 = arith.extui %491 : i1 to i32
    %c0_i32_199 = arith.constant 0 : i32
    %493 = arith.cmpi ne, %492, %c0_i32_199 : i32
    scf.if %493 {
      %c0_200 = arith.constant 0 : index
      %c0_201 = arith.constant 0 : index
      %494 = vector.load %arg9[%c0_200, %c0_201] : memref<128x128xbf16, #tpu.memory_space<vmem>>, vector<128x128xbf16>
      %cst_202 = arith.constant dense<0.000000e+00> : vector<8x128xf32>
      %495 = tpu.matmul %484, %494, %cst_202 {dimension_numbers = #tpu.dot_dimension_numbers<[1], [0], [0], [1], [0, 0, 1, 1], [], []>} : vector<8x128xbf16>, vector<128x128xbf16>, vector<8x128xf32> -> vector<8x128xf32>
      %c0_203 = arith.constant 0 : index
      %c0_204 = arith.constant 0 : index
      %496 = vector.load %arg10[%c0_203, %c0_204] : memref<1x128xf32, #tpu.memory_space<vmem>>, vector<1x128xf32>
      %497 = vector.broadcast %496 : vector<1x128xf32> to vector<8x128xf32>
      %498 = arith.addf %495, %497 : vector<8x128xf32>
      %c0_205 = arith.constant 0 : index
      %c0_206 = arith.constant 0 : index
      %499 = vector.load %arg11[%c0_205, %c0_206] : memref<8x128xf32, #tpu.memory_space<vmem>>, vector<8x128xf32>
      tpu.vector_store %arg11[%c0_205, %c0_206], %498 {strides = array<i32>} : memref<8x128xf32, #tpu.memory_space<vmem>>, vector<8x128xf32>,
    } else {
    }
    return
  }
  func.func @transform_0(%arg0: i32, %arg1: i32) -> (i32, i32, i32) {
    %c0_i32 = arith.constant 0 : i32
    %c0_i32_0 = arith.constant 0 : i32
    return %arg1, %arg0, %c0_i32 : i32, i32, i32
  }
  func.func @transform_1(%arg0: i32, %arg1: i32) -> (i32, i32) {
    %c0_i32 = arith.constant 0 : i32
    %c0_i32_0 = arith.constant 0 : i32
    %c0_i32_1 = arith.constant 0 : i32
    return %c0_i32, %c0_i32_0 : i32, i32
  }
  func.func @transform_2(%arg0: i32, %arg1: i32) -> (i32, i32) {
    %c0_i32 = arith.constant 0 : i32
    %c0_i32_0 = arith.constant 0 : i32
    %c0_i32_1 = arith.constant 0 : i32
    return %c0_i32, %c0_i32_0 : i32, i32
  }
  func.func @transform_3(%arg0: i32, %arg1: i32) -> (i32, i32) {
    %c0_i32 = arith.constant 0 : i32
    %c0_i32_0 = arith.constant 0 : i32
    %c0_i32_1 = arith.constant 0 : i32
    return %c0_i32, %c0_i32_0 : i32, i32
  }
  func.func @transform_4(%arg0: i32, %arg1: i32) -> (i32, i32) {
    %c0_i32 = arith.constant 0 : i32
    %c0_i32_0 = arith.constant 0 : i32
    %c0_i32_1 = arith.constant 0 : i32
    return %c0_i32, %c0_i32_0 : i32, i32
  }
  func.func @transform_5(%arg0: i32, %arg1: i32) -> (i32, i32) {
    %c0_i32 = arith.constant 0 : i32
    %c0_i32_0 = arith.constant 0 : i32
    %c0_i32_1 = arith.constant 0 : i32
    return %c0_i32, %c0_i32_0 : i32, i32
  }
  func.func @transform_6(%arg0: i32, %arg1: i32) -> (i32, i32) {
    %c0_i32 = arith.constant 0 : i32
    %c0_i32_0 = arith.constant 0 : i32
    %c0_i32_1 = arith.constant 0 : i32
    return %c0_i32, %c0_i32_0 : i32, i32
  }
  func.func @transform_7(%arg0: i32, %arg1: i32) -> (i32, i32) {
    %c0_i32 = arith.constant 0 : i32
    %c0_i32_0 = arith.constant 0 : i32
    %c0_i32_1 = arith.constant 0 : i32
    return %c0_i32, %c0_i32_0 : i32, i32
  }
  func.func @transform_8(%arg0: i32, %arg1: i32) -> (i32, i32) {
    %c0_i32 = arith.constant 0 : i32
    %c0_i32_0 = arith.constant 0 : i32
    %c0_i32_1 = arith.constant 0 : i32
    return %c0_i32, %c0_i32_0 : i32, i32
  }
  func.func @transform_9(%arg0: i32, %arg1: i32) -> (i32, i32) {
    %c0_i32 = arith.constant 0 : i32
    %c0_i32_0 = arith.constant 0 : i32
    return %arg0, %c0_i32 : i32, i32
  }
}

</mosaic_0001>

<bundles_post_ra>
// kernel: rnn_forward.1
= control target key start
LH: loop header
LB: loop body
LE: loop exit
PB: predicated region body
PF: predicated region fallthrough
CT: control target
= control target key end

     0   :  { %14 = vsyncpa [#allocation7], 0  ;;  %s6731_s0 = inlined_call_operand.vmem [shape: bf16[8,8,8], index: 0, kind: input, shape index: {}]   ;;  %s6732_s1 = inlined_call_operand.hbm [shape: bf16[8,512], index: 1, kind: input, shape index: {}]   ;;  %s6733_s2 = inlined_call_operand.hbm [shape: bf16[128,512], index: 2, kind: input, shape index: {}]   ;;  %s6734_s3 = inlined_call_operand.vmem [shape: f32[1,512], index: 3, kind: input, shape index: {}]   ;;  %s6735_s4 = inlined_call_operand.hbm [shape: bf16[128,512], index: 4, kind: input, shape index: {}]   ;;  %s6736_s5 = inlined_call_operand.hbm [shape: bf16[128,512], index: 5, kind: input, shape index: {}]   ;;  %s6737_s6 = inlined_call_operand.vmem [shape: f32[1,512], index: 6, kind: input, shape index: {}]   ;;  %s6738_s7 = inlined_call_operand.vmem [shape: bf16[128,128], index: 7, kind: input, shape index: {}]   ;;  %s6739_s8 = inlined_call_operand.vmem [shape: f32[1,128], index: 8, kind: input, shape index: {}]   ;;  %s6740_s9 = inlined_call_operand.vmem [shape: f32[8,128], index: 9, kind: output, shape index: {}]  }
   0x1   :  { %15 = vsyncpa [#allocation9], 0 }
   0x2   :  { %16 = vsyncpa [#allocation12], 0  ;;  %s5493_s30 = smov [#allocation8]  }
   0x3   :  { %s34_s10 = sshll.u32 %s5493_s30, 4  ;;  %s35_s10 = int_to_ptr.vmem [resolvable:$true] %s34_s10 }
   0x4   :  { %s5415_s11 = scalar_lea.vmem %s35_s10, 4096  ;;  %p5420_p1 = scmp.lt.s32.totalorder %s35_s10, %s35_s10 }
   0x5   :  { %p5416_p0 = scmp.ne.s32.totalorder %s35_s10, %s5415_s11  ;;  %p5421_p2 = scmp.lt.s32.totalorder %s5415_s11, %s5415_s11 }
   0x7   :  { %p5422_p3 = por %p5421_p2, %p5420_p1 }
   0x9   :  { %p5423_p4 = pnand %p5422_p3, %p5416_p0 }
   0xb   :  { %5426 = shalt.err (!%p5423_p4)
}
   0xc   :  { %s5494_s12 = smov 256   ;;  %s5495_s13 = smov 16  }
   0xd   :  { %40 = dma.hbm_to_vmem [thread:$0]  %s6733_s2, 4096, %s35_s10, [#allocation9], %s5494_s12, %s5494_s12, %s5495_s13  }
   0xe   :  { %s5496_s16 = smov [#allocation6]   ;;  %s5497_s18 = smov [#allocation10]  }
   0xf   :  { %s25_s17 = sshll.u32 %s5496_s16, 4  ;;  %s48_s19 = sshll.u32 %s5497_s18, 4  ;;  %s26_s17 = int_to_ptr.vmem [resolvable:$true] %s25_s17  ;;  %s49_s19 = int_to_ptr.vmem [resolvable:$true] %s48_s19 }
  0x10   :  { %s5435_s20 = scalar_lea.vmem %s26_s17, 256  ;;  %p5440_p6 = scmp.lt.s32.totalorder %s26_s17, %s26_s17 }
  0x11   :  { %p5436_p5 = scmp.ne.s32.totalorder %s26_s17, %s5435_s20  ;;  %p5441_p7 = scmp.lt.s32.totalorder %s5435_s20, %s5435_s20 }
  0x13   :  { %p5442_p8 = por %p5441_p7, %p5440_p6 }
  0x15   :  { %p5443_p9 = pnand %p5442_p8, %p5436_p5 }
  0x17   :  { %5446 = shalt.err (!%p5443_p9)
}
  0x18   :  { %28 = dma.hbm_to_vmem [thread:$0]  %s6732_s1, 256, %s26_s17, [#allocation7]  }
  0x19   :  { %s5455_s23 = scalar_lea.vmem %s49_s19, 4096  ;;  %p5460_p11 = scmp.lt.s32.totalorder %s49_s19, %s49_s19 }
  0x1a   :  { %p5456_p10 = scmp.ne.s32.totalorder %s49_s19, %s5455_s23  ;;  %p5461_p12 = scmp.lt.s32.totalorder %s5455_s23, %s5455_s23 }
  0x1c   :  { %p5462_p13 = por %p5461_p12, %p5460_p11 }
  0x1e   :  { %p5463_p0 = pnand %p5462_p13, %p5456_p10 }
  0x20   :  { %5466 = shalt.err (!%p5463_p0)
}
  0x21   :  { %54 = dma.hbm_to_vmem [thread:$0]  %s6735_s4, 4096, %s49_s19, [#allocation9], %s5494_s12, %s5494_s12, %s5495_s13  }
  0x22   :  { %s5498_s25 = smov [#allocation11]  }
  0x23   :  { %s60_s26 = sshll.u32 %s5498_s25, 4  ;;  %s61_s26 = int_to_ptr.vmem [resolvable:$true] %s60_s26 }
  0x24   :  { %s5475_s27 = scalar_lea.vmem %s61_s26, 4096  ;;  %p5480_p2 = scmp.lt.s32.totalorder %s61_s26, %s61_s26 }
  0x25   :  { %p5476_p1 = scmp.ne.s32.totalorder %s61_s26, %s5475_s27  ;;  %p5481_p3 = scmp.lt.s32.totalorder %s5475_s27, %s5475_s27 }
  0x27   :  { %p5482_p4 = por %p5481_p3, %p5480_p2 }
  0x29   :  { %p5483_p5 = pnand %p5482_p4, %p5476_p1 }
  0x2b   :  { %5486 = shalt.err (!%p5483_p5)
}
  0x2c   :  { %66 = dma.hbm_to_vmem [thread:$0]  %s6736_s5, 4096, %s61_s26, [#allocation12], %s5494_s12, %s5494_s12, %s5495_s13  }
  0x2d   :  { %5487 = dma.done.wait [#allocation7], 256  }
  0x2e   :  { %5488 = vsyncadd [#allocation7], 4294967040 }
  0x2f   :  { %5489 = dma.done.wait [#allocation9], 8192  }
  0x30   :  { %5490 = vsyncadd [#allocation9], 4294959104 }
  0x31   :  { %5491 = dma.done.wait [#allocation12], 4096  }
  0x32   :  { %5492 = vsyncadd [#allocation12], 4294963200  ;;  %v6745_v0 = vmov 0   ;;  %v102_v1 = vld [vmem:[#allocation6] sm:$0xff]  ;;  %vm169_vm0 = vcmask 1043456   ;;  %v103_v2 = vld [vmem:[#allocation6 + $0x8] sm:$0xff]  ;;  %v106_v46 = vlaneseq }
  0x33   :  { %214 = vmatprep.mubr.bf16.mxu0 %v6745_v0  ;;  %90 = vst [vmem:[#allocation4] sm:$0xf] %v6745_v0  ;;  %91 = vst [vmem:[#allocation4 + $0x4] sm:$0xf] %v6745_v0  ;;  %287 = vmatprep.mubr.bf16.mxu1 %v6745_v0  ;;  %v4543_v3 = vcombine.high %v102_v1, %v102_v1  ;;  %v4545_v4 = vcombine.high %v103_v2, %v103_v2  ;;  %v4995_v7 = vld [vmem:[%s6731_s0] sm:$0xff]   ;;  %vm156_vm1 = vcmask 64512  }
  0x34   :  { %v4542_v5 = vcombine.low %v102_v1, %v102_v1  ;;  %v4544_v6 = vcombine.low %v103_v2, %v103_v2  ;;  %v5580_v8 = vld [vmem:[#allocation8 + $0xe0] ss:$16 sps:$4 sm:$0xff]   ;;  %v5582_v9 = vld [vmem:[#allocation8 + $0xe4] ss:$16 sps:$4 sm:$0xff]   ;;  %v5584_v12 = vld [vmem:[#allocation8 + $0xe8] ss:$16 sps:$4 sm:$0xff]  }
  0x35   :  { %4546 = vmatprep.subr.msk.bf16.mxu0 %vm169_vm0, %v4543_v3  ;;  %4551 = vmatprep.subr.msk.bf16.mxu1 %vm169_vm0, %v4545_v4  ;;  %v5586_v13 = vld [vmem:[#allocation8 + $0xec] ss:$16 sps:$4 sm:$0xff]   ;;  %v5589_v14 = vld [vmem:[#allocation8 + $0xc4] ss:$16 sps:$4 sm:$0xff]   ;;  %v5596_v16 = vld [vmem:[#allocation8 + $0xc0] ss:$16 sps:$4 sm:$0xff]  }
  0x36   :  { %v171_v10 = vsel %vm169_vm0, %v4542_v5, 0  ;;  %v177_v11 = vsel %vm169_vm0, %v4544_v6, 0  ;;  %v5592_v15 = vld [vmem:[#allocation8 + $0xcc] ss:$16 sps:$4 sm:$0xff]   ;;  %v5600_v17 = vld [vmem:[#allocation8 + $0xc8] ss:$16 sps:$4 sm:$0xff]  }
  0x37   :  { %197 = vmatpush1.bf16.msra.mxu0 %v171_v10  ;;  %270 = vmatpush1.bf16.msra.mxu1 %v177_v11  ;;  %v5604_v18 = vld [vmem:[#allocation8 + $0xa4] ss:$16 sps:$4 sm:$0xff]   ;;  %v5611_v20 = vld [vmem:[#allocation8 + $0xac] ss:$16 sps:$4 sm:$0xff]   ;;  %v5613_v21 = vld [vmem:[#allocation8 + $0xa0] ss:$16 sps:$4 sm:$0xff]  }
  0x38   :  { %640 = vmatprep.subr.bf16.mxu0 %v5582_v9  ;;  %681 = vmatprep.subr.bf16.mxu1 %v5586_v13  ;;  %v5008_v19 = vld [vmem:[%s6731_s0 + $0x8] sm:$0xff]   ;;  %v5615_v22 = vld [vmem:[#allocation8 + $0xa8] ss:$16 sps:$4 sm:$0xff]   ;;  %v5623_v24 = vld [vmem:[#allocation8 + $0x8c] ss:$16 sps:$4 sm:$0xff]   ;;  %v5737_v47 = vshrl.u32 %v106_v46, 7 }
  0x39   :  { %v5619_v23 = vld [vmem:[#allocation8 + $0x84] ss:$16 sps:$4 sm:$0xff]   ;;  %v5627_v25 = vld [vmem:[#allocation8 + $0x80] ss:$16 sps:$4 sm:$0xff]   ;;  %v5631_v26 = vld [vmem:[#allocation8 + $0x88] ss:$16 sps:$4 sm:$0xff]  }
  0x3a   :  { %4547 = vmatmul.mubr.msk.bf16.vlgmr.msra.gmra.mxu0 %vm156_vm1, %v4995_v7  ;;  %4552 = vmatmul.mubr.msk.bf16.vlgmr.msra.gmra.mxu1 %vm156_vm1, %v4995_v7  ;;  %v5633_v27 = vld [vmem:[#allocation8 + $0x64] ss:$16 sps:$4 sm:$0xff]   ;;  %v5637_v28 = vld [vmem:[#allocation8 + $0x6c] ss:$16 sps:$4 sm:$0xff]   ;;  %v5644_v30 = vld [vmem:[#allocation8 + $0x60] ss:$16 sps:$4 sm:$0xff]  }
  0x3b   :  { %641 = vmatpush1.bf16.msra.mxu0 %v5580_v8  ;;  %682 = vmatpush1.bf16.msra.mxu1 %v5584_v12  ;;  %v5021_v29 = vld [vmem:[%s6731_s0 + $0x10] sm:$0xff]   ;;  %v5652_v32 = vld [vmem:[#allocation8 + $0x44] ss:$16 sps:$4 sm:$0xff]   ;;  %v5660_v34 = vld [vmem:[#allocation8 + $0x40] ss:$16 sps:$4 sm:$0xff]   ;;  %6760 = vst [vmem:[#allocation16_spill] sm:$0xff] %v5737_v47 }
  0x3c   :  { %642 = vmatprep.subr.bf16.mxu0 %v5589_v14  ;;  %683 = vmatprep.subr.bf16.mxu1 %v5592_v15  ;;  %v5648_v31 = vld [vmem:[#allocation8 + $0x68] ss:$16 sps:$4 sm:$0xff]   ;;  %v5654_v33 = vld [vmem:[#allocation8 + $0x4c] ss:$16 sps:$4 sm:$0xff]   ;;  %v5034_v36 = vld [vmem:[%s6731_s0 + $0x18] sm:$0xff]   ;;  %v6743_v48 = vsub.s32 2, %v5737_v47 }
  0x3d   :  { %224 = vmatprep.mubr.bf16.mxu0 %v6745_v0  ;;  %297 = vmatprep.mubr.bf16.mxu1 %v6745_v0  ;;  %v5662_v35 = vld [vmem:[#allocation8 + $0x48] ss:$16 sps:$4 sm:$0xff]   ;;  %v5669_v37 = vld [vmem:[#allocation8 + $0x24] ss:$16 sps:$4 sm:$0xff]   ;;  %v5671_v38 = vld [vmem:[#allocation8 + $0x2c] ss:$16 sps:$4 sm:$0xff]  }
  0x3e   :  { %v5675_v39 = vld [vmem:[#allocation8 + $0x20] ss:$16 sps:$4 sm:$0xff]   ;;  %v5677_v40 = vld [vmem:[#allocation8 + $0x28] ss:$16 sps:$4 sm:$0xff]   ;;  %v5679_v41 = vld [vmem:[#allocation8 + $0x4] ss:$16 sps:$4 sm:$0xff]  }
  0x3f   :  { %643 = vmatpush1.bf16.msra.mxu0 %v5596_v16  ;;  %684 = vmatpush1.bf16.msra.mxu1 %v5600_v17  ;;  %v5681_v42 = vld [vmem:[#allocation8 + $0xc] ss:$16 sps:$4 sm:$0xff]   ;;  %v5687_v43 = vld [vmem:[#allocation8] ss:$16 sps:$4 sm:$0xff]   ;;  %v5689_v44 = vld [vmem:[#allocation8 + $0x8] ss:$16 sps:$4 sm:$0xff]  }
  0x40   :  { %644 = vmatprep.subr.bf16.mxu0 %v5604_v18  ;;  %685 = vmatprep.subr.bf16.mxu1 %v5611_v20  ;;  %v440_v45 = vld [vmem:[#allocation4] sm:$0xf]  ;;  %v6744_v49 = vsub.s32 0, %v5737_v47  ;;  %v6741_v50 = vsub.s32 3, %v5737_v47  ;;  %v6742_v55 = vsub.s32 1, %v5737_v47  ;;  %vm5501_vm2 = vmmov 0  }
  0x41   :  { %v104_v51 = vld [vmem:[%s6734_s3] sm:$0xf] }
  0x42   :  { %4548 = vmatmul.mubr.msk.bf16.gmra.mxu0 %vm156_vm1, %v5008_v19  ;;  %4553 = vmatmul.mubr.msk.bf16.gmra.mxu1 %vm156_vm1, %v5008_v19  ;;  %v5749_v54 = vrot.slane %v104_v51, %v6743_v48  ;;  %v5756_v58 = vrot.slane %v104_v51, %v6744_v49  ;;  %v5760_v59 = vrot.slane %v104_v51, %v6741_v50 }
  0x43   :  { %645 = vmatpush1.bf16.msra.mxu0 %v5613_v21  ;;  %686 = vmatpush1.bf16.msra.mxu1 %v5615_v22  ;;  %v5764_v62 = vrot.slane %v104_v51, %v6742_v55 }
  0x44   :  { %646 = vmatprep.subr.bf16.mxu0 %v5619_v23  ;;  %687 = vmatprep.subr.bf16.mxu1 %v5623_v24 }
  0x45   :  { %234 = vmatprep.mubr.bf16.mxu0 %v6745_v0  ;;  %307 = vmatprep.mubr.bf16.mxu1 %v6745_v0 }
  0x47   :  { %647 = vmatpush1.bf16.msra.mxu0 %v5627_v25  ;;  %688 = vmatpush1.bf16.msra.mxu1 %v5631_v26 }
  0x48   :  { %648 = vmatprep.subr.bf16.mxu0 %v5633_v27  ;;  %689 = vmatprep.subr.bf16.mxu1 %v5637_v28 }
  0x4a   :  { %4549 = vmatmul.mubr.msk.bf16.gmra.mxu0 %vm156_vm1, %v5021_v29  ;;  %4554 = vmatmul.mubr.msk.bf16.gmra.mxu1 %vm156_vm1, %v5021_v29 }
  0x4b   :  { %649 = vmatpush1.bf16.msra.mxu0 %v5644_v30  ;;  %690 = vmatpush1.bf16.msra.mxu1 %v5648_v31 }
  0x4c   :  { %650 = vmatprep.subr.bf16.mxu0 %v5652_v32  ;;  %691 = vmatprep.subr.bf16.mxu1 %v5654_v33 }
  0x4d   :  { %244 = vmatprep.mubr.bf16.mxu0 %v6745_v0  ;;  %317 = vmatprep.mubr.bf16.mxu1 %v6745_v0 }
  0x4f   :  { %651 = vmatpush1.bf16.msra.mxu0 %v5660_v34  ;;  %692 = vmatpush1.bf16.msra.mxu1 %v5662_v35 }
  0x50   :  { %652 = vmatprep.subr.bf16.mxu0 %v5669_v37  ;;  %693 = vmatprep.subr.bf16.mxu1 %v5671_v38 }
  0x52   :  { %4550 = vmatmul.mubr.msk.bf16.gmra.mxu0 %vm156_vm1, %v5034_v36  ;;  %4555 = vmatmul.mubr.msk.bf16.gmra.mxu1 %vm156_vm1, %v5034_v36 }
  0x53   :  { %653 = vmatpush1.bf16.msra.mxu0 %v5675_v39  ;;  %694 = vmatpush1.bf16.msra.mxu1 %v5677_v40 }
  0x54   :  { %654 = vmatprep.subr.bf16.mxu0 %v5679_v41  ;;  %695 = vmatprep.subr.bf16.mxu1 %v5681_v42 }
  0x55   :  { %672 = vmatprep.mubr.bf16.mxu0 %v6745_v0  ;;  %713 = vmatprep.mubr.bf16.mxu1 %v6745_v0 }
  0x57   :  { %655 = vmatpush1.bf16.msra.mxu0 %v5687_v43  ;;  %696 = vmatpush1.bf16.msra.mxu1 %v5689_v44 }
  0x58   :  { %941 = vmatprep.subr.bf16.mxu0 %v5582_v9  ;;  %982 = vmatprep.subr.bf16.mxu1 %v5586_v13 }
  0x5a   :  { %673 = vmatmul.mubr.bf16.vlgmr.msra.gmra.mxu0 %v440_v45  ;;  %714 = vmatmul.mubr.bf16.vlgmr.msra.gmra.mxu1 %v440_v45 }
  0x5b   :  { %942 = vmatpush1.bf16.msra.mxu0 %v5580_v8  ;;  %983 = vmatpush1.bf16.msra.mxu1 %v5584_v12 }
  0x5c   :  { %943 = vmatprep.subr.bf16.mxu0 %v5589_v14  ;;  %984 = vmatprep.subr.bf16.mxu1 %v5592_v15 }
  0x5d   :  { %973 = vmatprep.mubr.bf16.mxu0 %v6745_v0  ;;  %1014 = vmatprep.mubr.bf16.mxu1 %v6745_v0 }
  0x5f   :  { %944 = vmatpush1.bf16.msra.mxu0 %v5596_v16  ;;  %985 = vmatpush1.bf16.msra.mxu1 %v5600_v17 }
  0x60   :  { %945 = vmatprep.subr.bf16.mxu0 %v5604_v18  ;;  %986 = vmatprep.subr.bf16.mxu1 %v5611_v20 }
  0x63   :  { %946 = vmatpush1.bf16.msra.mxu0 %v5613_v21  ;;  %987 = vmatpush1.bf16.msra.mxu1 %v5615_v22 }
  0x64   :  { %947 = vmatprep.subr.bf16.mxu0 %v5619_v23  ;;  %988 = vmatprep.subr.bf16.mxu1 %v5623_v24 }
  0x67   :  { %948 = vmatpush1.bf16.msra.mxu0 %v5627_v25  ;;  %989 = vmatpush1.bf16.msra.mxu1 %v5631_v26 }
  0x68   :  { %949 = vmatprep.subr.bf16.mxu0 %v5633_v27  ;;  %990 = vmatprep.subr.bf16.mxu1 %v5637_v28 }
  0x6b   :  { %950 = vmatpush1.bf16.msra.mxu0 %v5644_v30  ;;  %991 = vmatpush1.bf16.msra.mxu1 %v5648_v31 }
  0x6c   :  { %951 = vmatprep.subr.bf16.mxu0 %v5652_v32  ;;  %992 = vmatprep.subr.bf16.mxu1 %v5654_v33 }
  0x6f   :  { %952 = vmatpush1.bf16.msra.mxu0 %v5660_v34  ;;  %993 = vmatpush1.bf16.msra.mxu1 %v5662_v35 }
  0x70   :  { %953 = vmatprep.subr.bf16.mxu0 %v5669_v37  ;;  %994 = vmatprep.subr.bf16.mxu1 %v5671_v38 }
  0x73   :  { %954 = vmatpush1.bf16.msra.mxu0 %v5675_v39  ;;  %995 = vmatpush1.bf16.msra.mxu1 %v5677_v40 }
  0x74   :  { %955 = vmatprep.subr.bf16.mxu0 %v5679_v41  ;;  %996 = vmatprep.subr.bf16.mxu1 %v5681_v42 }
  0x77   :  { %956 = vmatpush1.bf16.msra.mxu0 %v5687_v43  ;;  %997 = vmatpush1.bf16.msra.mxu1 %v5689_v44 }
  0x78   :  { %1243 = vmatprep.subr.bf16.mxu0 %v5582_v9  ;;  %1284 = vmatprep.subr.bf16.mxu1 %v5586_v13 }
  0xfa   :  { %v216_v52 = vpop.f32.mrf.mxu0  ;;  %v5745_v53 = vpop.f32.mrf.mxu1 }
  0xfc   :  { %v218_v56 = vpop.f32.mrf.mxu0  ;;  %v5752_v57 = vpop.f32.mrf.mxu1 }
  0xfe   :  { %v220_v60 = vpop.f32.mrf.mxu0  ;;  %v293_v61 = vpop.f32.mrf.mxu1 }
  0xff   :  { %v221_v63 = vadd.f32 %v220_v60, %v5756_v58  ;;  %v294_v1 = vadd.f32 %v293_v61, %v5749_v54 }
 0x100   :  { %v222_v2 = vpop.f32.mrf.mxu0  ;;  %v295_v3 = vpop.f32.mrf.mxu1 }
 0x101   :  { %v223_v4 = vadd.f32 %v222_v2, %v5764_v62  ;;  %v296_v5 = vadd.f32 %v295_v3, %v5760_v59 }
 0x102   :  { %v226_v6 = vpop.f32.mrf.mxu0  ;;  %v299_v7 = vpop.f32.mrf.mxu1 }
 0x103   :  { %v5770_v9 = vpack.c.bf16 %v223_v4, %v221_v63  ;;  %v5772_v10 = vpack.c.bf16 %v296_v5, %v294_v1  ;;  %v227_v11 = vadd.f32 %v226_v6, %v5756_v58  ;;  %v300_v13 = vadd.f32 %v299_v7, %v5749_v54 }
 0x104   :  { %v228_v19 = vpop.f32.mrf.mxu0  ;;  %v301_v29 = vpop.f32.mrf.mxu1 }
 0x105   :  { %v229_v36 = vadd.f32 %v228_v19, %v5764_v62  ;;  %v302_v45 = vadd.f32 %v301_v29, %v5760_v59 }
 0x106   :  { %v230_v46 = vpop.f32.mrf.mxu0  ;;  %v303_v51 = vpop.f32.mrf.mxu1 }
 0x107   :  { %v5778_v60 = vpack.c.bf16 %v229_v36, %v227_v11  ;;  %v5780_v61 = vpack.c.bf16 %v302_v45, %v300_v13  ;;  %v231_v63 = vadd.f32 %v230_v46, %v5756_v58  ;;  %v304_v1 = vadd.f32 %v303_v51, %v5749_v54 }
 0x108   :  { %v232_v2 = vpop.f32.mrf.mxu0  ;;  %v305_v3 = vpop.f32.mrf.mxu1 }
 0x109   :  { %v233_v4 = vadd.f32 %v232_v2, %v5764_v62  ;;  %v306_v5 = vadd.f32 %v305_v3, %v5760_v59 }
 0x10a   :  { %v236_v6 = vpop.f32.mrf.mxu0  ;;  %v309_v7 = vpop.f32.mrf.mxu1 }
 0x10b   :  { %v5786_v19 = vpack.c.bf16 %v233_v4, %v231_v63  ;;  %v5788_v29 = vpack.c.bf16 %v306_v5, %v304_v1  ;;  %v237_v11 = vadd.f32 %v236_v6, %v5756_v58  ;;  %v310_v13 = vadd.f32 %v309_v7, %v5749_v54 }
 0x10c   :  { %v238_v36 = vpop.f32.mrf.mxu0  ;;  %v311_v45 = vpop.f32.mrf.mxu1  ;;  %v219_v6 = vadd.f32 %v218_v56, %v5764_v62 }
 0x10d   :  { %v239_v46 = vadd.f32 %v238_v36, %v5764_v62  ;;  %v312_v51 = vadd.f32 %v311_v45, %v5760_v59  ;;  %v217_v45 = vadd.f32 %v216_v52, %v5756_v58  ;;  %v290_v52 = vadd.f32 %v5745_v53, %v5749_v54 }
 0x10e   :  { %v240_v50 = vpop.f32.mrf.mxu0  ;;  %v313_v2 = vpop.f32.mrf.mxu1 }
 0x10f   :  { %v5794_v55 = vpack.c.bf16 %v239_v46, %v237_v11  ;;  %v5796_v3 = vpack.c.bf16 %v312_v51, %v310_v13  ;;  %v241_v63 = vadd.f32 %v240_v50, %v5756_v58  ;;  %v314_v1 = vadd.f32 %v313_v2, %v5749_v54 }
 0x110   :  { %v242_v4 = vpop.f32.mrf.mxu0  ;;  %v315_v5 = vpop.f32.mrf.mxu1  ;;  %v4921_v0 = vpack.c.bf16 %v219_v6, %v217_v45 }
 0x111   :  { %v243_v7 = vadd.f32 %v242_v4, %v5764_v62  ;;  %v316_v36 = vadd.f32 %v315_v5, %v5760_v59 }
 0x112   :  { %v246_v48 = vpop.f32.mrf.mxu0  ;;  %v319_v49 = vpop.f32.mrf.mxu1  ;;  %v476_v53 = vunpack.c.l.bf16 %v4921_v0 }
 0x113   :  { %v5804_v11 = vpack.c.bf16 %v243_v7, %v241_v63  ;;  %v5806_v13 = vpack.c.bf16 %v316_v36, %v314_v1  ;;  %v247_v50 = vadd.f32 %v246_v48, %v5756_v58  ;;  %v320_v46 = vadd.f32 %v319_v49, %v5749_v54 }
 0x114   :  { %v248_v51 = vpop.f32.mrf.mxu0  ;;  %v321_v2 = vpop.f32.mrf.mxu1  ;;  %v292_v63 = vadd.f32 %v5752_v57, %v5760_v59 }
 0x115   :  { %6761 = vst [vmem:[#allocation17_spill] sm:$0xff] %v5804_v11  ;;  %6762 = vst [vmem:[#allocation18_spill] sm:$0xff] %v5806_v13  ;;  %v249_v56 = vadd.f32 %v248_v51, %v5764_v62  ;;  %v322_v4 = vadd.f32 %v321_v2, %v5760_v59 }
 0x116   :  { %v250_v5 = vpop.f32.mrf.mxu0  ;;  %v323_v1 = vpop.f32.mrf.mxu1  ;;  %v4922_v47 = vpack.c.bf16 %v292_v63, %v290_v52 }
 0x117   :  { %v5816_v7 = vpack.c.bf16 %v249_v56, %v247_v50  ;;  %v5818_v48 = vpack.c.bf16 %v322_v4, %v320_v46  ;;  %v251_v49 = vadd.f32 %v250_v5, %v5756_v58  ;;  %v324_v6 = vadd.f32 %v323_v1, %v5749_v54 }
 0x118   :  { %v252_v36 = vpop.f32.mrf.mxu0  ;;  %v325_v45 = vpop.f32.mrf.mxu1  ;;  %v477_v56 = vunpack.c.h.bf16 %v4921_v0  ;;  %v478_v63 = vunpack.c.l.bf16 %v4922_v47 }
 0x119   :  { %6763 = vst [vmem:[#allocation19_spill] sm:$0xff] %v5818_v48  ;;  %v253_v51 = vadd.f32 %v252_v36, %v5764_v62  ;;  %v326_v2 = vadd.f32 %v325_v45, %v5760_v59  ;;  %v479_v36 = vunpack.c.h.bf16 %v4922_v47 }
 0x11a   :  { %v674_v13 = vpop.f32.mrf.mxu0  ;;  %v715_v57 = vpop.f32.mrf.mxu1 }
 0x11b   :  { %v5824_v11 = vpack.c.bf16 %v253_v51, %v251_v49  ;;  %v5826_v50 = vpack.c.bf16 %v326_v2, %v324_v6  ;;  %v675_v46 = vadd.f32 %v674_v13, %v476_v53  ;;  %v716_v49 = vadd.f32 %v715_v57, %v478_v63 }
 0x11c   :  { %v676_v4 = vpop.f32.mrf.mxu0  ;;  %v717_v58 = vpop.f32.mrf.mxu1  ;;  %v780_v63 = vunpack.c.h.bf16 %v5772_v10 }
 0x11d   :  { %v722_v5 = vmul.f32 0.5, %v675_v46  ;;  %v677_v54 = vadd.f32 %v676_v4, %v477_v56  ;;  %v718_v52 = vadd.f32 %v717_v58, %v479_v36  ;;  %v724_v6 = vmul.f32 0.5, %v716_v49 }
 0x11e   :  { %v678_v1 = vpop.f32.mrf.mxu0  ;;  %v719_v48 = vpop.f32.mrf.mxu1  ;;  %v6764_v36 = vmov 0  }
 0x11f   :  { %5215 = vtanh.f32 %v722_v5  ;;  %v723_v62 = vmul.f32 0.5, %v677_v54 }
 0x120   :  { %v679_v59 = vpop.f32.mrf.mxu0  ;;  %v720_v45 = vpop.f32.mrf.mxu1 }
 0x121   :  { %5217 = vtanh.f32 %v723_v62 }
 0x122   :  { %5219 = vtanh.f32 %v718_v52 }
 0x123   :  { %5221 = vtanh.f32 %v724_v6 }
 0x12c   :  { %v5216_v51 = vpop.eup %5215 }
 0x12d   :  { %v728_v13 = vadd.f32 1.0, %v5216_v51 }
 0x12e   :  { %v5218_v0 = vpop.eup %5217 }
 0x12f   :  { %v731_v2 = vmul.f32 0.5, %v728_v13  ;;  %v729_v53 = vadd.f32 1.0, %v5218_v0  ;;  %v5220_v56 = vpop.eup %5219 }
 0x130   :  { %v5222_v54 = vpop.eup %5221 }
 0x131   :  { %v732_v46 = vmul.f32 0.5, %v729_v53  ;;  %v736_v4 = vmul.f32 %v5220_v56, %v731_v2  ;;  %v730_v58 = vadd.f32 1.0, %v5222_v54  ;;  %v779_v53 = vunpack.c.l.bf16 %v5772_v10 }
 0x133   :  { %v735_v48 = vmul.f32 0.0, %v732_v46  ;;  %v733_v47 = vmul.f32 0.5, %v730_v58 }
 0x135   :  { %v5828_v5 = vadd.f32 %v736_v4, %v735_v48 }
 0x137   :  { %5223 = vtanh.f32 %v5828_v5 }
 0x144   :  { %v5224_v1 = vpop.eup %5223 }
 0x145   :  { %v739_v57 = vmul.f32 %v5224_v1, %v733_v47 }
 0x147   :  { %v740_v62 = vpack.c.bf16 %v739_v57, %v739_v57 }
 0x149   :  { %741 = vst [vmem:[#allocation3] sm:$0xf] %v740_v62  ;;  %974 = vmatmul.mubr.bf16.vlgmr.msra.gmra.mxu0 %v740_v62  ;;  %1015 = vmatmul.mubr.bf16.vlgmr.msra.gmra.mxu1 %v740_v62 }
 0x14a   :  { %1244 = vmatpush1.bf16.msra.mxu0 %v5580_v8  ;;  %1285 = vmatpush1.bf16.msra.mxu1 %v5584_v12  ;;  %v777_v8 = vunpack.c.l.bf16 %v5770_v9 }
 0x14b   :  { %1245 = vmatprep.subr.bf16.mxu0 %v5589_v14  ;;  %1286 = vmatprep.subr.bf16.mxu1 %v5592_v15 }
 0x14c   :  { %1275 = vmatprep.mubr.bf16.mxu0 %v6764_v36  ;;  %1316 = vmatprep.mubr.bf16.mxu1 %v6764_v36 }
 0x14e   :  { %1246 = vmatpush1.bf16.msra.mxu0 %v5596_v16  ;;  %1287 = vmatpush1.bf16.msra.mxu1 %v5600_v17  ;;  %v778_v16 = vunpack.c.h.bf16 %v5770_v9 }
 0x14f   :  { %1247 = vmatprep.subr.bf16.mxu0 %v5604_v18  ;;  %1288 = vmatprep.subr.bf16.mxu1 %v5611_v20 }
 0x152   :  { %1248 = vmatpush1.bf16.msra.mxu0 %v5613_v21  ;;  %1289 = vmatpush1.bf16.msra.mxu1 %v5615_v22 }
 0x153   :  { %1249 = vmatprep.subr.bf16.mxu0 %v5619_v23  ;;  %1290 = vmatprep.subr.bf16.mxu1 %v5623_v24 }
 0x156   :  { %1250 = vmatpush1.bf16.msra.mxu0 %v5627_v25  ;;  %1291 = vmatpush1.bf16.msra.mxu1 %v5631_v26 }
 0x157   :  { %1251 = vmatprep.subr.bf16.mxu0 %v5633_v27  ;;  %1292 = vmatprep.subr.bf16.mxu1 %v5637_v28 }
 0x15a   :  { %1252 = vmatpush1.bf16.msra.mxu0 %v5644_v30  ;;  %1293 = vmatpush1.bf16.msra.mxu1 %v5648_v31 }
 0x15b   :  { %1253 = vmatprep.subr.bf16.mxu0 %v5652_v32  ;;  %1294 = vmatprep.subr.bf16.mxu1 %v5654_v33 }
 0x15e   :  { %1254 = vmatpush1.bf16.msra.mxu0 %v5660_v34  ;;  %1295 = vmatpush1.bf16.msra.mxu1 %v5662_v35 }
 0x15f   :  { %1255 = vmatprep.subr.bf16.mxu0 %v5669_v37  ;;  %1296 = vmatprep.subr.bf16.mxu1 %v5671_v38 }
 0x162   :  { %1256 = vmatpush1.bf16.msra.mxu0 %v5675_v39  ;;  %1297 = vmatpush1.bf16.msra.mxu1 %v5677_v40 }
 0x163   :  { %1257 = vmatprep.subr.bf16.mxu0 %v5679_v41  ;;  %1298 = vmatprep.subr.bf16.mxu1 %v5681_v42 }
 0x166   :  { %1258 = vmatpush1.bf16.msra.mxu0 %v5687_v43  ;;  %1299 = vmatpush1.bf16.msra.mxu1 %v5689_v44 }
 0x209   :  { %v975_v12 = vpop.f32.mrf.mxu0  ;;  %v1016_v14 = vpop.f32.mrf.mxu1 }
 0x20a   :  { %v976_v15 = vadd.f32 %v975_v12, %v777_v8  ;;  %v1017_v46 = vadd.f32 %v1016_v14, %v779_v53 }
 0x20b   :  { %v977_v17 = vpop.f32.mrf.mxu0  ;;  %v1018_v59 = vpop.f32.mrf.mxu1 }
 0x20c   :  { %v1023_v45 = vmul.f32 0.5, %v976_v15  ;;  %v978_v52 = vadd.f32 %v977_v17, %v778_v16  ;;  %v1019_v13 = vadd.f32 %v1018_v59, %v780_v63  ;;  %v1025_v56 = vmul.f32 0.5, %v1017_v46  ;;  %v5873_v59 = vld [vmem:[#allocation8 + $0xe4] ss:$16 sps:$4 sm:$0xff]  }
 0x20d   :  { %v979_v49 = vpop.f32.mrf.mxu0  ;;  %v1020_v6 = vpop.f32.mrf.mxu1  ;;  %1545 = vmatprep.subr.bf16.mxu0 %v5873_v59  ;;  %v5885_v63 = vld [vmem:[#allocation8 + $0xc4] ss:$16 sps:$4 sm:$0xff]  }
 0x20e   :  { %5225 = vtanh.f32 %v1023_v45  ;;  %v1024_v51 = vmul.f32 0.5, %v978_v52  ;;  %v5877_v45 = vld [vmem:[#allocation8 + $0xe0] ss:$16 sps:$4 sm:$0xff]   ;;  %v5879_v52 = vld [vmem:[#allocation8 + $0xe8] ss:$16 sps:$4 sm:$0xff]  }
 0x20f   :  { %v980_v0 = vpop.f32.mrf.mxu0  ;;  %v1021_v2 = vpop.f32.mrf.mxu1  ;;  %v5887_v49 = vld [vmem:[#allocation8 + $0xcc] ss:$16 sps:$4 sm:$0xff]   ;;  %v5889_v6 = vld [vmem:[#allocation8 + $0xc0] ss:$16 sps:$4 sm:$0xff]  }
 0x210   :  { %5227 = vtanh.f32 %v1024_v51  ;;  %v5891_v51 = vld [vmem:[#allocation8 + $0xc8] ss:$16 sps:$4 sm:$0xff]  }
 0x211   :  { %5229 = vtanh.f32 %v1019_v13 }
 0x212   :  { %5231 = vtanh.f32 %v1025_v56 }
 0x21b   :  { %v5226_v9 = vpop.eup %5225 }
 0x21c   :  { %v1029_v48 = vadd.f32 1.0, %v5226_v9 }
 0x21d   :  { %v5228_v4 = vpop.eup %5227 }
 0x21e   :  { %v1032_v54 = vmul.f32 0.5, %v1029_v48  ;;  %v1030_v58 = vadd.f32 1.0, %v5228_v4  ;;  %v5230_v47 = vpop.eup %5229 }
 0x21f   :  { %v5232_v12 = vpop.eup %5231 }
 0x220   :  { %v1033_v1 = vmul.f32 0.5, %v1030_v58  ;;  %v1037_v57 = vmul.f32 %v5230_v47, %v1032_v54  ;;  %v1031_v15 = vadd.f32 1.0, %v5232_v12  ;;  %v5939_v54 = vld [vmem:[#allocation8 + $0xa4] ss:$16 sps:$4 sm:$0xff]   ;;  %v5941_v58 = vld [vmem:[#allocation8 + $0xac] ss:$16 sps:$4 sm:$0xff]  }
 0x221   :  { %v5943_v47 = vld [vmem:[#allocation8 + $0xa0] ss:$16 sps:$4 sm:$0xff]   ;;  %v5957_v12 = vld [vmem:[#allocation8 + $0x88] ss:$16 sps:$4 sm:$0xff]  }
 0x222   :  { %v1036_v62 = vmul.f32 %v1033_v1, %v5828_v5  ;;  %v1034_v10 = vmul.f32 0.5, %v1031_v15  ;;  %v5875_v5 = vld [vmem:[#allocation8 + $0xec] ss:$16 sps:$4 sm:$0xff]   ;;  %v5945_v1 = vld [vmem:[#allocation8 + $0xa8] ss:$16 sps:$4 sm:$0xff]  }
 0x223   :  { %1586 = vmatprep.subr.bf16.mxu1 %v5875_v5  ;;  %v5961_v15 = vld [vmem:[#allocation8 + $0x64] ss:$16 sps:$4 sm:$0xff]  }
 0x224   :  { %v5868_v8 = vadd.f32 %v1037_v57, %v1036_v62  ;;  %v5951_v57 = vld [vmem:[#allocation8 + $0x84] ss:$16 sps:$4 sm:$0xff]   ;;  %v5953_v62 = vld [vmem:[#allocation8 + $0x8c] ss:$16 sps:$4 sm:$0xff]  }
 0x226   :  { %5233 = vtanh.f32 %v5868_v8 }
 0x233   :  { %v5234_v14 = vpop.eup %5233 }
 0x234   :  { %v1040_v16 = vmul.f32 %v5234_v14, %v1034_v10  ;;  %v5963_v10 = vld [vmem:[#allocation8 + $0x6c] ss:$16 sps:$4 sm:$0xff]   ;;  %v5967_v14 = vld [vmem:[#allocation8 + $0x60] ss:$16 sps:$4 sm:$0xff]  }
 0x236   :  { %v1041_v17 = vpack.c.bf16 %v1040_v16, %v1040_v16  ;;  %v5969_v16 = vld [vmem:[#allocation8 + $0x68] ss:$16 sps:$4 sm:$0xff]  }
 0x238   :  { %1043 = vst [vmem:[#allocation3 + $0x4] sm:$0xf] %v1041_v17  ;;  %1276 = vmatmul.mubr.bf16.vlgmr.msra.gmra.mxu0 %v1041_v17  ;;  %1317 = vmatmul.mubr.bf16.vlgmr.msra.gmra.mxu1 %v1041_v17  ;;  %v5973_v17 = vld [vmem:[#allocation8 + $0x44] ss:$16 sps:$4 sm:$0xff]  }
 0x239   :  { %1577 = vmatprep.mubr.bf16.mxu0 %v6764_v36  ;;  %1618 = vmatprep.mubr.bf16.mxu1 %v6764_v36 }
 0x23a   :  { %1546 = vmatpush1.bf16.msra.mxu0 %v5877_v45  ;;  %1587 = vmatpush1.bf16.msra.mxu1 %v5879_v52 }
 0x23b   :  { %1547 = vmatprep.subr.bf16.mxu0 %v5885_v63  ;;  %1588 = vmatprep.subr.bf16.mxu1 %v5887_v49 }
 0x23e   :  { %1548 = vmatpush1.bf16.msra.mxu0 %v5889_v6  ;;  %1589 = vmatpush1.bf16.msra.mxu1 %v5891_v51 }
 0x23f   :  { %1549 = vmatprep.subr.bf16.mxu0 %v5604_v18  ;;  %1590 = vmatprep.subr.bf16.mxu1 %v5611_v20  ;;  %v1079_v18 = vunpack.c.l.bf16 %v5778_v60 }
 0x242   :  { %1550 = vmatpush1.bf16.msra.mxu0 %v5613_v21  ;;  %1591 = vmatpush1.bf16.msra.mxu1 %v5615_v22 }
 0x243   :  { %1551 = vmatprep.subr.bf16.mxu0 %v5619_v23  ;;  %1592 = vmatprep.subr.bf16.mxu1 %v5623_v24  ;;  %v1080_v23 = vunpack.c.h.bf16 %v5778_v60 }
 0x246   :  { %1552 = vmatpush1.bf16.msra.mxu0 %v5627_v25  ;;  %1593 = vmatpush1.bf16.msra.mxu1 %v5631_v26 }
 0x247   :  { %1553 = vmatprep.subr.bf16.mxu0 %v5633_v27  ;;  %1594 = vmatprep.subr.bf16.mxu1 %v5637_v28  ;;  %v1082_v28 = vunpack.c.h.bf16 %v5780_v61 }
 0x24a   :  { %1554 = vmatpush1.bf16.msra.mxu0 %v5644_v30  ;;  %1595 = vmatpush1.bf16.msra.mxu1 %v5648_v31 }
 0x24b   :  { %1555 = vmatprep.subr.bf16.mxu0 %v5652_v32  ;;  %1596 = vmatprep.subr.bf16.mxu1 %v5654_v33 }
 0x24e   :  { %1556 = vmatpush1.bf16.msra.mxu0 %v5660_v34  ;;  %1597 = vmatpush1.bf16.msra.mxu1 %v5662_v35 }
 0x24f   :  { %1557 = vmatprep.subr.bf16.mxu0 %v5669_v37  ;;  %1598 = vmatprep.subr.bf16.mxu1 %v5671_v38  ;;  %v1081_v37 = vunpack.c.l.bf16 %v5780_v61 }
 0x252   :  { %1558 = vmatpush1.bf16.msra.mxu0 %v5675_v39  ;;  %1599 = vmatpush1.bf16.msra.mxu1 %v5677_v40 }
 0x253   :  { %1559 = vmatprep.subr.bf16.mxu0 %v5679_v41  ;;  %1600 = vmatprep.subr.bf16.mxu1 %v5681_v42 }
 0x256   :  { %1560 = vmatpush1.bf16.msra.mxu0 %v5687_v43  ;;  %1601 = vmatpush1.bf16.msra.mxu1 %v5689_v44 }
 0x257   :  { %1847 = vmatprep.subr.bf16.mxu0 %v5873_v59  ;;  %1888 = vmatprep.subr.bf16.mxu1 %v5875_v5 }
 0x2f8   :  { %v1277_v20 = vpop.f32.mrf.mxu0  ;;  %v1318_v21 = vpop.f32.mrf.mxu1 }
 0x2f9   :  { %v1278_v22 = vadd.f32 %v1277_v20, %v1079_v18  ;;  %v1319_v38 = vadd.f32 %v1318_v21, %v1081_v37  ;;  %v5975_v18 = vld [vmem:[#allocation8 + $0x4c] ss:$16 sps:$4 sm:$0xff]   ;;  %v5979_v20 = vld [vmem:[#allocation8 + $0x40] ss:$16 sps:$4 sm:$0xff]   ;;  %v5981_v21 = vld [vmem:[#allocation8 + $0x48] ss:$16 sps:$4 sm:$0xff]  }
 0x2fa   :  { %v1279_v24 = vpop.f32.mrf.mxu0  ;;  %v1320_v25 = vpop.f32.mrf.mxu1 }
 0x2fb   :  { %v1325_v26 = vmul.f32 0.5, %v1278_v22  ;;  %v1280_v27 = vadd.f32 %v1279_v24, %v1080_v23  ;;  %v1321_v33 = vadd.f32 %v1320_v25, %v1082_v28  ;;  %v1327_v39 = vmul.f32 0.5, %v1319_v38  ;;  %v5985_v22 = vld [vmem:[#allocation8 + $0x24] ss:$16 sps:$4 sm:$0xff]   ;;  %v5987_v23 = vld [vmem:[#allocation8 + $0x2c] ss:$16 sps:$4 sm:$0xff]  }
 0x2fc   :  { %v1281_v30 = vpop.f32.mrf.mxu0  ;;  %v1322_v31 = vpop.f32.mrf.mxu1  ;;  %v5991_v24 = vld [vmem:[#allocation8 + $0x20] ss:$16 sps:$4 sm:$0xff]   ;;  %v5993_v25 = vld [vmem:[#allocation8 + $0x28] ss:$16 sps:$4 sm:$0xff]  }
 0x2fd   :  { %5235 = vtanh.f32 %v1325_v26  ;;  %v1326_v32 = vmul.f32 0.5, %v1280_v27  ;;  %v5997_v26 = vld [vmem:[#allocation8 + $0x4] ss:$16 sps:$4 sm:$0xff]   ;;  %v5999_v27 = vld [vmem:[#allocation8 + $0xc] ss:$16 sps:$4 sm:$0xff]   ;;  %v1381_v31 = vunpack.c.l.bf16 %v5786_v19 }
 0x2fe   :  { %v1282_v34 = vpop.f32.mrf.mxu0  ;;  %v1323_v35 = vpop.f32.mrf.mxu1  ;;  %v6003_v28 = vld [vmem:[#allocation8] ss:$16 sps:$4 sm:$0xff]   ;;  %v6005_v30 = vld [vmem:[#allocation8 + $0x8] ss:$16 sps:$4 sm:$0xff]  }
 0x2ff   :  { %5237 = vtanh.f32 %v1326_v32  ;;  %v1382_v35 = vunpack.c.h.bf16 %v5786_v19 }
 0x300   :  { %5239 = vtanh.f32 %v1321_v33 }
 0x301   :  { %5241 = vtanh.f32 %v1327_v39 }
 0x30a   :  { %v5236_v40 = vpop.eup %5235 }
 0x30b   :  { %v1331_v41 = vadd.f32 1.0, %v5236_v40 }
 0x30c   :  { %v5238_v42 = vpop.eup %5237 }
 0x30d   :  { %v1334_v43 = vmul.f32 0.5, %v1331_v41  ;;  %v1332_v44 = vadd.f32 1.0, %v5238_v42  ;;  %v5240_v60 = vpop.eup %5239  ;;  %v1384_v41 = vunpack.c.h.bf16 %v5788_v29 }
 0x30e   :  { %v5242_v46 = vpop.eup %5241 }
 0x30f   :  { %v1335_v13 = vmul.f32 0.5, %v1332_v44  ;;  %v1339_v0 = vmul.f32 %v5240_v60, %v1334_v43  ;;  %v1333_v56 = vadd.f32 1.0, %v5242_v46 }
 0x311   :  { %v1338_v2 = vmul.f32 %v1335_v13, %v5868_v8  ;;  %v1336_v61 = vmul.f32 0.5, %v1333_v56  ;;  %v5955_v8 = vld [vmem:[#allocation8 + $0x80] ss:$16 sps:$4 sm:$0xff]  }
 0x313   :  { %v5928_v53 = vadd.f32 %v1339_v0, %v1338_v2  ;;  %v1383_v2 = vunpack.c.l.bf16 %v5788_v29 }
 0x315   :  { %5243 = vtanh.f32 %v5928_v53 }
 0x322   :  { %v5244_v9 = vpop.eup %5243 }
 0x323   :  { %v1342_v48 = vmul.f32 %v5244_v9, %v1336_v61 }
 0x325   :  { %v1343_v4 = vpack.c.bf16 %v1342_v48, %v1342_v48 }
 0x327   :  { %1345 = vst [vmem:[#allocation3 + $0x8] sm:$0xf] %v1343_v4  ;;  %1578 = vmatmul.mubr.bf16.vlgmr.msra.gmra.mxu0 %v1343_v4  ;;  %1619 = vmatmul.mubr.bf16.vlgmr.msra.gmra.mxu1 %v1343_v4 }
 0x328   :  { %1848 = vmatpush1.bf16.msra.mxu0 %v5877_v45  ;;  %1889 = vmatpush1.bf16.msra.mxu1 %v5879_v52 }
 0x329   :  { %1849 = vmatprep.subr.bf16.mxu0 %v5885_v63  ;;  %1890 = vmatprep.subr.bf16.mxu1 %v5887_v49 }
 0x32a   :  { %1879 = vmatprep.mubr.bf16.mxu0 %v6764_v36  ;;  %1920 = vmatprep.mubr.bf16.mxu1 %v6764_v36 }
 0x32c   :  { %1850 = vmatpush1.bf16.msra.mxu0 %v5889_v6  ;;  %1891 = vmatpush1.bf16.msra.mxu1 %v5891_v51 }
 0x32d   :  { %1851 = vmatprep.subr.bf16.mxu0 %v5939_v54  ;;  %1892 = vmatprep.subr.bf16.mxu1 %v5941_v58 }
 0x330   :  { %1852 = vmatpush1.bf16.msra.mxu0 %v5943_v47  ;;  %1893 = vmatpush1.bf16.msra.mxu1 %v5945_v1 }
 0x331   :  { %1853 = vmatprep.subr.bf16.mxu0 %v5951_v57  ;;  %1894 = vmatprep.subr.bf16.mxu1 %v5953_v62 }
 0x334   :  { %1854 = vmatpush1.bf16.msra.mxu0 %v5955_v8  ;;  %1895 = vmatpush1.bf16.msra.mxu1 %v5957_v12 }
 0x335   :  { %1855 = vmatprep.subr.bf16.mxu0 %v5961_v15  ;;  %1896 = vmatprep.subr.bf16.mxu1 %v5963_v10 }
 0x338   :  { %1856 = vmatpush1.bf16.msra.mxu0 %v5967_v14  ;;  %1897 = vmatpush1.bf16.msra.mxu1 %v5969_v16 }
 0x339   :  { %1857 = vmatprep.subr.bf16.mxu0 %v5973_v17  ;;  %1898 = vmatprep.subr.bf16.mxu1 %v5975_v18 }
 0x33c   :  { %1858 = vmatpush1.bf16.msra.mxu0 %v5979_v20  ;;  %1899 = vmatpush1.bf16.msra.mxu1 %v5981_v21 }
 0x33d   :  { %1859 = vmatprep.subr.bf16.mxu0 %v5985_v22  ;;  %1900 = vmatprep.subr.bf16.mxu1 %v5987_v23 }
 0x340   :  { %1860 = vmatpush1.bf16.msra.mxu0 %v5991_v24  ;;  %1901 = vmatpush1.bf16.msra.mxu1 %v5993_v25 }
 0x341   :  { %1861 = vmatprep.subr.bf16.mxu0 %v5997_v26  ;;  %1902 = vmatprep.subr.bf16.mxu1 %v5999_v27 }
 0x344   :  { %1862 = vmatpush1.bf16.msra.mxu0 %v6003_v28  ;;  %1903 = vmatpush1.bf16.msra.mxu1 %v6005_v30 }
 0x345   :  { %2149 = vmatprep.subr.bf16.mxu0 %v5873_v59  ;;  %2190 = vmatprep.subr.bf16.mxu1 %v5875_v5 }
 0x3e7   :  { %v1579_v32 = vpop.f32.mrf.mxu0  ;;  %v1620_v33 = vpop.f32.mrf.mxu1 }
 0x3e8   :  { %v1580_v34 = vadd.f32 %v1579_v32, %v1381_v31  ;;  %v1621_v46 = vadd.f32 %v1620_v33, %v1383_v2 }
 0x3e9   :  { %v1581_v37 = vpop.f32.mrf.mxu0  ;;  %v1622_v38 = vpop.f32.mrf.mxu1 }
 0x3ea   :  { %v1627_v39 = vmul.f32 0.5, %v1580_v34  ;;  %v1582_v40 = vadd.f32 %v1581_v37, %v1382_v35  ;;  %v1623_v60 = vadd.f32 %v1622_v38, %v1384_v41  ;;  %v1629_v56 = vmul.f32 0.5, %v1621_v46 }
 0x3eb   :  { %v1583_v42 = vpop.f32.mrf.mxu0  ;;  %v1624_v43 = vpop.f32.mrf.mxu1 }
 0x3ec   :  { %5245 = vtanh.f32 %v1627_v39  ;;  %v1628_v44 = vmul.f32 0.5, %v1582_v40 }
 0x3ed   :  { %v1584_v13 = vpop.f32.mrf.mxu0  ;;  %v1625_v0 = vpop.f32.mrf.mxu1 }
 0x3ee   :  { %5247 = vtanh.f32 %v1628_v44 }
 0x3ef   :  { %5249 = vtanh.f32 %v1623_v60  ;;  %v1684_v60 = vunpack.c.h.bf16 %v5794_v55 }
 0x3f0   :  { %5251 = vtanh.f32 %v1629_v56  ;;  %v1686_v56 = vunpack.c.h.bf16 %v5796_v3 }
 0x3f9   :  { %v5246_v19 = vpop.eup %5245 }
 0x3fa   :  { %v1633_v61 = vadd.f32 1.0, %v5246_v19 }
 0x3fb   :  { %v5248_v9 = vpop.eup %5247 }
 0x3fc   :  { %v1636_v48 = vmul.f32 0.5, %v1633_v61  ;;  %v1634_v4 = vadd.f32 1.0, %v5248_v9  ;;  %v5250_v31 = vpop.eup %5249 }
 0x3fd   :  { %v5252_v38 = vpop.eup %5251 }
 0x3fe   :  { %v1637_v32 = vmul.f32 0.5, %v1634_v4  ;;  %v1641_v34 = vmul.f32 %v5250_v31, %v1636_v48  ;;  %v1635_v39 = vadd.f32 1.0, %v5252_v38  ;;  %v1685_v4 = vunpack.c.l.bf16 %v5796_v3 }
 0x400   :  { %v1640_v35 = vmul.f32 %v1637_v32, %v5928_v53  ;;  %v1638_v29 = vmul.f32 0.5, %v1635_v39  ;;  %v1683_v53 = vunpack.c.l.bf16 %v5794_v55 }
 0x402   :  { %v6018_v37 = vadd.f32 %v1641_v34, %v1640_v35 }
 0x404   :  { %5253 = vtanh.f32 %v6018_v37 }
 0x411   :  { %v5254_v33 = vpop.eup %5253 }
 0x412   :  { %v1644_v40 = vmul.f32 %v5254_v33, %v1638_v29 }
 0x414   :  { %v1645_v41 = vpack.c.bf16 %v1644_v40, %v1644_v40 }
 0x416   :  { %1647 = vst [vmem:[#allocation3 + $0xc] sm:$0xf] %v1645_v41  ;;  %1880 = vmatmul.mubr.bf16.vlgmr.msra.gmra.mxu0 %v1645_v41  ;;  %1921 = vmatmul.mubr.bf16.vlgmr.msra.gmra.mxu1 %v1645_v41 }
 0x417   :  { %2150 = vmatpush1.bf16.msra.mxu0 %v5877_v45  ;;  %2191 = vmatpush1.bf16.msra.mxu1 %v5879_v52 }
 0x418   :  { %2151 = vmatprep.subr.bf16.mxu0 %v5885_v63  ;;  %2192 = vmatprep.subr.bf16.mxu1 %v5887_v49 }
 0x419   :  { %2181 = vmatprep.mubr.bf16.mxu0 %v6764_v36  ;;  %2222 = vmatprep.mubr.bf16.mxu1 %v6764_v36 }
 0x41b   :  { %2152 = vmatpush1.bf16.msra.mxu0 %v5889_v6  ;;  %2193 = vmatpush1.bf16.msra.mxu1 %v5891_v51 }
 0x41c   :  { %2153 = vmatprep.subr.bf16.mxu0 %v5939_v54  ;;  %2194 = vmatprep.subr.bf16.mxu1 %v5941_v58 }
 0x41f   :  { %2154 = vmatpush1.bf16.msra.mxu0 %v5943_v47  ;;  %2195 = vmatpush1.bf16.msra.mxu1 %v5945_v1 }
 0x420   :  { %2155 = vmatprep.subr.bf16.mxu0 %v5951_v57  ;;  %2196 = vmatprep.subr.bf16.mxu1 %v5953_v62 }
 0x423   :  { %2156 = vmatpush1.bf16.msra.mxu0 %v5955_v8  ;;  %2197 = vmatpush1.bf16.msra.mxu1 %v5957_v12 }
 0x424   :  { %2157 = vmatprep.subr.bf16.mxu0 %v5961_v15  ;;  %2198 = vmatprep.subr.bf16.mxu1 %v5963_v10 }
 0x427   :  { %2158 = vmatpush1.bf16.msra.mxu0 %v5967_v14  ;;  %2199 = vmatpush1.bf16.msra.mxu1 %v5969_v16 }
 0x428   :  { %2159 = vmatprep.subr.bf16.mxu0 %v5973_v17  ;;  %2200 = vmatprep.subr.bf16.mxu1 %v5975_v18 }
 0x42b   :  { %2160 = vmatpush1.bf16.msra.mxu0 %v5979_v20  ;;  %2201 = vmatpush1.bf16.msra.mxu1 %v5981_v21 }
 0x42c   :  { %2161 = vmatprep.subr.bf16.mxu0 %v5985_v22  ;;  %2202 = vmatprep.subr.bf16.mxu1 %v5987_v23 }
 0x42f   :  { %2162 = vmatpush1.bf16.msra.mxu0 %v5991_v24  ;;  %2203 = vmatpush1.bf16.msra.mxu1 %v5993_v25 }
 0x430   :  { %2163 = vmatprep.subr.bf16.mxu0 %v5997_v26  ;;  %2204 = vmatprep.subr.bf16.mxu1 %v5999_v27 }
 0x433   :  { %2164 = vmatpush1.bf16.msra.mxu0 %v6003_v28  ;;  %2205 = vmatpush1.bf16.msra.mxu1 %v6005_v30 }
 0x434   :  { %2451 = vmatprep.subr.bf16.mxu0 %v5873_v59  ;;  %2492 = vmatprep.subr.bf16.mxu1 %v5875_v5 }
 0x4d6   :  { %v1881_v42 = vpop.f32.mrf.mxu0  ;;  %v1922_v43 = vpop.f32.mrf.mxu1 }
 0x4d7   :  { %v1882_v44 = vadd.f32 %v1881_v42, %v1683_v53  ;;  %v1923_v31 = vadd.f32 %v1922_v43, %v1685_v4 }
 0x4d8   :  { %v1883_v13 = vpop.f32.mrf.mxu0  ;;  %v1924_v0 = vpop.f32.mrf.mxu1 }
 0x4d9   :  { %v1929_v2 = vmul.f32 0.5, %v1882_v44  ;;  %v1884_v46 = vadd.f32 %v1883_v13, %v1684_v60  ;;  %v1925_v59 = vadd.f32 %v1924_v0, %v1686_v56  ;;  %v1931_v32 = vmul.f32 0.5, %v1923_v31  ;;  %v6766_v56 = vld [vmem:[#allocation18_spill] sm:$0xff] }
 0x4da   :  { %v1885_v19 = vpop.f32.mrf.mxu0  ;;  %v1926_v61 = vpop.f32.mrf.mxu1  ;;  %v1987_v31 = vunpack.c.l.bf16 %v6766_v56 }
 0x4db   :  { %5255 = vtanh.f32 %v1929_v2  ;;  %v1930_v9 = vmul.f32 0.5, %v1884_v46  ;;  %v1988_v19 = vunpack.c.h.bf16 %v6766_v56 }
 0x4dc   :  { %v1886_v48 = vpop.f32.mrf.mxu0  ;;  %v1927_v5 = vpop.f32.mrf.mxu1 }
 0x4dd   :  { %5257 = vtanh.f32 %v1930_v9 }
 0x4de   :  { %5259 = vtanh.f32 %v1925_v59 }
 0x4df   :  { %5261 = vtanh.f32 %v1931_v32 }
 0x4e8   :  { %v5256_v55 = vpop.eup %5255 }
 0x4e9   :  { %v1935_v34 = vadd.f32 1.0, %v5256_v55 }
 0x4ea   :  { %v5258_v35 = vpop.eup %5257 }
 0x4eb   :  { %v1938_v38 = vmul.f32 0.5, %v1935_v34  ;;  %v1936_v39 = vadd.f32 1.0, %v5258_v35  ;;  %v5260_v29 = vpop.eup %5259 }
 0x4ec   :  { %v5262_v42 = vpop.eup %5261 }
 0x4ed   :  { %v1939_v33 = vmul.f32 0.5, %v1936_v39  ;;  %v1943_v40 = vmul.f32 %v5260_v29, %v1938_v38  ;;  %v1937_v44 = vadd.f32 1.0, %v5262_v42 }
 0x4ef   :  { %v1942_v41 = vmul.f32 %v1939_v33, %v6018_v37  ;;  %v1940_v3 = vmul.f32 0.5, %v1937_v44 }
 0x4f1   :  { %v6060_v53 = vadd.f32 %v1943_v40, %v1942_v41 }
 0x4f3   :  { %5263 = vtanh.f32 %v6060_v53 }
 0x500   :  { %v5264_v43 = vpop.eup %5263 }
 0x501   :  { %v1946_v60 = vmul.f32 %v5264_v43, %v1940_v3 }
 0x503   :  { %v1947_v13 = vpack.c.bf16 %v1946_v60, %v1946_v60 }
 0x505   :  { %1949 = vst [vmem:[#allocation3 + $0x10] sm:$0xf] %v1947_v13  ;;  %2182 = vmatmul.mubr.bf16.vlgmr.msra.gmra.mxu0 %v1947_v13  ;;  %2223 = vmatmul.mubr.bf16.vlgmr.msra.gmra.mxu1 %v1947_v13 }
 0x506   :  { %2452 = vmatpush1.bf16.msra.mxu0 %v5877_v45  ;;  %2493 = vmatpush1.bf16.msra.mxu1 %v5879_v52  ;;  %v6765_v45 = vld [vmem:[#allocation17_spill] sm:$0xff] }
 0x507   :  { %2453 = vmatprep.subr.bf16.mxu0 %v5885_v63  ;;  %2494 = vmatprep.subr.bf16.mxu1 %v5887_v49  ;;  %v1985_v52 = vunpack.c.l.bf16 %v6765_v45 }
 0x508   :  { %2483 = vmatprep.mubr.bf16.mxu0 %v6764_v36  ;;  %2524 = vmatprep.mubr.bf16.mxu1 %v6764_v36 }
 0x50a   :  { %2454 = vmatpush1.bf16.msra.mxu0 %v5889_v6  ;;  %2495 = vmatpush1.bf16.msra.mxu1 %v5891_v51  ;;  %v1986_v51 = vunpack.c.h.bf16 %v6765_v45 }
 0x50b   :  { %2455 = vmatprep.subr.bf16.mxu0 %v5939_v54  ;;  %2496 = vmatprep.subr.bf16.mxu1 %v5941_v58 }
 0x50e   :  { %2456 = vmatpush1.bf16.msra.mxu0 %v5943_v47  ;;  %2497 = vmatpush1.bf16.msra.mxu1 %v5945_v1 }
 0x50f   :  { %2457 = vmatprep.subr.bf16.mxu0 %v5951_v57  ;;  %2498 = vmatprep.subr.bf16.mxu1 %v5953_v62 }
 0x512   :  { %2458 = vmatpush1.bf16.msra.mxu0 %v5955_v8  ;;  %2499 = vmatpush1.bf16.msra.mxu1 %v5957_v12 }
 0x513   :  { %2459 = vmatprep.subr.bf16.mxu0 %v5961_v15  ;;  %2500 = vmatprep.subr.bf16.mxu1 %v5963_v10 }
 0x516   :  { %2460 = vmatpush1.bf16.msra.mxu0 %v5967_v14  ;;  %2501 = vmatpush1.bf16.msra.mxu1 %v5969_v16 }
 0x517   :  { %2461 = vmatprep.subr.bf16.mxu0 %v5973_v17  ;;  %2502 = vmatprep.subr.bf16.mxu1 %v5975_v18 }
 0x51a   :  { %2462 = vmatpush1.bf16.msra.mxu0 %v5979_v20  ;;  %2503 = vmatpush1.bf16.msra.mxu1 %v5981_v21 }
 0x51b   :  { %2463 = vmatprep.subr.bf16.mxu0 %v5985_v22  ;;  %2504 = vmatprep.subr.bf16.mxu1 %v5987_v23 }
 0x51e   :  { %2464 = vmatpush1.bf16.msra.mxu0 %v5991_v24  ;;  %2505 = vmatpush1.bf16.msra.mxu1 %v5993_v25 }
 0x51f   :  { %2465 = vmatprep.subr.bf16.mxu0 %v5997_v26  ;;  %2506 = vmatprep.subr.bf16.mxu1 %v5999_v27 }
 0x522   :  { %2466 = vmatpush1.bf16.msra.mxu0 %v6003_v28  ;;  %2507 = vmatpush1.bf16.msra.mxu1 %v6005_v30 }
 0x5c5   :  { %v2183_v63 = vpop.f32.mrf.mxu0  ;;  %v2224_v49 = vpop.f32.mrf.mxu1 }
 0x5c6   :  { %v2184_v6 = vadd.f32 %v2183_v63, %v1985_v52  ;;  %v2225_v32 = vadd.f32 %v2224_v49, %v1987_v31  ;;  %v5097_v63 = vld [vmem:[#allocation8 + $0xe4] ss:$16 sps:$4 sm:$0xff]   ;;  %v5100_v49 = vld [vmem:[#allocation8 + $0xec] ss:$16 sps:$4 sm:$0xff]  }
 0x5c7   :  { %v2185_v37 = vpop.f32.mrf.mxu0  ;;  %v2226_v0 = vpop.f32.mrf.mxu1  ;;  %2753 = vmatprep.subr.bf16.mxu0 %v5097_v63  ;;  %2794 = vmatprep.subr.bf16.mxu1 %v5100_v49  ;;  %v5136_v63 = vld [vmem:[#allocation10 + $0x6c] ss:$16 sps:$4 sm:$0xff]   ;;  %v5131_v49 = vld [vmem:[#allocation10 + $0x60] ss:$16 sps:$4 sm:$0xff]  }
 0x5c8   :  { %v2231_v2 = vmul.f32 0.5, %v2184_v6  ;;  %v2186_v46 = vadd.f32 %v2185_v37, %v1986_v51  ;;  %v2227_v48 = vadd.f32 %v2226_v0, %v1988_v19  ;;  %v2233_v55 = vmul.f32 0.5, %v2225_v32  ;;  %v5098_v6 = vld [vmem:[#allocation8 + $0xe8] ss:$16 sps:$4 sm:$0xff]   ;;  %v5103_v51 = vld [vmem:[#allocation8 + $0xc4] ss:$16 sps:$4 sm:$0xff]  }
 0x5c9   :  { %v2187_v61 = vpop.f32.mrf.mxu0  ;;  %v2228_v9 = vpop.f32.mrf.mxu1  ;;  %v5106_v37 = vld [vmem:[#allocation8 + $0xcc] ss:$16 sps:$4 sm:$0xff]   ;;  %v5101_v0 = vld [vmem:[#allocation8 + $0xc0] ss:$16 sps:$4 sm:$0xff]  }
 0x5ca   :  { %5265 = vtanh.f32 %v2231_v2  ;;  %v2232_v59 = vmul.f32 0.5, %v2186_v46  ;;  %v5104_v2 = vld [vmem:[#allocation8 + $0xc8] ss:$16 sps:$4 sm:$0xff]  }
 0x5cb   :  { %v2188_v5 = vpop.f32.mrf.mxu0  ;;  %v2229_v4 = vpop.f32.mrf.mxu1 }
 0x5cc   :  { %5267 = vtanh.f32 %v2232_v59 }
 0x5cd   :  { %5269 = vtanh.f32 %v2227_v48 }
 0x5ce   :  { %5271 = vtanh.f32 %v2233_v55 }
 0x5d7   :  { %v5266_v34 = vpop.eup %5265 }
 0x5d8   :  { %v2237_v35 = vadd.f32 1.0, %v5266_v34  ;;  %v5107_v34 = vld [vmem:[#allocation10 + $0xe0] ss:$16 sps:$4 sm:$0xff]  }
 0x5d9   :  { %v5268_v38 = vpop.eup %5267 }
 0x5da   :  { %v2240_v39 = vmul.f32 0.5, %v2237_v35  ;;  %v2238_v29 = vadd.f32 1.0, %v5268_v38  ;;  %v5270_v33 = vpop.eup %5269  ;;  %v5110_v35 = vld [vmem:[#allocation10 + $0xe8] ss:$16 sps:$4 sm:$0xff]  }
 0x5db   :  { %v5272_v3 = vpop.eup %5271 }
 0x5dc   :  { %v2241_v40 = vmul.f32 0.5, %v2238_v29  ;;  %v2245_v41 = vmul.f32 %v5270_v33, %v2240_v39  ;;  %v2239_v43 = vadd.f32 1.0, %v5272_v3  ;;  %v5115_v39 = vld [vmem:[#allocation10 + $0xc4] ss:$16 sps:$4 sm:$0xff]   ;;  %v5118_v29 = vld [vmem:[#allocation10 + $0xcc] ss:$16 sps:$4 sm:$0xff]  }
 0x5dd   :  { %v5113_v33 = vld [vmem:[#allocation10 + $0xc0] ss:$16 sps:$4 sm:$0xff]   ;;  %v5122_v3 = vld [vmem:[#allocation10 + $0xa8] ss:$16 sps:$4 sm:$0xff]  }
 0x5de   :  { %v2244_v42 = vmul.f32 %v2241_v40, %v6060_v53  ;;  %v2242_v60 = vmul.f32 0.5, %v2239_v43  ;;  %v5095_v53 = vld [vmem:[#allocation8 + $0xe0] ss:$16 sps:$4 sm:$0xff]   ;;  %v5116_v40 = vld [vmem:[#allocation10 + $0xc8] ss:$16 sps:$4 sm:$0xff]  }
 0x5df   :  { %v5127_v43 = vld [vmem:[#allocation10 + $0x84] ss:$16 sps:$4 sm:$0xff]  }
 0x5e0   :  { %v6100_v44 = vadd.f32 %v2245_v41, %v2244_v42  ;;  %v5121_v41 = vld [vmem:[#allocation10 + $0xa4] ss:$16 sps:$4 sm:$0xff]   ;;  %v5124_v42 = vld [vmem:[#allocation10 + $0xac] ss:$16 sps:$4 sm:$0xff]  }
 0x5e2   :  { %5273 = vtanh.f32 %v6100_v44 }
 0x5ef   :  { %v5274_v13 = vpop.eup %5273 }
 0x5f0   :  { %v2248_v45 = vmul.f32 %v5274_v13, %v2242_v60  ;;  %v5130_v60 = vld [vmem:[#allocation10 + $0x8c] ss:$16 sps:$4 sm:$0xff]   ;;  %v5125_v13 = vld [vmem:[#allocation10 + $0x80] ss:$16 sps:$4 sm:$0xff]  }
 0x5f2   :  { %v2249_v52 = vpack.c.bf16 %v2248_v45, %v2248_v45  ;;  %v5128_v45 = vld [vmem:[#allocation10 + $0x88] ss:$16 sps:$4 sm:$0xff]  }
 0x5f4   :  { %2251 = vst [vmem:[#allocation3 + $0x14] sm:$0xf] %v2249_v52  ;;  %2484 = vmatmul.mubr.bf16.vlgmr.msra.gmra.mxu0 %v2249_v52  ;;  %2525 = vmatmul.mubr.bf16.vlgmr.msra.gmra.mxu1 %v2249_v52  ;;  %v5133_v52 = vld [vmem:[#allocation10 + $0x64] ss:$16 sps:$4 sm:$0xff]  }
 0x5f5   :  { %2785 = vmatprep.mubr.bf16.mxu0 %v6764_v36  ;;  %2826 = vmatprep.mubr.bf16.mxu1 %v6764_v36 }
 0x5f6   :  { %2754 = vmatpush1.bf16.msra.mxu0 %v5095_v53  ;;  %2795 = vmatpush1.bf16.msra.mxu1 %v5098_v6  ;;  %v5134_v53 = vld [vmem:[#allocation10 + $0x68] ss:$16 sps:$4 sm:$0xff]   ;;  %v5139_v6 = vld [vmem:[#allocation10 + $0x44] ss:$16 sps:$4 sm:$0xff]  }
 0x5f7   :  { %2755 = vmatprep.subr.bf16.mxu0 %v5103_v51  ;;  %2796 = vmatprep.subr.bf16.mxu1 %v5106_v37  ;;  %v5142_v51 = vld [vmem:[#allocation10 + $0x4c] ss:$16 sps:$4 sm:$0xff]   ;;  %v5137_v37 = vld [vmem:[#allocation10 + $0x40] ss:$16 sps:$4 sm:$0xff]  }
 0x5fa   :  { %2756 = vmatpush1.bf16.msra.mxu0 %v5101_v0  ;;  %2797 = vmatpush1.bf16.msra.mxu1 %v5104_v2  ;;  %v5140_v0 = vld [vmem:[#allocation10 + $0x48] ss:$16 sps:$4 sm:$0xff]   ;;  %v5145_v2 = vld [vmem:[#allocation10 + $0x24] ss:$16 sps:$4 sm:$0xff]  }
 0x5fb   :  { %2757 = vmatprep.subr.bf16.mxu0 %v5939_v54  ;;  %2798 = vmatprep.subr.bf16.mxu1 %v5941_v58  ;;  %v5109_v54 = vld [vmem:[#allocation10 + $0xe4] ss:$16 sps:$4 sm:$0xff]   ;;  %v5112_v58 = vld [vmem:[#allocation10 + $0xec] ss:$16 sps:$4 sm:$0xff]  }
 0x5fe   :  { %2758 = vmatpush1.bf16.msra.mxu0 %v5943_v47  ;;  %2799 = vmatpush1.bf16.msra.mxu1 %v5945_v1  ;;  %v2287_v47 = vunpack.c.l.bf16 %v5816_v7 }
 0x5ff   :  { %2759 = vmatprep.subr.bf16.mxu0 %v5951_v57  ;;  %2800 = vmatprep.subr.bf16.mxu1 %v5953_v62 }
 0x602   :  { %2760 = vmatpush1.bf16.msra.mxu0 %v5955_v8  ;;  %2801 = vmatpush1.bf16.msra.mxu1 %v5957_v12  ;;  %v2288_v8 = vunpack.c.h.bf16 %v5816_v7 }
 0x603   :  { %2761 = vmatprep.subr.bf16.mxu0 %v5961_v15  ;;  %2802 = vmatprep.subr.bf16.mxu1 %v5963_v10 }
 0x606   :  { %2762 = vmatpush1.bf16.msra.mxu0 %v5967_v14  ;;  %2803 = vmatpush1.bf16.msra.mxu1 %v5969_v16  ;;  %v6767_v16 = vld [vmem:[#allocation19_spill] sm:$0xff] }
 0x607   :  { %2763 = vmatprep.subr.bf16.mxu0 %v5973_v17  ;;  %2804 = vmatprep.subr.bf16.mxu1 %v5975_v18  ;;  %v2290_v17 = vunpack.c.h.bf16 %v6767_v16 }
 0x60a   :  { %2764 = vmatpush1.bf16.msra.mxu0 %v5979_v20  ;;  %2805 = vmatpush1.bf16.msra.mxu1 %v5981_v21 }
 0x60b   :  { %2765 = vmatprep.subr.bf16.mxu0 %v5985_v22  ;;  %2806 = vmatprep.subr.bf16.mxu1 %v5987_v23 }
 0x60e   :  { %2766 = vmatpush1.bf16.msra.mxu0 %v5991_v24  ;;  %2807 = vmatpush1.bf16.msra.mxu1 %v5993_v25  ;;  %v2289_v25 = vunpack.c.l.bf16 %v6767_v16  ;;  %v6147_v16 = vld [vmem:[#allocation11 + $0xec] ss:$16 sps:$4 sm:$0xff]  }
 0x60f   :  { %2767 = vmatprep.subr.bf16.mxu0 %v5997_v26  ;;  %2808 = vmatprep.subr.bf16.mxu1 %v5999_v27 }
 0x612   :  { %2768 = vmatpush1.bf16.msra.mxu0 %v6003_v28  ;;  %2809 = vmatpush1.bf16.msra.mxu1 %v6005_v30 }
 0x613   :  { %3104 = vmatprep.subr.bf16.mxu0 %v5109_v54  ;;  %3177 = vmatprep.subr.bf16.mxu1 %v5112_v58  ;;  %v5148_v54 = vld [vmem:[#allocation10 + $0x2c] ss:$16 sps:$4 sm:$0xff]   ;;  %v5143_v58 = vld [vmem:[#allocation10 + $0x20] ss:$16 sps:$4 sm:$0xff]  }
 0x6b4   :  { %v2485_v1 = vpop.f32.mrf.mxu0  ;;  %v2526_v57 = vpop.f32.mrf.mxu1 }
 0x6b5   :  { %v2486_v62 = vadd.f32 %v2485_v1, %v2287_v47  ;;  %v2527_v26 = vadd.f32 %v2526_v57, %v2289_v25  ;;  %v5146_v47 = vld [vmem:[#allocation10 + $0x28] ss:$16 sps:$4 sm:$0xff]   ;;  %v5151_v1 = vld [vmem:[#allocation10 + $0x4] ss:$16 sps:$4 sm:$0xff]   ;;  %v5154_v57 = vld [vmem:[#allocation10 + $0xc] ss:$16 sps:$4 sm:$0xff]  }
 0x6b6   :  { %v2487_v12 = vpop.f32.mrf.mxu0  ;;  %v2528_v15 = vpop.f32.mrf.mxu1  ;;  %v6171_v25 = vld [vmem:[#allocation11 + $0xac] ss:$16 sps:$4 sm:$0xff]  }
 0x6b7   :  { %v2533_v10 = vmul.f32 0.5, %v2486_v62  ;;  %v2488_v14 = vadd.f32 %v2487_v12, %v2288_v8  ;;  %v2529_v22 = vadd.f32 %v2528_v15, %v2290_v17  ;;  %v2535_v27 = vmul.f32 0.5, %v2527_v26  ;;  %v5149_v62 = vld [vmem:[#allocation10] ss:$16 sps:$4 sm:$0xff]   ;;  %v5152_v8 = vld [vmem:[#allocation10 + $0x8] ss:$16 sps:$4 sm:$0xff]  }
 0x6b8   :  { %v2489_v18 = vpop.f32.mrf.mxu0  ;;  %v2530_v20 = vpop.f32.mrf.mxu1  ;;  %v5155_v12 = vld [vmem:[#allocation3] sm:$0xff]   ;;  %v5156_v15 = vld [vmem:[#allocation3 + $0x8] sm:$0xff]  }
 0x6b9   :  { %5275 = vtanh.f32 %v2533_v10  ;;  %v2534_v21 = vmul.f32 0.5, %v2488_v14  ;;  %v5157_v10 = vld [vmem:[#allocation3 + $0x10] sm:$0xff]   ;;  %v6145_v14 = vld [vmem:[#allocation11 + $0xe4] ss:$16 sps:$4 sm:$0xff]   ;;  %v6149_v17 = vld [vmem:[#allocation11 + $0xe0] ss:$16 sps:$4 sm:$0xff]  }
 0x6ba   :  { %v2490_v23 = vpop.f32.mrf.mxu0  ;;  %v2531_v24 = vpop.f32.mrf.mxu1  ;;  %v6151_v18 = vld [vmem:[#allocation11 + $0xe8] ss:$16 sps:$4 sm:$0xff]   ;;  %v6157_v20 = vld [vmem:[#allocation11 + $0xc4] ss:$16 sps:$4 sm:$0xff]   ;;  %v6173_v26 = vld [vmem:[#allocation11 + $0xa0] ss:$16 sps:$4 sm:$0xff]  }
 0x6bb   :  { %5277 = vtanh.f32 %v2534_v21  ;;  %v6159_v21 = vld [vmem:[#allocation11 + $0xcc] ss:$16 sps:$4 sm:$0xff]   ;;  %v6163_v23 = vld [vmem:[#allocation11 + $0xc8] ss:$16 sps:$4 sm:$0xff]   ;;  %v6169_v24 = vld [vmem:[#allocation11 + $0xa4] ss:$16 sps:$4 sm:$0xff]  }
 0x6bc   :  { %5279 = vtanh.f32 %v2529_v22  ;;  %v6161_v22 = vld [vmem:[#allocation11 + $0xc0] ss:$16 sps:$4 sm:$0xff]  }
 0x6bd   :  { %5281 = vtanh.f32 %v2535_v27  ;;  %v6175_v27 = vld [vmem:[#allocation11 + $0xa8] ss:$16 sps:$4 sm:$0xff]  }
 0x6c6   :  { %v5276_v7 = vpop.eup %5275 }
 0x6c7   :  { %v2539_v28 = vadd.f32 1.0, %v5276_v7  ;;  %v6181_v7 = vld [vmem:[#allocation11 + $0x84] ss:$16 sps:$4 sm:$0xff]  }
 0x6c8   :  { %v5278_v30 = vpop.eup %5277 }
 0x6c9   :  { %v2542_v46 = vmul.f32 0.5, %v2539_v28  ;;  %v2540_v56 = vadd.f32 1.0, %v5278_v30  ;;  %v5280_v19 = vpop.eup %5279  ;;  %v6183_v28 = vld [vmem:[#allocation11 + $0x8c] ss:$16 sps:$4 sm:$0xff]   ;;  %v6185_v30 = vld [vmem:[#allocation11 + $0x80] ss:$16 sps:$4 sm:$0xff]  }
 0x6ca   :  { %v5282_v5 = vpop.eup %5281 }
 0x6cb   :  { %v2543_v61 = vmul.f32 0.5, %v2540_v56  ;;  %v2547_v9 = vmul.f32 %v5280_v19, %v2542_v46  ;;  %v2541_v4 = vadd.f32 1.0, %v5282_v5  ;;  %v6187_v46 = vld [vmem:[#allocation11 + $0x88] ss:$16 sps:$4 sm:$0xff]   ;;  %v6193_v56 = vld [vmem:[#allocation11 + $0x64] ss:$16 sps:$4 sm:$0xff]  }
 0x6cc   :  { %v6195_v19 = vld [vmem:[#allocation11 + $0x6c] ss:$16 sps:$4 sm:$0xff]  }
 0x6cd   :  { %v2546_v59 = vmul.f32 %v2543_v61, %v6100_v44  ;;  %v2544_v31 = vmul.f32 0.5, %v2541_v4  ;;  %v5119_v44 = vld [vmem:[#allocation10 + $0xa0] ss:$16 sps:$4 sm:$0xff]   ;;  %v6207_v5 = vld [vmem:[#allocation11 + $0x4c] ss:$16 sps:$4 sm:$0xff]  }
 0x6ce   :  { %v6197_v61 = vld [vmem:[#allocation11 + $0x60] ss:$16 sps:$4 sm:$0xff]  }
 0x6cf   :  { %v6134_v48 = vadd.f32 %v2547_v9, %v2546_v59  ;;  %v6199_v9 = vld [vmem:[#allocation11 + $0x68] ss:$16 sps:$4 sm:$0xff]   ;;  %v6205_v59 = vld [vmem:[#allocation11 + $0x44] ss:$16 sps:$4 sm:$0xff]   ;;  %v6209_v4 = vld [vmem:[#allocation11 + $0x40] ss:$16 sps:$4 sm:$0xff]  }
 0x6d1   :  { %5283 = vtanh.f32 %v6134_v48 }
 0x6de   :  { %v5284_v32 = vpop.eup %5283 }
 0x6df   :  { %v2550_v55 = vmul.f32 %v5284_v32, %v2544_v31  ;;  %v6211_v31 = vld [vmem:[#allocation11 + $0x48] ss:$16 sps:$4 sm:$0xff]   ;;  %v6217_v32 = vld [vmem:[#allocation11 + $0x24] ss:$16 sps:$4 sm:$0xff]  }
 0x6e1   :  { %v2551_v38 = vpack.c.bf16 %v2550_v55, %v2550_v55  ;;  %v6219_v55 = vld [vmem:[#allocation11 + $0x2c] ss:$16 sps:$4 sm:$0xff]  }
 0x6e3   :  { %2553 = vst [vmem:[#allocation3 + $0x18] sm:$0xf] %v2551_v38  ;;  %2786 = vmatmul.mubr.bf16.vlgmr.msra.gmra.mxu0 %v2551_v38  ;;  %2827 = vmatmul.mubr.bf16.vlgmr.msra.gmra.mxu1 %v2551_v38  ;;  %v6225_v38 = vld [vmem:[#allocation11 + $0x4] ss:$16 sps:$4 sm:$0xff]  }
 0x6e4   :  { %3105 = vmatpush1.bf16.msra.mxu0 %v5107_v34  ;;  %3178 = vmatpush1.bf16.msra.mxu1 %v5110_v35  ;;  %v6221_v34 = vld [vmem:[#allocation11 + $0x20] ss:$16 sps:$4 sm:$0xff]   ;;  %v6223_v35 = vld [vmem:[#allocation11 + $0x28] ss:$16 sps:$4 sm:$0xff]  }
 0x6e5   :  { %3106 = vmatprep.subr.bf16.mxu0 %v5115_v39  ;;  %3179 = vmatprep.subr.bf16.mxu1 %v5118_v29  ;;  %v6227_v39 = vld [vmem:[#allocation11 + $0xc] ss:$16 sps:$4 sm:$0xff]   ;;  %v6233_v29 = vld [vmem:[#allocation11] ss:$16 sps:$4 sm:$0xff]  }
 0x6e6   :  { %3136 = vmatprep.mubr.bf16.mxu0 %v6764_v36  ;;  %3209 = vmatprep.mubr.bf16.mxu1 %v6764_v36 }
 0x6e8   :  { %3107 = vmatpush1.bf16.msra.mxu0 %v5113_v33  ;;  %3180 = vmatpush1.bf16.msra.mxu1 %v5116_v40  ;;  %v6235_v33 = vld [vmem:[#allocation11 + $0x8] ss:$16 sps:$4 sm:$0xff]   ;;  %v2589_v40 = vunpack.c.l.bf16 %v5824_v11 }
 0x6e9   :  { %3108 = vmatprep.subr.bf16.mxu0 %v5121_v41  ;;  %3181 = vmatprep.subr.bf16.mxu1 %v5124_v42 }
 0x6ec   :  { %3109 = vmatpush1.bf16.msra.mxu0 %v5119_v44  ;;  %3182 = vmatpush1.bf16.msra.mxu1 %v5122_v3  ;;  %v2590_v3 = vunpack.c.h.bf16 %v5824_v11 }
 0x6ed   :  { %3110 = vmatprep.subr.bf16.mxu0 %v5127_v43  ;;  %3183 = vmatprep.subr.bf16.mxu1 %v5130_v60 }
 0x6f0   :  { %3111 = vmatpush1.bf16.msra.mxu0 %v5125_v13  ;;  %3184 = vmatpush1.bf16.msra.mxu1 %v5128_v45 }
 0x6f1   :  { %3112 = vmatprep.subr.bf16.mxu0 %v5133_v52  ;;  %3185 = vmatprep.subr.bf16.mxu1 %v5136_v63  ;;  %v2592_v52 = vunpack.c.h.bf16 %v5826_v50 }
 0x6f4   :  { %3113 = vmatpush1.bf16.msra.mxu0 %v5131_v49  ;;  %3186 = vmatpush1.bf16.msra.mxu1 %v5134_v53 }
 0x6f5   :  { %3114 = vmatprep.subr.bf16.mxu0 %v5139_v6  ;;  %3187 = vmatprep.subr.bf16.mxu1 %v5142_v51 }
 0x6f8   :  { %3115 = vmatpush1.bf16.msra.mxu0 %v5137_v37  ;;  %3188 = vmatpush1.bf16.msra.mxu1 %v5140_v0  ;;  %v2591_v0 = vunpack.c.l.bf16 %v5826_v50  ;;  %v2898_v50 = vld [vmem:[%s6737_s6] sm:$0xf] }
 0x6f9   :  { %3116 = vmatprep.subr.bf16.mxu0 %v5145_v2  ;;  %3189 = vmatprep.subr.bf16.mxu1 %v5148_v54 }
 0x6fc   :  { %3117 = vmatpush1.bf16.msra.mxu0 %v5143_v58  ;;  %3190 = vmatpush1.bf16.msra.mxu1 %v5146_v47 }
 0x6fd   :  { %3118 = vmatprep.subr.bf16.mxu0 %v5151_v1  ;;  %3191 = vmatprep.subr.bf16.mxu1 %v5154_v57 }
 0x700   :  { %3119 = vmatpush1.bf16.msra.mxu0 %v5149_v62  ;;  %3192 = vmatpush1.bf16.msra.mxu1 %v5152_v8 }
 0x701   :  { %3564 = vmatprep.subr.bf16.mxu0 %v6145_v14  ;;  %3605 = vmatprep.subr.bf16.mxu1 %v6147_v16 }
 0x703   :  { %3137 = vmatmul.mubr.bf16.vlgmr.msra.gmra.mxu0 %v5155_v12  ;;  %3210 = vmatmul.mubr.bf16.vlgmr.msra.gmra.mxu1 %v5155_v12 }
 0x704   :  { %3146 = vmatprep.mubr.bf16.mxu0 %v6764_v36  ;;  %3219 = vmatprep.mubr.bf16.mxu1 %v6764_v36 }
 0x705   :  { %3565 = vmatpush1.bf16.msra.mxu0 %v6149_v17  ;;  %3606 = vmatpush1.bf16.msra.mxu1 %v6151_v18 }
 0x706   :  { %3566 = vmatprep.subr.bf16.mxu0 %v6157_v20  ;;  %3607 = vmatprep.subr.bf16.mxu1 %v6159_v21 }
 0x709   :  { %3567 = vmatpush1.bf16.msra.mxu0 %v6161_v22  ;;  %3608 = vmatpush1.bf16.msra.mxu1 %v6163_v23 }
 0x70a   :  { %3568 = vmatprep.subr.bf16.mxu0 %v6169_v24  ;;  %3609 = vmatprep.subr.bf16.mxu1 %v6171_v25 }
 0x70b   :  { %3147 = vmatmul.mubr.bf16.gmra.mxu0 %v5156_v15  ;;  %3220 = vmatmul.mubr.bf16.gmra.mxu1 %v5156_v15 }
 0x70c   :  { %3156 = vmatprep.mubr.bf16.mxu0 %v6764_v36  ;;  %3229 = vmatprep.mubr.bf16.mxu1 %v6764_v36 }
 0x70d   :  { %3569 = vmatpush1.bf16.msra.mxu0 %v6173_v26  ;;  %3610 = vmatpush1.bf16.msra.mxu1 %v6175_v27 }
 0x70e   :  { %3570 = vmatprep.subr.bf16.mxu0 %v6181_v7  ;;  %3611 = vmatprep.subr.bf16.mxu1 %v6183_v28 }
 0x711   :  { %3571 = vmatpush1.bf16.msra.mxu0 %v6185_v30  ;;  %3612 = vmatpush1.bf16.msra.mxu1 %v6187_v46 }
 0x712   :  { %3572 = vmatprep.subr.bf16.mxu0 %v6193_v56  ;;  %3613 = vmatprep.subr.bf16.mxu1 %v6195_v19 }
 0x713   :  { %3157 = vmatmul.mubr.bf16.gmra.mxu0 %v5157_v10  ;;  %3230 = vmatmul.mubr.bf16.gmra.mxu1 %v5157_v10 }
 0x714   :  { %3166 = vmatprep.mubr.bf16.mxu0 %v6764_v36  ;;  %3239 = vmatprep.mubr.bf16.mxu1 %v6764_v36 }
 0x715   :  { %3573 = vmatpush1.bf16.msra.mxu0 %v6197_v61  ;;  %3614 = vmatpush1.bf16.msra.mxu1 %v6199_v9 }
 0x716   :  { %3574 = vmatprep.subr.bf16.mxu0 %v6205_v59  ;;  %3615 = vmatprep.subr.bf16.mxu1 %v6207_v5 }
 0x719   :  { %3575 = vmatpush1.bf16.msra.mxu0 %v6209_v4  ;;  %3616 = vmatpush1.bf16.msra.mxu1 %v6211_v31 }
 0x71a   :  { %3576 = vmatprep.subr.bf16.mxu0 %v6217_v32  ;;  %3617 = vmatprep.subr.bf16.mxu1 %v6219_v55 }
 0x71d   :  { %3577 = vmatpush1.bf16.msra.mxu0 %v6221_v34  ;;  %3618 = vmatpush1.bf16.msra.mxu1 %v6223_v35 }
 0x71e   :  { %3578 = vmatprep.subr.bf16.mxu0 %v6225_v38  ;;  %3619 = vmatprep.subr.bf16.mxu1 %v6227_v39 }
 0x721   :  { %3579 = vmatpush1.bf16.msra.mxu0 %v6233_v29  ;;  %3620 = vmatpush1.bf16.msra.mxu1 %v6235_v33 }
 0x722   :  { %3671 = vmatprep.subr.bf16.mxu0 %v6145_v14  ;;  %3712 = vmatprep.subr.bf16.mxu1 %v6147_v16 }
 0x7a3   :  { %v2787_v41 = vpop.f32.mrf.mxu0  ;;  %v2828_v42 = vpop.f32.mrf.mxu1 }
 0x7a4   :  { %v2788_v44 = vadd.f32 %v2787_v41, %v2589_v40  ;;  %v2829_v2 = vadd.f32 %v2828_v42, %v2591_v0 }
 0x7a5   :  { %v2789_v43 = vpop.f32.mrf.mxu0  ;;  %v2830_v60 = vpop.f32.mrf.mxu1 }
 0x7a6   :  { %v2835_v13 = vmul.f32 0.5, %v2788_v44  ;;  %v2790_v45 = vadd.f32 %v2789_v43, %v2590_v3  ;;  %v2831_v6 = vadd.f32 %v2830_v60, %v2592_v52  ;;  %v2837_v54 = vmul.f32 0.5, %v2829_v2  ;;  %v6768_v43 = vld [vmem:[#allocation16_spill] sm:$0xff] }
 0x7a7   :  { %v2791_v63 = vpop.f32.mrf.mxu0  ;;  %v2832_v49 = vpop.f32.mrf.mxu1  ;;  %v6769_v60 = vsub.s32 0, %v6768_v43 }
 0x7a8   :  { %5285 = vtanh.f32 %v2835_v13  ;;  %v2836_v53 = vmul.f32 0.5, %v2790_v45  ;;  %v6771_v63 = vsub.s32 2, %v6768_v43 }
 0x7a9   :  { %v2792_v51 = vpop.f32.mrf.mxu0  ;;  %v2833_v37 = vpop.f32.mrf.mxu1  ;;  %v6261_v13 = vrot.slane %v2898_v50, %v6769_v60 }
 0x7aa   :  { %5287 = vtanh.f32 %v2836_v53  ;;  %v6265_v49 = vrot.slane %v2898_v50, %v6771_v63  ;;  %v6773_v53 = vsub.s32 1, %v6768_v43  ;;  %v6774_v51 = vsub.s32 3, %v6768_v43 }
 0x7ab   :  { %5289 = vtanh.f32 %v2831_v6  ;;  %6770 = vst [vmem:[#allocation17_spill] sm:$0xff] %v6261_v13 }
 0x7ac   :  { %5291 = vtanh.f32 %v2837_v54  ;;  %6772 = vst [vmem:[#allocation18_spill] sm:$0xff] %v6265_v49  ;;  %v6269_v6 = vrot.slane %v2898_v50, %v6773_v53  ;;  %v6273_v37 = vrot.slane %v2898_v50, %v6774_v51 }
 0x7b5   :  { %v5286_v11 = vpop.eup %5285 }
 0x7b6   :  { %v2841_v58 = vadd.f32 1.0, %v5286_v11 }
 0x7b7   :  { %v5288_v47 = vpop.eup %5287 }
 0x7b8   :  { %v2844_v1 = vmul.f32 0.5, %v2841_v58  ;;  %v2842_v57 = vadd.f32 1.0, %v5288_v47  ;;  %v5290_v62 = vpop.eup %5289 }
 0x7b9   :  { %v5292_v42 = vpop.eup %5291 }
 0x7ba   :  { %v2845_v8 = vmul.f32 0.5, %v2842_v57  ;;  %v2849_v12 = vmul.f32 %v5290_v62, %v2844_v1  ;;  %v2843_v52 = vadd.f32 1.0, %v5292_v42 }
 0x7bc   :  { %v2848_v15 = vmul.f32 %v2845_v8, %v6134_v48  ;;  %v2846_v62 = vmul.f32 0.5, %v2843_v52 }
 0x7be   :  { %v2850_v10 = vadd.f32 %v2849_v12, %v2848_v15 }
 0x7c0   :  { %5293 = vtanh.f32 %v2850_v10 }
 0x7c3   :  { %v6248_v40 = vpop.f32.mrf.mxu0  ;;  %v6250_v41 = vpop.f32.mrf.mxu1 }
 0x7c5   :  { %v6255_v44 = vpop.f32.mrf.mxu0  ;;  %v6257_v3 = vpop.f32.mrf.mxu1 }
 0x7c7   :  { %v3142_v48 = vpop.f32.mrf.mxu0  ;;  %v3215_v45 = vpop.f32.mrf.mxu1 }
 0x7c8   :  { %v3143_v54 = vadd.f32 %v3142_v48, %v6261_v13  ;;  %v3216_v11 = vadd.f32 %v3215_v45, %v6265_v49 }
 0x7c9   :  { %v3144_v0 = vpop.f32.mrf.mxu0  ;;  %v3217_v2 = vpop.f32.mrf.mxu1 }
 0x7ca   :  { %v3145_v58 = vadd.f32 %v3144_v0, %v6269_v6  ;;  %v3218_v47 = vadd.f32 %v3217_v2, %v6273_v37 }
 0x7cb   :  { %v3148_v1 = vpop.f32.mrf.mxu0  ;;  %v3221_v57 = vpop.f32.mrf.mxu1 }
 0x7cc   :  { %v6279_v8 = vpack.c.bf16 %v3145_v58, %v3143_v54  ;;  %v6281_v12 = vpack.c.bf16 %v3218_v47, %v3216_v11  ;;  %v3149_v10 = vadd.f32 %v3148_v1, %v6261_v13  ;;  %v3222_v60 = vadd.f32 %v3221_v57, %v6265_v49 }
 0x7cd   :  { %v5294_v15 = vpop.eup %5293  ;;  %v3150_v50 = vpop.f32.mrf.mxu0 }
 0x7ce   :  { %v3223_v42 = vpop.f32.mrf.mxu1  ;;  %v2852_v43 = vmul.f32 %v5294_v15, %v2846_v62  ;;  %v3151_v48 = vadd.f32 %v3150_v50, %v6269_v6 }
 0x7cf   :  { %v3224_v45 = vadd.f32 %v3223_v42, %v6273_v37  ;;  %v3152_v63 = vpop.f32.mrf.mxu0 }
 0x7d0   :  { %v3225_v53 = vpop.f32.mrf.mxu1  ;;  %v2853_v51 = vpack.c.bf16 %v2852_v43, %v2852_v43  ;;  %v6287_v52 = vpack.c.bf16 %v3151_v48, %v3149_v10  ;;  %v3153_v11 = vadd.f32 %v3152_v63, %v6261_v13 }
 0x7d1   :  { %v6289_v0 = vpack.c.bf16 %v3224_v45, %v3222_v60  ;;  %v3154_v2 = vpop.f32.mrf.mxu0  ;;  %v3226_v58 = vadd.f32 %v3225_v53, %v6265_v49 }
 0x7d2   :  { %v3227_v54 = vpop.f32.mrf.mxu1  ;;  %2855 = vst [vmem:[#allocation3 + $0x1c] sm:$0xf] %v2853_v51  ;;  %2856 = vst [vmem:[#allocation4] sm:$0xf] %v2853_v51  ;;  %v3155_v47 = vadd.f32 %v3154_v2, %v6269_v6  ;;  %v3363_v2 = vld [vmem:[#allocation4 + $0x4] sm:$0xf] }
 0x7d3   :  { %v3228_v1 = vadd.f32 %v3227_v54, %v6273_v37  ;;  %v3158_v57 = vpop.f32.mrf.mxu0 }
 0x7d4   :  { %v3231_v62 = vpop.f32.mrf.mxu1  ;;  %v6295_v15 = vpack.c.bf16 %v3155_v47, %v3153_v11  ;;  %v3159_v43 = vadd.f32 %v3158_v57, %v6261_v13  ;;  %v3139_v57 = vadd.f32 %v6248_v40, %v6261_v13 }
 0x7d5   :  { %v6297_v10 = vpack.c.bf16 %v3228_v1, %v3226_v58  ;;  %v3160_v50 = vpop.f32.mrf.mxu0  ;;  %v3232_v60 = vadd.f32 %v3231_v62, %v6265_v49  ;;  %v3141_v58 = vadd.f32 %v6255_v44, %v6269_v6 }
 0x7d6   :  { %6775 = vst [vmem:[#allocation19_spill] sm:$0xff] %v6295_v15  ;;  %v3233_v42 = vpop.f32.mrf.mxu1  ;;  %v3161_v48 = vadd.f32 %v3160_v50, %v6269_v6 }
 0x7d7   :  { %6776 = vst [vmem:[#allocation16_spill] sm:$0xff] %v6297_v10  ;;  %v3234_v45 = vadd.f32 %v3233_v42, %v6273_v37  ;;  %v6343_v54 = vpop.f32.mrf.mxu0  ;;  %v4937_v42 = vpack.c.bf16 %v3141_v58, %v3139_v57  ;;  %v3212_v58 = vadd.f32 %v6250_v41, %v6265_v49 }
 0x7d8   :  { %v6303_v63 = vpack.c.bf16 %v3161_v48, %v3159_v43  ;;  %6779 = vst [vmem:[#allocation22_spill] sm:$0xff] %v6343_v54  ;;  %v6345_v11 = vpop.f32.mrf.mxu1 }
 0x7d9   :  { %v6305_v53 = vpack.c.bf16 %v3234_v45, %v3232_v60  ;;  %v5194_v51 = vld [vmem:[#allocation3 + $0x18] sm:$0xff]   ;;  %6780 = vst [vmem:[#allocation23_spill] sm:$0xff] %v6345_v11  ;;  %v6349_v47 = vpop.f32.mrf.mxu0  ;;  %v3401_v41 = vunpack.c.h.bf16 %v4937_v42 }
 0x7da   :  { %6777 = vst [vmem:[#allocation20_spill] sm:$0xff] %v6303_v63  ;;  %3167 = vmatmul.mubr.bf16.gmra.mxu0 %v5194_v51  ;;  %3240 = vmatmul.mubr.bf16.gmra.mxu1 %v5194_v51  ;;  %6781 = vst [vmem:[#allocation24_spill] sm:$0xff] %v6349_v47  ;;  %v6351_v1 = vpop.f32.mrf.mxu1  ;;  %v3400_v47 = vunpack.c.l.bf16 %v4937_v42 }
 0x7db   :  { %6778 = vst [vmem:[#allocation21_spill] sm:$0xff] %v6305_v53  ;;  %3596 = vmatprep.mubr.bf16.mxu0 %v6764_v36  ;;  %3637 = vmatprep.mubr.bf16.mxu1 %v6764_v36  ;;  %6782 = vst [vmem:[#allocation25_spill] sm:$0xff] %v6351_v1 }
 0x7e2   :  { %3597 = vmatmul.mubr.bf16.vlgmr.msra.gmra.mxu0 %v3363_v2  ;;  %3638 = vmatmul.mubr.bf16.vlgmr.msra.gmra.mxu1 %v3363_v2  ;;  %v3214_v2 = vadd.f32 %v6257_v3, %v6273_v37 }
 0x7e3   :  { %3672 = vmatpush1.bf16.msra.mxu0 %v6149_v17  ;;  %3713 = vmatpush1.bf16.msra.mxu1 %v6151_v18 }
 0x7e4   :  { %3673 = vmatprep.subr.bf16.mxu0 %v6157_v20  ;;  %3714 = vmatprep.subr.bf16.mxu1 %v6159_v21  ;;  %v4938_v53 = vpack.c.bf16 %v3214_v2, %v3212_v58 }
 0x7e5   :  { %3703 = vmatprep.mubr.bf16.mxu0 %v6764_v36  ;;  %3744 = vmatprep.mubr.bf16.mxu1 %v6764_v36 }
 0x7e6   :  { %v3402_v58 = vunpack.c.l.bf16 %v4938_v53 }
 0x7e7   :  { %3674 = vmatpush1.bf16.msra.mxu0 %v6161_v22  ;;  %3715 = vmatpush1.bf16.msra.mxu1 %v6163_v23 }
 0x7e8   :  { %3675 = vmatprep.subr.bf16.mxu0 %v6169_v24  ;;  %3716 = vmatprep.subr.bf16.mxu1 %v6171_v25 }
 0x7eb   :  { %3676 = vmatpush1.bf16.msra.mxu0 %v6173_v26  ;;  %3717 = vmatpush1.bf16.msra.mxu1 %v6175_v27 }
 0x7ec   :  { %3677 = vmatprep.subr.bf16.mxu0 %v6181_v7  ;;  %3718 = vmatprep.subr.bf16.mxu1 %v6183_v28 }
 0x7ef   :  { %3678 = vmatpush1.bf16.msra.mxu0 %v6185_v30  ;;  %3719 = vmatpush1.bf16.msra.mxu1 %v6187_v46 }
 0x7f0   :  { %3679 = vmatprep.subr.bf16.mxu0 %v6193_v56  ;;  %3720 = vmatprep.subr.bf16.mxu1 %v6195_v19 }
 0x7f3   :  { %3680 = vmatpush1.bf16.msra.mxu0 %v6197_v61  ;;  %3721 = vmatpush1.bf16.msra.mxu1 %v6199_v9 }
 0x7f4   :  { %3681 = vmatprep.subr.bf16.mxu0 %v6205_v59  ;;  %3722 = vmatprep.subr.bf16.mxu1 %v6207_v5 }
 0x7f7   :  { %3682 = vmatpush1.bf16.msra.mxu0 %v6209_v4  ;;  %3723 = vmatpush1.bf16.msra.mxu1 %v6211_v31 }
 0x7f8   :  { %3683 = vmatprep.subr.bf16.mxu0 %v6217_v32  ;;  %3724 = vmatprep.subr.bf16.mxu1 %v6219_v55 }
 0x7fb   :  { %3684 = vmatpush1.bf16.msra.mxu0 %v6221_v34  ;;  %3725 = vmatpush1.bf16.msra.mxu1 %v6223_v35 }
 0x7fc   :  { %3685 = vmatprep.subr.bf16.mxu0 %v6225_v38  ;;  %3726 = vmatprep.subr.bf16.mxu1 %v6227_v39 }
 0x7ff   :  { %3686 = vmatpush1.bf16.msra.mxu0 %v6233_v29  ;;  %3727 = vmatpush1.bf16.msra.mxu1 %v6235_v33 }
 0x800   :  { %3778 = vmatprep.subr.bf16.mxu0 %v6145_v14  ;;  %3819 = vmatprep.subr.bf16.mxu1 %v6147_v16 }
 0x89a   :  { %v3168_v62 = vpop.f32.mrf.mxu0  ;;  %v3241_v50 = vpop.f32.mrf.mxu1 }
 0x89b   :  { %v3169_v48 = vadd.f32 %v3168_v62, %v6261_v13  ;;  %v3242_v45 = vadd.f32 %v3241_v50, %v6265_v49 }
 0x89c   :  { %v3170_v43 = vpop.f32.mrf.mxu0  ;;  %v3243_v60 = vpop.f32.mrf.mxu1 }
 0x89d   :  { %v3171_v51 = vadd.f32 %v3170_v43, %v6269_v6  ;;  %v3244_v44 = vadd.f32 %v3243_v60, %v6273_v37 }
 0x89e   :  { %v3172_v11 = vpop.f32.mrf.mxu0  ;;  %v3245_v1 = vpop.f32.mrf.mxu1 }
 0x89f   :  { %v6361_v54 = vpack.c.bf16 %v3171_v51, %v3169_v48  ;;  %v6363_v40 = vpack.c.bf16 %v3244_v44, %v3242_v45  ;;  %v3173_v50 = vadd.f32 %v3172_v11, %v6261_v13  ;;  %v3246_v43 = vadd.f32 %v3245_v1, %v6265_v49 }
 0x8a0   :  { %v3174_v57 = vpop.f32.mrf.mxu0  ;;  %v3247_v62 = vpop.f32.mrf.mxu1 }
 0x8a1   :  { %6783 = vst [vmem:[#allocation26_spill] sm:$0xff] %v6361_v54  ;;  %6784 = vst [vmem:[#allocation27_spill] sm:$0xff] %v6363_v40  ;;  %v3175_v60 = vadd.f32 %v3174_v57, %v6269_v6  ;;  %v3248_v3 = vadd.f32 %v3247_v62, %v6273_v37  ;;  %v3403_v57 = vunpack.c.h.bf16 %v4938_v53 }
 0x8a2   :  { %v3598_v63 = vpop.f32.mrf.mxu0  ;;  %v3639_v48 = vpop.f32.mrf.mxu1 }
 0x8a3   :  { %v6371_v51 = vpack.c.bf16 %v3175_v60, %v3173_v50  ;;  %v6373_v45 = vpack.c.bf16 %v3248_v3, %v3246_v43  ;;  %v3599_v44 = vadd.f32 %v3598_v63, %v3400_v47  ;;  %v3640_v50 = vadd.f32 %v3639_v48, %v3402_v58 }
 0x8a4   :  { %v3600_v40 = vpop.f32.mrf.mxu0  ;;  %v3641_v54 = vpop.f32.mrf.mxu1  ;;  %v3668_v58 = vunpack.c.h.bf16 %v6279_v8 }
 0x8a5   :  { %v3646_v10 = vmul.f32 0.5, %v3599_v44  ;;  %v3601_v15 = vadd.f32 %v3600_v40, %v3401_v41  ;;  %v3642_v2 = vadd.f32 %v3641_v54, %v3403_v57  ;;  %v3648_v43 = vmul.f32 0.5, %v3640_v50 }
 0x8a6   :  { %v3602_v11 = vpop.f32.mrf.mxu0  ;;  %v3643_v13 = vpop.f32.mrf.mxu1 }
 0x8a7   :  { %5295 = vtanh.f32 %v3646_v10  ;;  %v3647_v1 = vmul.f32 0.5, %v3601_v15 }
 0x8a8   :  { %v3603_v49 = vpop.f32.mrf.mxu0  ;;  %v3644_v62 = vpop.f32.mrf.mxu1 }
 0x8a9   :  { %5297 = vtanh.f32 %v3647_v1  ;;  %v3667_v1 = vunpack.c.l.bf16 %v6279_v8 }
 0x8aa   :  { %5299 = vtanh.f32 %v3642_v2 }
 0x8ab   :  { %5301 = vtanh.f32 %v3648_v43 }
 0x8b4   :  { %v5296_v60 = vpop.eup %5295 }
 0x8b5   :  { %v3652_v63 = vadd.f32 1.0, %v5296_v60 }
 0x8b6   :  { %v5298_v47 = vpop.eup %5297 }
 0x8b7   :  { %v3655_v42 = vmul.f32 0.5, %v3652_v63  ;;  %v3653_v3 = vadd.f32 1.0, %v5298_v47  ;;  %v5300_v44 = vpop.eup %5299  ;;  %v3670_v47 = vunpack.c.h.bf16 %v6281_v12 }
 0x8b8   :  { %v5302_v49 = vpop.eup %5301 }
 0x8b9   :  { %v3656_v40 = vmul.f32 0.5, %v3653_v3  ;;  %v3660_v10 = vmul.f32 %v5300_v44, %v3655_v42  ;;  %v3654_v54 = vadd.f32 1.0, %v5302_v49  ;;  %v3669_v49 = vunpack.c.l.bf16 %v6281_v12 }
 0x8bb   :  { %v3659_v13 = vmul.f32 0.0, %v3656_v40  ;;  %v3657_v53 = vmul.f32 0.5, %v3654_v54 }
 0x8bd   :  { %v6375_v15 = vadd.f32 %v3660_v10, %v3659_v13 }
 0x8bf   :  { %5303 = vtanh.f32 %v6375_v15 }
 0x8cc   :  { %v5304_v41 = vpop.eup %5303 }
 0x8cd   :  { %v3663_v48 = vmul.f32 %v5304_v41, %v3657_v53 }
 0x8cf   :  { %v3664_v11 = vpack.c.bf16 %v3663_v48, %v3663_v48 }
 0x8d1   :  { %3704 = vmatmul.mubr.bf16.vlgmr.msra.gmra.mxu0 %v3664_v11  ;;  %3745 = vmatmul.mubr.bf16.vlgmr.msra.gmra.mxu1 %v3664_v11 }
 0x8d2   :  { %3779 = vmatpush1.bf16.msra.mxu0 %v6149_v17  ;;  %3820 = vmatpush1.bf16.msra.mxu1 %v6151_v18 }
 0x8d3   :  { %3780 = vmatprep.subr.bf16.mxu0 %v6157_v20  ;;  %3821 = vmatprep.subr.bf16.mxu1 %v6159_v21 }
 0x8d4   :  { %3810 = vmatprep.mubr.bf16.mxu0 %v6764_v36  ;;  %3851 = vmatprep.mubr.bf16.mxu1 %v6764_v36 }
 0x8d6   :  { %3781 = vmatpush1.bf16.msra.mxu0 %v6161_v22  ;;  %3822 = vmatpush1.bf16.msra.mxu1 %v6163_v23 }
 0x8d7   :  { %3782 = vmatprep.subr.bf16.mxu0 %v6169_v24  ;;  %3823 = vmatprep.subr.bf16.mxu1 %v6171_v25 }
 0x8da   :  { %3783 = vmatpush1.bf16.msra.mxu0 %v6173_v26  ;;  %3824 = vmatpush1.bf16.msra.mxu1 %v6175_v27 }
 0x8db   :  { %3784 = vmatprep.subr.bf16.mxu0 %v6181_v7  ;;  %3825 = vmatprep.subr.bf16.mxu1 %v6183_v28 }
 0x8de   :  { %3785 = vmatpush1.bf16.msra.mxu0 %v6185_v30  ;;  %3826 = vmatpush1.bf16.msra.mxu1 %v6187_v46 }
 0x8df   :  { %3786 = vmatprep.subr.bf16.mxu0 %v6193_v56  ;;  %3827 = vmatprep.subr.bf16.mxu1 %v6195_v19 }
 0x8e2   :  { %3787 = vmatpush1.bf16.msra.mxu0 %v6197_v61  ;;  %3828 = vmatpush1.bf16.msra.mxu1 %v6199_v9 }
 0x8e3   :  { %3788 = vmatprep.subr.bf16.mxu0 %v6205_v59  ;;  %3829 = vmatprep.subr.bf16.mxu1 %v6207_v5 }
 0x8e6   :  { %3789 = vmatpush1.bf16.msra.mxu0 %v6209_v4  ;;  %3830 = vmatpush1.bf16.msra.mxu1 %v6211_v31 }
 0x8e7   :  { %3790 = vmatprep.subr.bf16.mxu0 %v6217_v32  ;;  %3831 = vmatprep.subr.bf16.mxu1 %v6219_v55 }
 0x8ea   :  { %3791 = vmatpush1.bf16.msra.mxu0 %v6221_v34  ;;  %3832 = vmatpush1.bf16.msra.mxu1 %v6223_v35 }
 0x8eb   :  { %3792 = vmatprep.subr.bf16.mxu0 %v6225_v38  ;;  %3833 = vmatprep.subr.bf16.mxu1 %v6227_v39 }
 0x8ee   :  { %3793 = vmatpush1.bf16.msra.mxu0 %v6233_v29  ;;  %3834 = vmatpush1.bf16.msra.mxu1 %v6235_v33 }
 0x8ef   :  { %3885 = vmatprep.subr.bf16.mxu0 %v6145_v14  ;;  %3926 = vmatprep.subr.bf16.mxu1 %v6147_v16 }
 0x991   :  { %v3705_v57 = vpop.f32.mrf.mxu0  ;;  %v3746_v62 = vpop.f32.mrf.mxu1 }
 0x992   :  { %v3706_v2 = vadd.f32 %v3705_v57, %v3667_v1  ;;  %v3747_v54 = vadd.f32 %v3746_v62, %v3669_v49 }
 0x993   :  { %v3707_v50 = vpop.f32.mrf.mxu0  ;;  %v3748_v43 = vpop.f32.mrf.mxu1 }
 0x994   :  { %v3753_v60 = vmul.f32 0.5, %v3706_v2  ;;  %v3708_v63 = vadd.f32 %v3707_v50, %v3668_v58  ;;  %v3749_v44 = vadd.f32 %v3748_v43, %v3670_v47  ;;  %v3755_v53 = vmul.f32 0.5, %v3747_v54 }
 0x995   :  { %v3709_v42 = vpop.f32.mrf.mxu0  ;;  %v3750_v3 = vpop.f32.mrf.mxu1 }
 0x996   :  { %5305 = vtanh.f32 %v3753_v60  ;;  %v3754_v40 = vmul.f32 0.5, %v3708_v63 }
 0x997   :  { %v3710_v13 = vpop.f32.mrf.mxu0  ;;  %v3751_v10 = vpop.f32.mrf.mxu1 }
 0x998   :  { %5307 = vtanh.f32 %v3754_v40  ;;  %v3775_v13 = vunpack.c.h.bf16 %v6287_v52 }
 0x999   :  { %5309 = vtanh.f32 %v3749_v44 }
 0x99a   :  { %5311 = vtanh.f32 %v3755_v53 }
 0x9a3   :  { %v5306_v8 = vpop.eup %5305 }
 0x9a4   :  { %v3759_v41 = vadd.f32 1.0, %v5306_v8  ;;  %v3777_v8 = vunpack.c.h.bf16 %v6289_v0 }
 0x9a5   :  { %v5308_v48 = vpop.eup %5307 }
 0x9a6   :  { %v3762_v11 = vmul.f32 0.5, %v3759_v41  ;;  %v3760_v1 = vadd.f32 1.0, %v5308_v48  ;;  %v5310_v57 = vpop.eup %5309 }
 0x9a7   :  { %v5312_v60 = vpop.eup %5311 }
 0x9a8   :  { %v3763_v2 = vmul.f32 0.5, %v3760_v1  ;;  %v3767_v58 = vmul.f32 %v5310_v57, %v3762_v11  ;;  %v3761_v63 = vadd.f32 1.0, %v5312_v60 }
 0x9aa   :  { %v3766_v50 = vmul.f32 %v3763_v2, %v6375_v15  ;;  %v3764_v12 = vmul.f32 0.5, %v3761_v63  ;;  %v3774_v15 = vunpack.c.l.bf16 %v6287_v52 }
 0x9ac   :  { %v6417_v43 = vadd.f32 %v3767_v58, %v3766_v50  ;;  %v3776_v58 = vunpack.c.l.bf16 %v6289_v0 }
 0x9ae   :  { %5313 = vtanh.f32 %v6417_v43 }
 0x9bb   :  { %v5314_v62 = vpop.eup %5313 }
 0x9bc   :  { %v3770_v47 = vmul.f32 %v5314_v62, %v3764_v12 }
 0x9be   :  { %v3771_v42 = vpack.c.bf16 %v3770_v47, %v3770_v47 }
 0x9c0   :  { %3811 = vmatmul.mubr.bf16.vlgmr.msra.gmra.mxu0 %v3771_v42  ;;  %3852 = vmatmul.mubr.bf16.vlgmr.msra.gmra.mxu1 %v3771_v42 }
 0x9c1   :  { %3886 = vmatpush1.bf16.msra.mxu0 %v6149_v17  ;;  %3927 = vmatpush1.bf16.msra.mxu1 %v6151_v18 }
 0x9c2   :  { %3887 = vmatprep.subr.bf16.mxu0 %v6157_v20  ;;  %3928 = vmatprep.subr.bf16.mxu1 %v6159_v21 }
 0x9c3   :  { %3917 = vmatprep.mubr.bf16.mxu0 %v6764_v36  ;;  %3958 = vmatprep.mubr.bf16.mxu1 %v6764_v36 }
 0x9c5   :  { %3888 = vmatpush1.bf16.msra.mxu0 %v6161_v22  ;;  %3929 = vmatpush1.bf16.msra.mxu1 %v6163_v23 }
 0x9c6   :  { %3889 = vmatprep.subr.bf16.mxu0 %v6169_v24  ;;  %3930 = vmatprep.subr.bf16.mxu1 %v6171_v25 }
 0x9c9   :  { %3890 = vmatpush1.bf16.msra.mxu0 %v6173_v26  ;;  %3931 = vmatpush1.bf16.msra.mxu1 %v6175_v27 }
 0x9ca   :  { %3891 = vmatprep.subr.bf16.mxu0 %v6181_v7  ;;  %3932 = vmatprep.subr.bf16.mxu1 %v6183_v28 }
 0x9cd   :  { %3892 = vmatpush1.bf16.msra.mxu0 %v6185_v30  ;;  %3933 = vmatpush1.bf16.msra.mxu1 %v6187_v46 }
 0x9ce   :  { %3893 = vmatprep.subr.bf16.mxu0 %v6193_v56  ;;  %3934 = vmatprep.subr.bf16.mxu1 %v6195_v19 }
 0x9d1   :  { %3894 = vmatpush1.bf16.msra.mxu0 %v6197_v61  ;;  %3935 = vmatpush1.bf16.msra.mxu1 %v6199_v9 }
 0x9d2   :  { %3895 = vmatprep.subr.bf16.mxu0 %v6205_v59  ;;  %3936 = vmatprep.subr.bf16.mxu1 %v6207_v5 }
 0x9d5   :  { %3896 = vmatpush1.bf16.msra.mxu0 %v6209_v4  ;;  %3937 = vmatpush1.bf16.msra.mxu1 %v6211_v31 }
 0x9d6   :  { %3897 = vmatprep.subr.bf16.mxu0 %v6217_v32  ;;  %3938 = vmatprep.subr.bf16.mxu1 %v6219_v55 }
 0x9d9   :  { %3898 = vmatpush1.bf16.msra.mxu0 %v6221_v34  ;;  %3939 = vmatpush1.bf16.msra.mxu1 %v6223_v35 }
 0x9da   :  { %3899 = vmatprep.subr.bf16.mxu0 %v6225_v38  ;;  %3940 = vmatprep.subr.bf16.mxu1 %v6227_v39 }
 0x9dd   :  { %3900 = vmatpush1.bf16.msra.mxu0 %v6233_v29  ;;  %3941 = vmatpush1.bf16.msra.mxu1 %v6235_v33 }
 0x9de   :  { %3992 = vmatprep.subr.bf16.mxu0 %v6145_v14  ;;  %4033 = vmatprep.subr.bf16.mxu1 %v6147_v16 }
 0xa80   :  { %v3812_v3 = vpop.f32.mrf.mxu0  ;;  %v3853_v40 = vpop.f32.mrf.mxu1 }
 0xa81   :  { %v3813_v44 = vadd.f32 %v3812_v3, %v3774_v15  ;;  %v3854_v50 = vadd.f32 %v3853_v40, %v3776_v58 }
 0xa82   :  { %v3814_v10 = vpop.f32.mrf.mxu0  ;;  %v3855_v49 = vpop.f32.mrf.mxu1 }
 0xa83   :  { %v3860_v54 = vmul.f32 0.5, %v3813_v44  ;;  %v3815_v53 = vadd.f32 %v3814_v10, %v3775_v13  ;;  %v3856_v1 = vadd.f32 %v3855_v49, %v3777_v8  ;;  %v3862_v60 = vmul.f32 0.5, %v3854_v50 }
 0xa84   :  { %v3816_v41 = vpop.f32.mrf.mxu0  ;;  %v3857_v48 = vpop.f32.mrf.mxu1 }
 0xa85   :  { %5315 = vtanh.f32 %v3860_v54  ;;  %v3861_v11 = vmul.f32 0.5, %v3815_v53 }
 0xa86   :  { %v3817_v57 = vpop.f32.mrf.mxu0  ;;  %v3858_v2 = vpop.f32.mrf.mxu1 }
 0xa87   :  { %5317 = vtanh.f32 %v3861_v11 }
 0xa88   :  { %5319 = vtanh.f32 %v3856_v1 }
 0xa89   :  { %5321 = vtanh.f32 %v3862_v60  ;;  %v6786_v60 = vld [vmem:[#allocation16_spill] sm:$0xff] }
 0xa92   :  { %v5316_v52 = vpop.eup %5315 }
 0xa93   :  { %v3866_v63 = vadd.f32 1.0, %v5316_v52  ;;  %v3884_v52 = vunpack.c.h.bf16 %v6786_v60 }
 0xa94   :  { %v5318_v12 = vpop.eup %5317 }
 0xa95   :  { %v3869_v62 = vmul.f32 0.5, %v3866_v63  ;;  %v3867_v47 = vadd.f32 1.0, %v5318_v12  ;;  %v5320_v42 = vpop.eup %5319 }
 0xa96   :  { %v5322_v10 = vpop.eup %5321 }
 0xa97   :  { %v3870_v15 = vmul.f32 0.5, %v3867_v47  ;;  %v3874_v3 = vmul.f32 %v5320_v42, %v3869_v62  ;;  %v3868_v49 = vadd.f32 1.0, %v5322_v10  ;;  %v3883_v42 = vunpack.c.l.bf16 %v6786_v60 }
 0xa99   :  { %v3873_v44 = vmul.f32 %v3870_v15, %v6417_v43  ;;  %v3871_v0 = vmul.f32 0.5, %v3868_v49  ;;  %v6785_v43 = vld [vmem:[#allocation19_spill] sm:$0xff] }
 0xa9a   :  { %v3881_v8 = vunpack.c.l.bf16 %v6785_v43  ;;  %v3882_v1 = vunpack.c.h.bf16 %v6785_v43 }
 0xa9b   :  { %v6459_v13 = vadd.f32 %v3874_v3, %v3873_v44 }
 0xa9d   :  { %5323 = vtanh.f32 %v6459_v13 }
 0xaaa   :  { %v5324_v40 = vpop.eup %5323 }
 0xaab   :  { %v3877_v54 = vmul.f32 %v5324_v40, %v3871_v0 }
 0xaad   :  { %v3878_v53 = vpack.c.bf16 %v3877_v54, %v3877_v54 }
 0xaaf   :  { %3918 = vmatmul.mubr.bf16.vlgmr.msra.gmra.mxu0 %v3878_v53  ;;  %3959 = vmatmul.mubr.bf16.vlgmr.msra.gmra.mxu1 %v3878_v53 }
 0xab0   :  { %3993 = vmatpush1.bf16.msra.mxu0 %v6149_v17  ;;  %4034 = vmatpush1.bf16.msra.mxu1 %v6151_v18 }
 0xab1   :  { %3994 = vmatprep.subr.bf16.mxu0 %v6157_v20  ;;  %4035 = vmatprep.subr.bf16.mxu1 %v6159_v21 }
 0xab2   :  { %4024 = vmatprep.mubr.bf16.mxu0 %v6764_v36  ;;  %4065 = vmatprep.mubr.bf16.mxu1 %v6764_v36 }
 0xab4   :  { %3995 = vmatpush1.bf16.msra.mxu0 %v6161_v22  ;;  %4036 = vmatpush1.bf16.msra.mxu1 %v6163_v23 }
 0xab5   :  { %3996 = vmatprep.subr.bf16.mxu0 %v6169_v24  ;;  %4037 = vmatprep.subr.bf16.mxu1 %v6171_v25 }
 0xab8   :  { %3997 = vmatpush1.bf16.msra.mxu0 %v6173_v26  ;;  %4038 = vmatpush1.bf16.msra.mxu1 %v6175_v27 }
 0xab9   :  { %3998 = vmatprep.subr.bf16.mxu0 %v6181_v7  ;;  %4039 = vmatprep.subr.bf16.mxu1 %v6183_v28 }
 0xabc   :  { %3999 = vmatpush1.bf16.msra.mxu0 %v6185_v30  ;;  %4040 = vmatpush1.bf16.msra.mxu1 %v6187_v46 }
 0xabd   :  { %4000 = vmatprep.subr.bf16.mxu0 %v6193_v56  ;;  %4041 = vmatprep.subr.bf16.mxu1 %v6195_v19 }
 0xac0   :  { %4001 = vmatpush1.bf16.msra.mxu0 %v6197_v61  ;;  %4042 = vmatpush1.bf16.msra.mxu1 %v6199_v9 }
 0xac1   :  { %4002 = vmatprep.subr.bf16.mxu0 %v6205_v59  ;;  %4043 = vmatprep.subr.bf16.mxu1 %v6207_v5 }
 0xac4   :  { %4003 = vmatpush1.bf16.msra.mxu0 %v6209_v4  ;;  %4044 = vmatpush1.bf16.msra.mxu1 %v6211_v31 }
 0xac5   :  { %4004 = vmatprep.subr.bf16.mxu0 %v6217_v32  ;;  %4045 = vmatprep.subr.bf16.mxu1 %v6219_v55 }
 0xac8   :  { %4005 = vmatpush1.bf16.msra.mxu0 %v6221_v34  ;;  %4046 = vmatpush1.bf16.msra.mxu1 %v6223_v35 }
 0xac9   :  { %4006 = vmatprep.subr.bf16.mxu0 %v6225_v38  ;;  %4047 = vmatprep.subr.bf16.mxu1 %v6227_v39 }
 0xacc   :  { %4007 = vmatpush1.bf16.msra.mxu0 %v6233_v29  ;;  %4048 = vmatpush1.bf16.msra.mxu1 %v6235_v33 }
 0xacd   :  { %4099 = vmatprep.subr.bf16.mxu0 %v6145_v14  ;;  %4140 = vmatprep.subr.bf16.mxu1 %v6147_v16 }
 0xb6f   :  { %v3919_v41 = vpop.f32.mrf.mxu0  ;;  %v3960_v48 = vpop.f32.mrf.mxu1 }
 0xb70   :  { %v3920_v11 = vadd.f32 %v3919_v41, %v3881_v8  ;;  %v3961_v15 = vadd.f32 %v3960_v48, %v3883_v42  ;;  %v6553_v42 = vld [vmem:[#allocation11 + $0xe8] ss:$16 sps:$4 sm:$0xff]  }
 0xb71   :  { %v3921_v57 = vpop.f32.mrf.mxu0  ;;  %v3962_v2 = vpop.f32.mrf.mxu1 }
 0xb72   :  { %v3967_v58 = vmul.f32 0.5, %v3920_v11  ;;  %v3922_v50 = vadd.f32 %v3921_v57, %v3882_v1  ;;  %v3963_v14 = vadd.f32 %v3962_v2, %v3884_v52  ;;  %v3969_v3 = vmul.f32 0.5, %v3961_v15  ;;  %v6556_v15 = vld [vmem:[#allocation11 + $0xc4] ss:$16 sps:$4 sm:$0xff]  }
 0xb73   :  { %v3923_v63 = vpop.f32.mrf.mxu0  ;;  %v3964_v12 = vpop.f32.mrf.mxu1 }
 0xb74   :  { %5325 = vtanh.f32 %v3967_v58  ;;  %v3968_v62 = vmul.f32 0.5, %v3922_v50 }
 0xb75   :  { %v3924_v47 = vpop.f32.mrf.mxu0  ;;  %v3965_v16 = vpop.f32.mrf.mxu1 }
 0xb76   :  { %5327 = vtanh.f32 %v3968_v62  ;;  %v6550_v16 = vld [vmem:[#allocation11 + $0xe0] ss:$16 sps:$4 sm:$0xff]  }
 0xb77   :  { %5329 = vtanh.f32 %v3963_v14 }
 0xb78   :  { %5331 = vtanh.f32 %v3969_v3  ;;  %v6559_v3 = vld [vmem:[#allocation11 + $0xcc] ss:$16 sps:$4 sm:$0xff]  }
 0xb81   :  { %v5326_v44 = vpop.eup %5325 }
 0xb82   :  { %v3973_v10 = vadd.f32 1.0, %v5326_v44  ;;  %v6564_v44 = vld [vmem:[#allocation11 + $0xc0] ss:$16 sps:$4 sm:$0xff]  }
 0xb83   :  { %v5328_v49 = vpop.eup %5327 }
 0xb84   :  { %v3976_v0 = vmul.f32 0.5, %v3973_v10  ;;  %v3974_v40 = vadd.f32 1.0, %v5328_v49  ;;  %v5330_v54 = vpop.eup %5329  ;;  %v6567_v10 = vld [vmem:[#allocation11 + $0xc8] ss:$16 sps:$4 sm:$0xff]   ;;  %v6570_v49 = vld [vmem:[#allocation11 + $0xa4] ss:$16 sps:$4 sm:$0xff]  }
 0xb85   :  { %v5332_v11 = vpop.eup %5331 }
 0xb86   :  { %v3977_v53 = vmul.f32 0.5, %v3974_v40  ;;  %v3981_v43 = vmul.f32 %v5330_v54, %v3976_v0  ;;  %v3975_v1 = vadd.f32 1.0, %v5332_v11  ;;  %v6573_v0 = vld [vmem:[#allocation11 + $0xac] ss:$16 sps:$4 sm:$0xff]   ;;  %v6576_v40 = vld [vmem:[#allocation11 + $0xa0] ss:$16 sps:$4 sm:$0xff]  }
 0xb87   :  { %v6579_v54 = vld [vmem:[#allocation11 + $0xa8] ss:$16 sps:$4 sm:$0xff]   ;;  %v6594_v11 = vld [vmem:[#allocation11 + $0x64] ss:$16 sps:$4 sm:$0xff]  }
 0xb88   :  { %v3980_v8 = vmul.f32 %v3977_v53, %v6459_v13  ;;  %v3978_v57 = vmul.f32 0.5, %v3975_v1  ;;  %v6582_v53 = vld [vmem:[#allocation11 + $0x84] ss:$16 sps:$4 sm:$0xff]   ;;  %v6597_v1 = vld [vmem:[#allocation11 + $0x6c] ss:$16 sps:$4 sm:$0xff]  }
 0xb8a   :  { %v6501_v41 = vadd.f32 %v3981_v43, %v3980_v8  ;;  %v6585_v43 = vld [vmem:[#allocation11 + $0x8c] ss:$16 sps:$4 sm:$0xff]   ;;  %v6588_v8 = vld [vmem:[#allocation11 + $0x80] ss:$16 sps:$4 sm:$0xff]  }
 0xb8c   :  { %5333 = vtanh.f32 %v6501_v41 }
 0xb99   :  { %v5334_v48 = vpop.eup %5333 }
 0xb9a   :  { %v3984_v2 = vmul.f32 %v5334_v48, %v3978_v57  ;;  %v6600_v57 = vld [vmem:[#allocation11 + $0x60] ss:$16 sps:$4 sm:$0xff]   ;;  %v6603_v48 = vld [vmem:[#allocation11 + $0x68] ss:$16 sps:$4 sm:$0xff]  }
 0xb9c   :  { %v3985_v58 = vpack.c.bf16 %v3984_v2, %v3984_v2  ;;  %v6606_v2 = vld [vmem:[#allocation11 + $0x44] ss:$16 sps:$4 sm:$0xff]  }
 0xb9e   :  { %4025 = vmatmul.mubr.bf16.vlgmr.msra.gmra.mxu0 %v3985_v58  ;;  %4066 = vmatmul.mubr.bf16.vlgmr.msra.gmra.mxu1 %v3985_v58  ;;  %v6609_v58 = vld [vmem:[#allocation11 + $0x4c] ss:$16 sps:$4 sm:$0xff]  }
 0xb9f   :  { %4100 = vmatpush1.bf16.msra.mxu0 %v6149_v17  ;;  %4141 = vmatpush1.bf16.msra.mxu1 %v6151_v18  ;;  %v6536_v17 = vld [vmem:[#allocation11 + $0xe4] ss:$16 sps:$4 sm:$0xff]   ;;  %v6539_v18 = vld [vmem:[#allocation11 + $0xec] ss:$16 sps:$4 sm:$0xff]  }
 0xba0   :  { %4101 = vmatprep.subr.bf16.mxu0 %v6157_v20  ;;  %4142 = vmatprep.subr.bf16.mxu1 %v6159_v21  ;;  %v6787_v20 = vld [vmem:[#allocation20_spill] sm:$0xff] }
 0xba1   :  { %4131 = vmatprep.mubr.bf16.mxu0 %v6764_v36  ;;  %4172 = vmatprep.mubr.bf16.mxu1 %v6764_v36  ;;  %v3988_v21 = vunpack.c.l.bf16 %v6787_v20 }
 0xba3   :  { %4102 = vmatpush1.bf16.msra.mxu0 %v6161_v22  ;;  %4143 = vmatpush1.bf16.msra.mxu1 %v6163_v23 }
 0xba4   :  { %4103 = vmatprep.subr.bf16.mxu0 %v6169_v24  ;;  %4144 = vmatprep.subr.bf16.mxu1 %v6171_v25  ;;  %v3989_v25 = vunpack.c.h.bf16 %v6787_v20  ;;  %v6612_v20 = vld [vmem:[#allocation11 + $0x40] ss:$16 sps:$4 sm:$0xff]  }
 0xba7   :  { %4104 = vmatpush1.bf16.msra.mxu0 %v6173_v26  ;;  %4145 = vmatpush1.bf16.msra.mxu1 %v6175_v27 }
 0xba8   :  { %4105 = vmatprep.subr.bf16.mxu0 %v6181_v7  ;;  %4146 = vmatprep.subr.bf16.mxu1 %v6183_v28 }
 0xbab   :  { %4106 = vmatpush1.bf16.msra.mxu0 %v6185_v30  ;;  %4147 = vmatpush1.bf16.msra.mxu1 %v6187_v46  ;;  %v6788_v30 = vld [vmem:[#allocation21_spill] sm:$0xff] }
 0xbac   :  { %4107 = vmatprep.subr.bf16.mxu0 %v6193_v56  ;;  %4148 = vmatprep.subr.bf16.mxu1 %v6195_v19  ;;  %v3991_v46 = vunpack.c.h.bf16 %v6788_v30 }
 0xbaf   :  { %4108 = vmatpush1.bf16.msra.mxu0 %v6197_v61  ;;  %4149 = vmatpush1.bf16.msra.mxu1 %v6199_v9 }
 0xbb0   :  { %4109 = vmatprep.subr.bf16.mxu0 %v6205_v59  ;;  %4150 = vmatprep.subr.bf16.mxu1 %v6207_v5 }
 0xbb3   :  { %4110 = vmatpush1.bf16.msra.mxu0 %v6209_v4  ;;  %4151 = vmatpush1.bf16.msra.mxu1 %v6211_v31  ;;  %v3990_v4 = vunpack.c.l.bf16 %v6788_v30  ;;  %v6789_v30 = vld [vmem:[#allocation24_spill] sm:$0xff] }
 0xbb4   :  { %4111 = vmatprep.subr.bf16.mxu0 %v6217_v32  ;;  %4152 = vmatprep.subr.bf16.mxu1 %v6219_v55 }
 0xbb7   :  { %4112 = vmatpush1.bf16.msra.mxu0 %v6221_v34  ;;  %4153 = vmatpush1.bf16.msra.mxu1 %v6223_v35 }
 0xbb8   :  { %4113 = vmatprep.subr.bf16.mxu0 %v6225_v38  ;;  %4154 = vmatprep.subr.bf16.mxu1 %v6227_v39 }
 0xbbb   :  { %4114 = vmatpush1.bf16.msra.mxu0 %v6233_v29  ;;  %4155 = vmatpush1.bf16.msra.mxu1 %v6235_v33 }
 0xbbc   :  { %4206 = vmatprep.subr.bf16.mxu0 %v6536_v17  ;;  %4247 = vmatprep.subr.bf16.mxu1 %v6539_v18 }
 0xc5e   :  { %v4026_v22 = vpop.f32.mrf.mxu0  ;;  %v4067_v23 = vpop.f32.mrf.mxu1 }
 0xc5f   :  { %v4027_v24 = vadd.f32 %v4026_v22, %v3988_v21  ;;  %v4068_v31 = vadd.f32 %v4067_v23, %v3990_v4  ;;  %v6615_v21 = vld [vmem:[#allocation11 + $0x48] ss:$16 sps:$4 sm:$0xff]   ;;  %v6618_v22 = vld [vmem:[#allocation11 + $0x24] ss:$16 sps:$4 sm:$0xff]   ;;  %v6621_v23 = vld [vmem:[#allocation11 + $0x2c] ss:$16 sps:$4 sm:$0xff]  }
 0xc60   :  { %v4028_v26 = vpop.f32.mrf.mxu0  ;;  %v4069_v27 = vpop.f32.mrf.mxu1  ;;  %v6793_v4 = vld [vmem:[#allocation18_spill] sm:$0xff] }
 0xc61   :  { %v4074_v7 = vmul.f32 0.5, %v4027_v24  ;;  %v4029_v28 = vadd.f32 %v4028_v26, %v3989_v25  ;;  %v4070_v9 = vadd.f32 %v4069_v27, %v3991_v46  ;;  %v4076_v32 = vmul.f32 0.5, %v4068_v31  ;;  %v6624_v24 = vld [vmem:[#allocation11 + $0x20] ss:$16 sps:$4 sm:$0xff]   ;;  %v6627_v25 = vld [vmem:[#allocation11 + $0x28] ss:$16 sps:$4 sm:$0xff]  }
 0xc62   :  { %v4030_v56 = vpop.f32.mrf.mxu0  ;;  %v4071_v19 = vpop.f32.mrf.mxu1  ;;  %v6630_v26 = vld [vmem:[#allocation11 + $0x4] ss:$16 sps:$4 sm:$0xff]   ;;  %v6633_v27 = vld [vmem:[#allocation11 + $0xc] ss:$16 sps:$4 sm:$0xff]   ;;  %v3165_v46 = vadd.f32 %v6789_v30, %v6269_v6 }
 0xc63   :  { %5335 = vtanh.f32 %v4074_v7  ;;  %v4075_v61 = vmul.f32 0.5, %v4029_v28  ;;  %v6636_v7 = vld [vmem:[#allocation11] ss:$16 sps:$4 sm:$0xff]   ;;  %v6639_v28 = vld [vmem:[#allocation11 + $0x8] ss:$16 sps:$4 sm:$0xff]  }
 0xc64   :  { %v4031_v59 = vpop.f32.mrf.mxu0  ;;  %v4072_v5 = vpop.f32.mrf.mxu1  ;;  %v6790_v56 = vld [vmem:[#allocation17_spill] sm:$0xff]  ;;  %v6791_v19 = vld [vmem:[#allocation22_spill] sm:$0xff]  ;;  %v6794_v31 = vld [vmem:[#allocation23_spill] sm:$0xff] }
 0xc65   :  { %5337 = vtanh.f32 %v4075_v61  ;;  %v3163_v61 = vadd.f32 %v6791_v19, %v6790_v56  ;;  %v6792_v59 = vld [vmem:[#allocation25_spill] sm:$0xff] }
 0xc66   :  { %5339 = vtanh.f32 %v4070_v9  ;;  %v3238_v5 = vadd.f32 %v6792_v59, %v6273_v37 }
 0xc67   :  { %5341 = vtanh.f32 %v4076_v32  ;;  %v4947_v9 = vpack.c.bf16 %v3165_v46, %v3163_v61  ;;  %v3236_v32 = vadd.f32 %v6794_v31, %v6793_v4 }
 0xc70   :  { %v5336_v55 = vpop.eup %5335 }
 0xc71   :  { %v4080_v34 = vadd.f32 1.0, %v5336_v55  ;;  %v4948_v55 = vpack.c.bf16 %v3238_v5, %v3236_v32 }
 0xc72   :  { %v5338_v35 = vpop.eup %5337 }
 0xc73   :  { %v4083_v38 = vmul.f32 0.5, %v4080_v34  ;;  %v4081_v39 = vadd.f32 1.0, %v5338_v35  ;;  %v5340_v29 = vpop.eup %5339  ;;  %v4095_v34 = vunpack.c.l.bf16 %v4947_v9 }
 0xc74   :  { %v5342_v52 = vpop.eup %5341 }
 0xc75   :  { %v4084_v33 = vmul.f32 0.5, %v4081_v39  ;;  %v4088_v13 = vmul.f32 %v5340_v29, %v4083_v38  ;;  %v4082_v63 = vadd.f32 1.0, %v5342_v52  ;;  %v4096_v39 = vunpack.c.h.bf16 %v4947_v9 }
 0xc77   :  { %v4087_v50 = vmul.f32 %v4084_v33, %v6501_v41  ;;  %v4085_v12 = vmul.f32 0.5, %v4082_v63  ;;  %v6591_v41 = vld [vmem:[#allocation11 + $0x88] ss:$16 sps:$4 sm:$0xff]  }
 0xc79   :  { %v6547_v60 = vadd.f32 %v4088_v13, %v4087_v50  ;;  %v4098_v13 = vunpack.c.h.bf16 %v4948_v55 }
 0xc7b   :  { %5343 = vtanh.f32 %v6547_v60 }
 0xc88   :  { %v5344_v62 = vpop.eup %5343 }
 0xc89   :  { %v4091_v14 = vmul.f32 %v5344_v62, %v4085_v12 }
 0xc8b   :  { %v4092_v47 = vpack.c.bf16 %v4091_v14, %v4091_v14  ;;  %v4097_v14 = vunpack.c.l.bf16 %v4948_v55 }
 0xc8d   :  { %4132 = vmatmul.mubr.bf16.vlgmr.msra.gmra.mxu0 %v4092_v47  ;;  %4173 = vmatmul.mubr.bf16.vlgmr.msra.gmra.mxu1 %v4092_v47 }
 0xc8e   :  { %4207 = vmatpush1.bf16.msra.mxu0 %v6550_v16  ;;  %4248 = vmatpush1.bf16.msra.mxu1 %v6553_v42 }
 0xc8f   :  { %4208 = vmatprep.subr.bf16.mxu0 %v6556_v15  ;;  %4249 = vmatprep.subr.bf16.mxu1 %v6559_v3 }
 0xc90   :  { %4238 = vmatprep.mubr.bf16.mxu0 %v6764_v36  ;;  %4279 = vmatprep.mubr.bf16.mxu1 %v6764_v36 }
 0xc92   :  { %4209 = vmatpush1.bf16.msra.mxu0 %v6564_v44  ;;  %4250 = vmatpush1.bf16.msra.mxu1 %v6567_v10 }
 0xc93   :  { %4210 = vmatprep.subr.bf16.mxu0 %v6570_v49  ;;  %4251 = vmatprep.subr.bf16.mxu1 %v6573_v0 }
 0xc96   :  { %4211 = vmatpush1.bf16.msra.mxu0 %v6576_v40  ;;  %4252 = vmatpush1.bf16.msra.mxu1 %v6579_v54 }
 0xc97   :  { %4212 = vmatprep.subr.bf16.mxu0 %v6582_v53  ;;  %4253 = vmatprep.subr.bf16.mxu1 %v6585_v43 }
 0xc9a   :  { %4213 = vmatpush1.bf16.msra.mxu0 %v6588_v8  ;;  %4254 = vmatpush1.bf16.msra.mxu1 %v6591_v41 }
 0xc9b   :  { %4214 = vmatprep.subr.bf16.mxu0 %v6594_v11  ;;  %4255 = vmatprep.subr.bf16.mxu1 %v6597_v1 }
 0xc9e   :  { %4215 = vmatpush1.bf16.msra.mxu0 %v6600_v57  ;;  %4256 = vmatpush1.bf16.msra.mxu1 %v6603_v48 }
 0xc9f   :  { %4216 = vmatprep.subr.bf16.mxu0 %v6606_v2  ;;  %4257 = vmatprep.subr.bf16.mxu1 %v6609_v58 }
 0xca2   :  { %4217 = vmatpush1.bf16.msra.mxu0 %v6612_v20  ;;  %4258 = vmatpush1.bf16.msra.mxu1 %v6615_v21 }
 0xca3   :  { %4218 = vmatprep.subr.bf16.mxu0 %v6618_v22  ;;  %4259 = vmatprep.subr.bf16.mxu1 %v6621_v23 }
 0xca6   :  { %4219 = vmatpush1.bf16.msra.mxu0 %v6624_v24  ;;  %4260 = vmatpush1.bf16.msra.mxu1 %v6627_v25 }
 0xca7   :  { %4220 = vmatprep.subr.bf16.mxu0 %v6630_v26  ;;  %4261 = vmatprep.subr.bf16.mxu1 %v6633_v27 }
 0xcaa   :  { %4221 = vmatpush1.bf16.msra.mxu0 %v6636_v7  ;;  %4262 = vmatpush1.bf16.msra.mxu1 %v6639_v28 }
 0xcab   :  { %4313 = vmatprep.subr.bf16.mxu0 %v6536_v17  ;;  %4354 = vmatprep.subr.bf16.mxu1 %v6539_v18 }
 0xd4d   :  { %v4133_v35 = vpop.f32.mrf.mxu0  ;;  %v4174_v38 = vpop.f32.mrf.mxu1 }
 0xd4e   :  { %v4134_v17 = vadd.f32 %v4133_v35, %v4095_v34  ;;  %v4175_v47 = vadd.f32 %v4174_v38, %v4097_v14  ;;  %v5212_v14 = vld [vmem:[%s6738_s7 + $0x10] sm:$0xff]  }
 0xd4f   :  { %v4135_v18 = vpop.f32.mrf.mxu0  ;;  %v4176_v29 = vpop.f32.mrf.mxu1 }
 0xd50   :  { %v4181_v33 = vmul.f32 0.5, %v4134_v17  ;;  %v4136_v6 = vadd.f32 %v4135_v18, %v4096_v39  ;;  %v4177_v12 = vadd.f32 %v4176_v29, %v4098_v13  ;;  %v4183_v30 = vmul.f32 0.5, %v4175_v47  ;;  %v5213_v47 = vld [vmem:[%s6738_s7 + $0x8] sm:$0xff]  }
 0xd51   :  { %v4137_v50 = vpop.f32.mrf.mxu0  ;;  %v4178_v52 = vpop.f32.mrf.mxu1 }
 0xd52   :  { %5345 = vtanh.f32 %v4181_v33  ;;  %v4182_v63 = vmul.f32 0.5, %v4136_v6  ;;  %v5207_v50 = vld [vmem:[%s6738_s7 + $0x38] sm:$0xff]   ;;  %v5500_v52 = vmov 0.0  }
 0xd53   :  { %v4138_v37 = vpop.f32.mrf.mxu0  ;;  %v4179_v62 = vpop.f32.mrf.mxu1 }
 0xd54   :  { %5347 = vtanh.f32 %v4182_v63  ;;  %v5208_v63 = vld [vmem:[%s6738_s7 + $0x30] sm:$0xff]   ;;  %v5210_v37 = vld [vmem:[%s6738_s7 + $0x20] sm:$0xff]   ;;  %v5211_v62 = vld [vmem:[%s6738_s7 + $0x18] sm:$0xff]  }
 0xd55   :  { %5349 = vtanh.f32 %v4177_v12  ;;  %v5209_v12 = vld [vmem:[%s6738_s7 + $0x28] sm:$0xff]  }
 0xd56   :  { %5351 = vtanh.f32 %v4183_v30  ;;  %v5214_v30 = vld [vmem:[%s6738_s7] sm:$0xff]  }
 0xd5f   :  { %v5346_v46 = vpop.eup %5345 }
 0xd60   :  { %v4187_v56 = vadd.f32 1.0, %v5346_v46  ;;  %v4309_v46 = vunpack.c.l.bf16 %v6371_v51 }
 0xd61   :  { %v5348_v19 = vpop.eup %5347 }
 0xd62   :  { %v4190_v61 = vmul.f32 0.5, %v4187_v56  ;;  %v4188_v9 = vadd.f32 1.0, %v5348_v19  ;;  %v5350_v59 = vpop.eup %5349 }
 0xd63   :  { %v5352_v34 = vpop.eup %5351 }
 0xd64   :  { %v4191_v5 = vmul.f32 0.5, %v4188_v9  ;;  %v4195_v4 = vmul.f32 %v5350_v59, %v4190_v61  ;;  %v4189_v35 = vadd.f32 1.0, %v5352_v34  ;;  %v4310_v9 = vunpack.c.h.bf16 %v6371_v51 }
 0xd66   :  { %v4194_v31 = vmul.f32 %v4191_v5, %v6547_v60  ;;  %v4192_v55 = vmul.f32 0.5, %v4189_v35 }
 0xd68   :  { %v6653_v32 = vadd.f32 %v4195_v4, %v4194_v31 }
 0xd6a   :  { %5353 = vtanh.f32 %v6653_v32 }
 0xd77   :  { %v5354_v38 = vpop.eup %5353 }
 0xd78   :  { %v4198_v17 = vmul.f32 %v5354_v38, %v4192_v55 }
 0xd7a   :  { %v4199_v39 = vpack.c.bf16 %v4198_v17, %v4198_v17 }
 0xd7c   :  { %4239 = vmatmul.mubr.bf16.vlgmr.msra.gmra.mxu0 %v4199_v39  ;;  %4280 = vmatmul.mubr.bf16.vlgmr.msra.gmra.mxu1 %v4199_v39 }
 0xd7d   :  { %4314 = vmatpush1.bf16.msra.mxu0 %v6550_v16  ;;  %4355 = vmatpush1.bf16.msra.mxu1 %v6553_v42 }
 0xd7e   :  { %4315 = vmatprep.subr.bf16.mxu0 %v6556_v15  ;;  %4356 = vmatprep.subr.bf16.mxu1 %v6559_v3 }
 0xd7f   :  { %4345 = vmatprep.mubr.bf16.mxu0 %v6764_v36  ;;  %4386 = vmatprep.mubr.bf16.mxu1 %v6764_v36  ;;  %v6795_v36 = vld [vmem:[#allocation26_spill] sm:$0xff] }
 0xd80   :  { %v4202_v60 = vunpack.c.l.bf16 %v6795_v36  ;;  %v4203_v3 = vunpack.c.h.bf16 %v6795_v36  ;;  %v4311_v36 = vunpack.c.l.bf16 %v6373_v45 }
 0xd81   :  { %4316 = vmatpush1.bf16.msra.mxu0 %v6564_v44  ;;  %4357 = vmatpush1.bf16.msra.mxu1 %v6567_v10 }
 0xd82   :  { %4317 = vmatprep.subr.bf16.mxu0 %v6570_v49  ;;  %4358 = vmatprep.subr.bf16.mxu1 %v6573_v0 }
 0xd85   :  { %4318 = vmatpush1.bf16.msra.mxu0 %v6576_v40  ;;  %4359 = vmatpush1.bf16.msra.mxu1 %v6579_v54  ;;  %v6796_v40 = vld [vmem:[#allocation27_spill] sm:$0xff] }
 0xd86   :  { %4319 = vmatprep.subr.bf16.mxu0 %v6582_v53  ;;  %4360 = vmatprep.subr.bf16.mxu1 %v6585_v43  ;;  %v4205_v54 = vunpack.c.h.bf16 %v6796_v40 }
 0xd89   :  { %4320 = vmatpush1.bf16.msra.mxu0 %v6588_v8  ;;  %4361 = vmatpush1.bf16.msra.mxu1 %v6591_v41 }
 0xd8a   :  { %4321 = vmatprep.subr.bf16.mxu0 %v6594_v11  ;;  %4362 = vmatprep.subr.bf16.mxu1 %v6597_v1 }
 0xd8d   :  { %4322 = vmatpush1.bf16.msra.mxu0 %v6600_v57  ;;  %4363 = vmatpush1.bf16.msra.mxu1 %v6603_v48  ;;  %v4204_v57 = vunpack.c.l.bf16 %v6796_v40 }
 0xd8e   :  { %4323 = vmatprep.subr.bf16.mxu0 %v6606_v2  ;;  %4364 = vmatprep.subr.bf16.mxu1 %v6609_v58 }
 0xd91   :  { %4324 = vmatpush1.bf16.msra.mxu0 %v6612_v20  ;;  %4365 = vmatpush1.bf16.msra.mxu1 %v6615_v21 }
 0xd92   :  { %4325 = vmatprep.subr.bf16.mxu0 %v6618_v22  ;;  %4366 = vmatprep.subr.bf16.mxu1 %v6621_v23 }
 0xd95   :  { %4326 = vmatpush1.bf16.msra.mxu0 %v6624_v24  ;;  %4367 = vmatpush1.bf16.msra.mxu1 %v6627_v25 }
 0xd96   :  { %4327 = vmatprep.subr.bf16.mxu0 %v6630_v26  ;;  %4368 = vmatprep.subr.bf16.mxu1 %v6633_v27 }
 0xd99   :  { %4328 = vmatpush1.bf16.msra.mxu0 %v6636_v7  ;;  %4369 = vmatpush1.bf16.msra.mxu1 %v6639_v28 }
 0xd9a   :  { %4962 = vmatprep.subr.bf16.mxu0 %v5500_v52 }
 0xe3c   :  { %v4240_v16 = vpop.f32.mrf.mxu0  ;;  %v4281_v42 = vpop.f32.mrf.mxu1 }
 0xe3d   :  { %v4241_v15 = vadd.f32 %v4240_v16, %v4202_v60  ;;  %v4282_v48 = vadd.f32 %v4281_v42, %v4204_v57 }
 0xe3e   :  { %v4242_v44 = vpop.f32.mrf.mxu0  ;;  %v4283_v10 = vpop.f32.mrf.mxu1 }
 0xe3f   :  { %v4288_v49 = vmul.f32 0.5, %v4241_v15  ;;  %v4243_v0 = vadd.f32 %v4242_v44, %v4203_v3  ;;  %v4284_v41 = vadd.f32 %v4283_v10, %v4205_v54  ;;  %v4290_v2 = vmul.f32 0.5, %v4282_v48 }
 0xe40   :  { %v4244_v53 = vpop.f32.mrf.mxu0  ;;  %v4285_v43 = vpop.f32.mrf.mxu1 }
 0xe41   :  { %5355 = vtanh.f32 %v4288_v49  ;;  %v4289_v8 = vmul.f32 0.5, %v4243_v0 }
 0xe42   :  { %v4245_v11 = vpop.f32.mrf.mxu0  ;;  %v4286_v1 = vpop.f32.mrf.mxu1 }
 0xe43   :  { %5357 = vtanh.f32 %v4289_v8  ;;  %v4912_v1 = vld [vmem:[%s6739_s8] ss:$0 sm:$0xff] }
 0xe44   :  { %5359 = vtanh.f32 %v4284_v41 }
 0xe45   :  { %5361 = vtanh.f32 %v4290_v2 }
 0xe4e   :  { %v5356_v58 = vpop.eup %5355 }
 0xe4f   :  { %v4294_v20 = vadd.f32 1.0, %v5356_v58 }
 0xe50   :  { %v5358_v21 = vpop.eup %5357 }
 0xe51   :  { %v4297_v22 = vmul.f32 0.5, %v4294_v20  ;;  %v4295_v23 = vadd.f32 1.0, %v5358_v21  ;;  %v5360_v24 = vpop.eup %5359 }
 0xe52   :  { %v5362_v28 = vpop.eup %5361 }
 0xe53   :  { %v4298_v25 = vmul.f32 0.5, %v4295_v23  ;;  %v4302_v26 = vmul.f32 %v5360_v24, %v4297_v22  ;;  %v4296_v18 = vadd.f32 1.0, %v5362_v28 }
 0xe55   :  { %v4301_v27 = vmul.f32 %v4298_v25, %v6653_v32  ;;  %v4299_v29 = vmul.f32 0.5, %v4296_v18  ;;  %v4312_v32 = vunpack.c.h.bf16 %v6373_v45 }
 0xe57   :  { %v6693_v7 = vadd.f32 %v4302_v26, %v4301_v27 }
 0xe59   :  { %5363 = vtanh.f32 %v6693_v7 }
 0xe66   :  { %v5364_v33 = vpop.eup %5363 }
 0xe67   :  { %v4305_v6 = vmul.f32 %v5364_v33, %v4299_v29 }
 0xe69   :  { %v4306_v13 = vpack.c.bf16 %v4305_v6, %v4305_v6 }
 0xe6b   :  { %4346 = vmatmul.mubr.bf16.vlgmr.msra.gmra.mxu0 %v4306_v13  ;;  %4387 = vmatmul.mubr.bf16.vlgmr.msra.gmra.mxu1 %v4306_v13 }
 0xe6c   :  { %4963 = vmatpush3.bf16.msra.mxu0 %v5207_v50  ;;  %4978 = vmatprep.mubr.msk.bf16.mxu0 %vm5501_vm2, %v5500_v52 }
 0xe6d   :  { %4964 = vmatprep.subr.bf16.mxu0 %v5500_v52 }
 0xe70   :  { %4965 = vmatpush3.bf16.msra.mxu0 %v5208_v63 }
 0xe71   :  { %4966 = vmatprep.subr.bf16.mxu0 %v5500_v52 }
 0xe74   :  { %4967 = vmatpush3.bf16.msra.mxu0 %v5209_v12 }
 0xe75   :  { %4968 = vmatprep.subr.bf16.mxu0 %v5500_v52 }
 0xe78   :  { %4969 = vmatpush3.bf16.msra.mxu0 %v5210_v37 }
 0xe79   :  { %4970 = vmatprep.subr.bf16.mxu0 %v5500_v52 }
 0xe7c   :  { %4971 = vmatpush3.bf16.msra.mxu0 %v5211_v62 }
 0xe7d   :  { %4972 = vmatprep.subr.bf16.mxu0 %v5500_v52 }
 0xe80   :  { %4973 = vmatpush3.bf16.msra.mxu0 %v5212_v14 }
 0xe81   :  { %4974 = vmatprep.subr.bf16.mxu0 %v5500_v52 }
 0xe84   :  { %4975 = vmatpush3.bf16.msra.mxu0 %v5213_v47 }
 0xe85   :  { %4976 = vmatprep.subr.bf16.mxu0 %v5500_v52 }
 0xe88   :  { %4977 = vmatpush3.bf16.msra.mxu0 %v5214_v30 }
 0xf2b   :  { %v4347_v56 = vpop.f32.mrf.mxu0  ;;  %v4388_v19 = vpop.f32.mrf.mxu1 }
 0xf2c   :  { %v4348_v61 = vadd.f32 %v4347_v56, %v4309_v46  ;;  %v4389_v60 = vadd.f32 %v4388_v19, %v4311_v36 }
 0xf2d   :  { %v4349_v59 = vpop.f32.mrf.mxu0  ;;  %v4390_v5 = vpop.f32.mrf.mxu1 }
 0xf2e   :  { %v4395_v4 = vmul.f32 0.5, %v4348_v61  ;;  %v4350_v31 = vadd.f32 %v4349_v59, %v4310_v9  ;;  %v4391_v38 = vadd.f32 %v4390_v5, %v4312_v32  ;;  %v4397_v16 = vmul.f32 0.5, %v4389_v60 }
 0xf2f   :  { %v4351_v34 = vpop.f32.mrf.mxu0  ;;  %v4392_v35 = vpop.f32.mrf.mxu1 }
 0xf30   :  { %5365 = vtanh.f32 %v4395_v4  ;;  %v4396_v55 = vmul.f32 0.5, %v4350_v31 }
 0xf31   :  { %v4352_v17 = vpop.f32.mrf.mxu0  ;;  %v4393_v39 = vpop.f32.mrf.mxu1 }
 0xf32   :  { %5367 = vtanh.f32 %v4396_v55 }
 0xf33   :  { %5369 = vtanh.f32 %v4391_v38 }
 0xf34   :  { %5371 = vtanh.f32 %v4397_v16 }
 0xf3d   :  { %v5366_v51 = vpop.eup %5365 }
 0xf3e   :  { %v4401_v42 = vadd.f32 1.0, %v5366_v51 }
 0xf3f   :  { %v5368_v15 = vpop.eup %5367 }
 0xf40   :  { %v4404_v3 = vmul.f32 0.5, %v4401_v42  ;;  %v4402_v44 = vadd.f32 1.0, %v5368_v15  ;;  %v5370_v10 = vpop.eup %5369 }
 0xf41   :  { %v5372_v53 = vpop.eup %5371 }
 0xf42   :  { %v4405_v49 = vmul.f32 0.5, %v4402_v44  ;;  %v4409_v0 = vmul.f32 %v5370_v10, %v4404_v3  ;;  %v4403_v43 = vadd.f32 1.0, %v5372_v53 }
 0xf44   :  { %v4408_v40 = vmul.f32 %v4405_v49, %v6693_v7  ;;  %v4406_v8 = vmul.f32 0.5, %v4403_v43 }
 0xf46   :  { %v4410_v54 = vadd.f32 %v4409_v0, %v4408_v40 }
 0xf48   :  { %5373 = vtanh.f32 %v4410_v54 }
 0xf55   :  { %v5374_v41 = vpop.eup %5373 }
 0xf56   :  { %v4412_v45 = vmul.f32 %v5374_v41, %v4406_v8 }
 0xf58   :  { %v4413_v11 = vpack.c.bf16 %v4412_v45, %v4412_v45 }
 0xf5a   :  { %4414 = vst [vmem:[#allocation4 + $0x4] sm:$0xf] %v4413_v11  ;;  %4979 = vmatmul.mubr.bf16.vlgmr.msra.gmra.mxu0 %v4413_v11 }
0x101a   :  { %v4524_v57 = vpop.f32.mrf.mxu0 }
0x101b   :  { %v4525_v48 = vadd.f32 %v4912_v1, %v4524_v57 }
0x101c   :  { %v4980_v2 = vpop.f32.mrf.mxu0 }
0x101d   :  { %4530 = vst [vmem:[%s6740_s9] sm:$0xff] %v4525_v48 }
0x101e   :  { %v4527_v58 = vpop.f32.mrf.mxu0 }
0x1020   :  { %v4981_v20 = vpop.f32.mrf.mxu0 }
0x1021   :  { %4535 = vsyncpa [#allocation7], 1 }
0x1022   :  { %4536 = vsyncpa [#allocation9], 1 }
0x1023   :  { %4537 = vsyncpa [#allocation12], 1 }

</bundles_post_ra>
